<compile_context>
chip_gen: v7x
topology: tpu7x:2x2x1
jax: 0.10.0
libtpu: 0.0.40
codegen_flags: <defaults>
</compile_context>

<pallas_src>
import functools

import jax
import jax.numpy as jnp
from jax.experimental import pallas as pl
from jax.experimental.pallas import tpu as pltpu

# Layer sizes, matching the PyTorch module's Sequential stacks.
LAYER_DIMS = [780, 600, 400, 200, 100, 200, 400, 600, 780]
# ReLU after every Linear except the encoder output (layer 3) and the final layer.
RELU_AFTER = [True, True, True, False, True, True, True, False]
NUM_LAYERS = 8


def _round_up(x, m):
    return (x + m - 1) // m * m


# Lane-padded layer widths: 896, 640, 512, 256, 128, 256, 512, 640, 896.
PADDED_DIMS = [_round_up(d, 128) for d in LAYER_DIMS]
BIAS_PAD = max(PADDED_DIMS[1:])  # 896 — packed-bias lane width


def autoencoder_kernel(x_ref, *refs):
    """refs = (w0..w7 [bf16, VMEM-resident], bias_pack [8,896] f32, out_ref)."""
    out_ref = refs[-1]
    bias_ref = refs[-2]
    w_refs = refs[:-2]

    h = x_ref[...]  # f32 (tb, 896), zero-padded lanes past 780
    for li in range(NUM_LAYERS):
        op = PADDED_DIMS[li + 1]
        # bf16 x bf16 -> f32 accumulate on the MXU.
        h = jnp.dot(h.astype(jnp.bfloat16), w_refs[li][...],
                    preferred_element_type=jnp.float32)
        h = h + bias_ref[li:li + 1, :op]          # f32 broadcast bias add
        if RELU_AFTER[li]:
            h = jnp.maximum(h, 0.0)
    # TODO(synk): optionally split the batch tile into two M-halves and
    # interleave layers so the MXU overlaps the VPU epilogue (est. +5-10%).
    out_ref[...] = h.astype(out_ref.dtype)


def prepare_params(params):
    """One-time prep: zero-pad to 128-lane widths, cast weights to bf16,
    pack all 8 biases into a single (8, 896) f32 array. Call once, reuse."""
    ws = []
    bias_rows = []
    for li, (w, b) in enumerate(params):
        ip, op = PADDED_DIMS[li], PADDED_DIMS[li + 1]
        wp = jnp.pad(w, ((0, ip - w.shape[0]), (0, op - w.shape[1])))
        ws.append(wp.astype(jnp.bfloat16))
        b2 = jnp.reshape(b, (1, -1)).astype(jnp.float32)
        bias_rows.append(jnp.pad(b2, ((0, 0), (0, BIAS_PAD - b2.shape[1]))))
    bias_pack = jnp.concatenate(bias_rows, axis=0)  # (8, 896) f32
    return tuple(ws) + (bias_pack,)


def _choose_batch_tile(batch, tile_cap):
    """Batch tile: multiple of 8 sublanes, <= tile_cap, >= 2 grid steps when
    possible (v7x megacore), and <= ~25% zero-row padding waste."""
    b8 = _round_up(batch, 8)
    if b8 < 16:
        return b8
    tb = min(tile_cap, _round_up((b8 + 1) // 2, 8))
    while tb > 8 and _round_up(b8, tb) - b8 > max(b8 // 4, 8):
        tb = _round_up(tb // 2, 8)
    return tb


@functools.partial(jax.jit, static_argnames=("tile_cap",))
def autoencoder_forward(x, flat_params, tile_cap=512):
    """x: [batch, 780] float32; flat_params: output of prepare_params()."""
    batch = x.shape[0]
    in_pad, out_pad = PADDED_DIMS[0], PADDED_DIMS[-1]

    tb = _choose_batch_tile(batch, tile_cap)
    batch_pad = _round_up(_round_up(batch, 8), tb)
    grid = (batch_pad // tb,)

    # Zero-pad batch to a tile multiple and features to the 128-lane width.
    xp = jnp.pad(x.astype(jnp.float32),
                 ((0, batch_pad - batch), (0, in_pad - LAYER_DIMS[0])))

    in_specs = [pl.BlockSpec((tb, in_pad), lambda i: (i, 0))]
    for li in range(NUM_LAYERS):
        ip, op = PADDED_DIMS[li], PADDED_DIMS[li + 1]
        # Constant index_map -> fetched once and VMEM-resident across the
        # grid; Buffered(1) -> no dead duplicate double-buffer copy.
        in_specs.append(
            pl.BlockSpec((ip, op), lambda i: (0, 0),
                         pipeline_mode=pl.Buffered(1)))
    in_specs.append(
        pl.BlockSpec((NUM_LAYERS, BIAS_PAD), lambda i: (0, 0),
                     pipeline_mode=pl.Buffered(1)))

    matmul_flops = 2 * batch_pad * sum(
        PADDED_DIMS[i] * PADDED_DIMS[i + 1] for i in range(NUM_LAYERS))
    param_bytes = sum(int(a.size) * a.dtype.itemsize for a in flat_params)
    bytes_accessed = (int(xp.size) * xp.dtype.itemsize
                      + batch_pad * out_pad * 4
                      + param_bytes)

    out_padded = pl.pallas_call(
        autoencoder_kernel,
        out_shape=jax.ShapeDtypeStruct((batch_pad, out_pad), jnp.float32),
        grid=grid,
        in_specs=in_specs,
        out_specs=pl.BlockSpec((tb, out_pad), lambda i: (i, 0)),
        compiler_params=pltpu.CompilerParams(
            dimension_semantics=("parallel",),
            vmem_limit_bytes=48 * 1024 * 1024,
        ),
        cost_estimate=pl.CostEstimate(
            flops=matmul_flops,
            transcendentals=0,
            bytes_accessed=bytes_accessed,
        ),
    )(xp, *flat_params)

    return out_padded[:batch, :LAYER_DIMS[-1]]


def init_params(key):
    """Deterministic init mirroring torch.nn.Linear's U(-1/sqrt(fan_in), +)."""
    params = []
    for li in range(NUM_LAYERS):
        fan_in = LAYER_DIMS[li]
        fan_out = LAYER_DIMS[li + 1]
        key, kw, kb = jax.random.split(key, 3)
        bound = 1.0 / (fan_in ** 0.5)
        w = jax.random.uniform(kw, (fan_in, fan_out), jnp.float32, -bound, bound)
        b = jax.random.uniform(kb, (1, fan_out), jnp.float32, -bound, bound)
        params.append((w, b))
    return params


def reference_forward(x, params):
    h = x
    for li, (w, b) in enumerate(params):
        h = h @ w + b
        if RELU_AFTER[li]:
            h = jnp.maximum(h, 0.0)
    return h


if __name__ == "__main__":
    key = jax.random.PRNGKey(0)
    kx, kp = jax.random.split(key)
    batch = 8
    x = jax.random.normal(kx, (batch, LAYER_DIMS[0]), dtype=jnp.float32)
    params = init_params(kp)
    flat_params = prepare_params(params)  # pad / bf16-cast / pack once

    out = autoencoder_forward(x, flat_params)
    out = jax.block_until_ready(out)

    ref = reference_forward(x, params)
    assert out.shape == (batch, LAYER_DIMS[-1]), out.shape
    assert out.dtype == jnp.float32
    # bf16 MXU inputs (f32 accumulate) -> looser tolerance than pure f32.
    assert jnp.allclose(out, ref, atol=5e-2, rtol=5e-2), float(
        jnp.max(jnp.abs(out - ref))
    )
    print("KERNEL_OK")
</pallas_src>

<mosaic_0001>
module attributes {stable_mosaic.version = 11 : i64} {
  func.func @autoencoder_kernel(%arg0: i32, %arg1: memref<8x896xf32, #tpu.memory_space<vmem>>, %arg2: memref<896x640xbf16, #tpu.memory_space<vmem>>, %arg3: memref<640x512xbf16, #tpu.memory_space<vmem>>, %arg4: memref<512x256xbf16, #tpu.memory_space<vmem>>, %arg5: memref<256x128xbf16, #tpu.memory_space<vmem>>, %arg6: memref<128x256xbf16, #tpu.memory_space<vmem>>, %arg7: memref<256x512xbf16, #tpu.memory_space<vmem>>, %arg8: memref<512x640xbf16, #tpu.memory_space<vmem>>, %arg9: memref<640x896xbf16, #tpu.memory_space<vmem>>, %arg10: memref<8x896xf32, #tpu.memory_space<vmem>>, %arg11: memref<8x896xf32, #tpu.memory_space<vmem>>) attributes {dimension_semantics = [#tpu.dimension_semantics<parallel>], iteration_bounds = array<i64: 1>, scalar_prefetch = 0 : i64, scratch_operands = 0 : i64, tpu.core_type = #tpu.core_type<tc>, window_params = [{transform_indices = @transform_0, window_bounds = array<i64: 8, 896>}, {pipeline_mode = #tpu.pipeline_mode<synchronous>, transform_indices = @transform_1, window_bounds = array<i64: 896, 640>}, {pipeline_mode = #tpu.pipeline_mode<synchronous>, transform_indices = @transform_2, window_bounds = array<i64: 640, 512>}, {pipeline_mode = #tpu.pipeline_mode<synchronous>, transform_indices = @transform_3, window_bounds = array<i64: 512, 256>}, {pipeline_mode = #tpu.pipeline_mode<synchronous>, transform_indices = @transform_4, window_bounds = array<i64: 256, 128>}, {pipeline_mode = #tpu.pipeline_mode<synchronous>, transform_indices = @transform_5, window_bounds = array<i64: 128, 256>}, {pipeline_mode = #tpu.pipeline_mode<synchronous>, transform_indices = @transform_6, window_bounds = array<i64: 256, 512>}, {pipeline_mode = #tpu.pipeline_mode<synchronous>, transform_indices = @transform_7, window_bounds = array<i64: 512, 640>}, {pipeline_mode = #tpu.pipeline_mode<synchronous>, transform_indices = @transform_8, window_bounds = array<i64: 640, 896>}, {pipeline_mode = #tpu.pipeline_mode<synchronous>, transform_indices = @transform_9, window_bounds = array<i64: 8, 896>}, {transform_indices = @transform_10, window_bounds = array<i64: 8, 896>}]} {
    %c0 = arith.constant 0 : index
    %c0_0 = arith.constant 0 : index
    %0 = vector.load %arg1[%c0, %c0_0] : memref<8x896xf32, #tpu.memory_space<vmem>>, vector<8x896xf32>
    %1 = arith.truncf %0 : vector<8x896xf32> to vector<8x896xbf16>
    %c0_1 = arith.constant 0 : index
    %c0_2 = arith.constant 0 : index
    %2 = vector.load %arg2[%c0_1, %c0_2] : memref<896x640xbf16, #tpu.memory_space<vmem>>, vector<896x640xbf16>
    %cst = arith.constant dense<0.000000e+00> : vector<8x640xf32>
    %3 = tpu.matmul %1, %2, %cst {dimension_numbers = #tpu.dot_dimension_numbers<[1], [0], [0], [1], [0, 0, 1, 1], [], []>} : vector<8x896xbf16>, vector<896x640xbf16>, vector<8x640xf32> -> vector<8x640xf32>
    %c0_3 = arith.constant 0 : index
    %c0_4 = arith.constant 0 : index
    %4 = vector.load %arg10[%c0_3, %c0_4] : memref<8x896xf32, #tpu.memory_space<vmem>>, vector<1x640xf32>
    %5 = vector.broadcast %4 : vector<1x640xf32> to vector<8x640xf32>
    %6 = arith.addf %3, %5 : vector<8x640xf32>
    %cst_5 = arith.constant 0.000000e+00 : f32
    %7 = vector.broadcast %cst_5 : f32 to vector<8x640xf32>
    %8 = arith.maximumf %6, %7 : vector<8x640xf32>
    %9 = arith.truncf %8 : vector<8x640xf32> to vector<8x640xbf16>
    %c0_6 = arith.constant 0 : index
    %c0_7 = arith.constant 0 : index
    %10 = vector.load %arg3[%c0_6, %c0_7] : memref<640x512xbf16, #tpu.memory_space<vmem>>, vector<640x512xbf16>
    %cst_8 = arith.constant dense<0.000000e+00> : vector<8x512xf32>
    %11 = tpu.matmul %9, %10, %cst_8 {dimension_numbers = #tpu.dot_dimension_numbers<[1], [0], [0], [1], [0, 0, 1, 1], [], []>} : vector<8x640xbf16>, vector<640x512xbf16>, vector<8x512xf32> -> vector<8x512xf32>
    %c1 = arith.constant 1 : index
    %c0_9 = arith.constant 0 : index
    %12 = vector.load %arg10[%c1, %c0_9] : memref<8x896xf32, #tpu.memory_space<vmem>>, vector<1x512xf32>
    %13 = vector.broadcast %12 : vector<1x512xf32> to vector<8x512xf32>
    %14 = arith.addf %11, %13 : vector<8x512xf32>
    %cst_10 = arith.constant 0.000000e+00 : f32
    %15 = vector.broadcast %cst_10 : f32 to vector<8x512xf32>
    %16 = arith.maximumf %14, %15 : vector<8x512xf32>
    %17 = arith.truncf %16 : vector<8x512xf32> to vector<8x512xbf16>
    %c0_11 = arith.constant 0 : index
    %c0_12 = arith.constant 0 : index
    %18 = vector.load %arg4[%c0_11, %c0_12] : memref<512x256xbf16, #tpu.memory_space<vmem>>, vector<512x256xbf16>
    %cst_13 = arith.constant dense<0.000000e+00> : vector<8x256xf32>
    %19 = tpu.matmul %17, %18, %cst_13 {dimension_numbers = #tpu.dot_dimension_numbers<[1], [0], [0], [1], [0, 0, 1, 1], [], []>} : vector<8x512xbf16>, vector<512x256xbf16>, vector<8x256xf32> -> vector<8x256xf32>
    %c2 = arith.constant 2 : index
    %c0_14 = arith.constant 0 : index
    %20 = vector.load %arg10[%c2, %c0_14] : memref<8x896xf32, #tpu.memory_space<vmem>>, vector<1x256xf32>
    %21 = vector.broadcast %20 : vector<1x256xf32> to vector<8x256xf32>
    %22 = arith.addf %19, %21 : vector<8x256xf32>
    %cst_15 = arith.constant 0.000000e+00 : f32
    %23 = vector.broadcast %cst_15 : f32 to vector<8x256xf32>
    %24 = arith.maximumf %22, %23 : vector<8x256xf32>
    %25 = arith.truncf %24 : vector<8x256xf32> to vector<8x256xbf16>
    %c0_16 = arith.constant 0 : index
    %c0_17 = arith.constant 0 : index
    %26 = vector.load %arg5[%c0_16, %c0_17] : memref<256x128xbf16, #tpu.memory_space<vmem>>, vector<256x128xbf16>
    %cst_18 = arith.constant dense<0.000000e+00> : vector<8x128xf32>
    %27 = tpu.matmul %25, %26, %cst_18 {dimension_numbers = #tpu.dot_dimension_numbers<[1], [0], [0], [1], [0, 0, 1, 1], [], []>} : vector<8x256xbf16>, vector<256x128xbf16>, vector<8x128xf32> -> vector<8x128xf32>
    %c3 = arith.constant 3 : index
    %c0_19 = arith.constant 0 : index
    %28 = vector.load %arg10[%c3, %c0_19] : memref<8x896xf32, #tpu.memory_space<vmem>>, vector<1x128xf32>
    %29 = vector.broadcast %28 : vector<1x128xf32> to vector<8x128xf32>
    %30 = arith.addf %27, %29 : vector<8x128xf32>
    %31 = arith.truncf %30 : vector<8x128xf32> to vector<8x128xbf16>
    %c0_20 = arith.constant 0 : index
    %c0_21 = arith.constant 0 : index
    %32 = vector.load %arg6[%c0_20, %c0_21] : memref<128x256xbf16, #tpu.memory_space<vmem>>, vector<128x256xbf16>
    %cst_22 = arith.constant dense<0.000000e+00> : vector<8x256xf32>
    %33 = tpu.matmul %31, %32, %cst_22 {dimension_numbers = #tpu.dot_dimension_numbers<[1], [0], [0], [1], [0, 0, 1, 1], [], []>} : vector<8x128xbf16>, vector<128x256xbf16>, vector<8x256xf32> -> vector<8x256xf32>
    %c4 = arith.constant 4 : index
    %c0_23 = arith.constant 0 : index
    %34 = vector.load %arg10[%c4, %c0_23] : memref<8x896xf32, #tpu.memory_space<vmem>>, vector<1x256xf32>
    %35 = vector.broadcast %34 : vector<1x256xf32> to vector<8x256xf32>
    %36 = arith.addf %33, %35 : vector<8x256xf32>
    %cst_24 = arith.constant 0.000000e+00 : f32
    %37 = vector.broadcast %cst_24 : f32 to vector<8x256xf32>
    %38 = arith.maximumf %36, %37 : vector<8x256xf32>
    %39 = arith.truncf %38 : vector<8x256xf32> to vector<8x256xbf16>
    %c0_25 = arith.constant 0 : index
    %c0_26 = arith.constant 0 : index
    %40 = vector.load %arg7[%c0_25, %c0_26] : memref<256x512xbf16, #tpu.memory_space<vmem>>, vector<256x512xbf16>
    %cst_27 = arith.constant dense<0.000000e+00> : vector<8x512xf32>
    %41 = tpu.matmul %39, %40, %cst_27 {dimension_numbers = #tpu.dot_dimension_numbers<[1], [0], [0], [1], [0, 0, 1, 1], [], []>} : vector<8x256xbf16>, vector<256x512xbf16>, vector<8x512xf32> -> vector<8x512xf32>
    %c5 = arith.constant 5 : index
    %c0_28 = arith.constant 0 : index
    %42 = vector.load %arg10[%c5, %c0_28] : memref<8x896xf32, #tpu.memory_space<vmem>>, vector<1x512xf32>
    %43 = vector.broadcast %42 : vector<1x512xf32> to vector<8x512xf32>
    %44 = arith.addf %41, %43 : vector<8x512xf32>
    %cst_29 = arith.constant 0.000000e+00 : f32
    %45 = vector.broadcast %cst_29 : f32 to vector<8x512xf32>
    %46 = arith.maximumf %44, %45 : vector<8x512xf32>
    %47 = arith.truncf %46 : vector<8x512xf32> to vector<8x512xbf16>
    %c0_30 = arith.constant 0 : index
    %c0_31 = arith.constant 0 : index
    %48 = vector.load %arg8[%c0_30, %c0_31] : memref<512x640xbf16, #tpu.memory_space<vmem>>, vector<512x640xbf16>
    %cst_32 = arith.constant dense<0.000000e+00> : vector<8x640xf32>
    %49 = tpu.matmul %47, %48, %cst_32 {dimension_numbers = #tpu.dot_dimension_numbers<[1], [0], [0], [1], [0, 0, 1, 1], [], []>} : vector<8x512xbf16>, vector<512x640xbf16>, vector<8x640xf32> -> vector<8x640xf32>
    %c6 = arith.constant 6 : index
    %c0_33 = arith.constant 0 : index
    %50 = vector.load %arg10[%c6, %c0_33] : memref<8x896xf32, #tpu.memory_space<vmem>>, vector<1x640xf32>
    %51 = vector.broadcast %50 : vector<1x640xf32> to vector<8x640xf32>
    %52 = arith.addf %49, %51 : vector<8x640xf32>
    %cst_34 = arith.constant 0.000000e+00 : f32
    %53 = vector.broadcast %cst_34 : f32 to vector<8x640xf32>
    %54 = arith.maximumf %52, %53 : vector<8x640xf32>
    %55 = arith.truncf %54 : vector<8x640xf32> to vector<8x640xbf16>
    %c0_35 = arith.constant 0 : index
    %c0_36 = arith.constant 0 : index
    %56 = vector.load %arg9[%c0_35, %c0_36] : memref<640x896xbf16, #tpu.memory_space<vmem>>, vector<640x896xbf16>
    %cst_37 = arith.constant dense<0.000000e+00> : vector<8x896xf32>
    %57 = tpu.matmul %55, %56, %cst_37 {dimension_numbers = #tpu.dot_dimension_numbers<[1], [0], [0], [1], [0, 0, 1, 1], [], []>} : vector<8x640xbf16>, vector<640x896xbf16>, vector<8x896xf32> -> vector<8x896xf32>
    %c7 = arith.constant 7 : index
    %c0_38 = arith.constant 0 : index
    %58 = vector.load %arg10[%c7, %c0_38] : memref<8x896xf32, #tpu.memory_space<vmem>>, vector<1x896xf32>
    %59 = vector.broadcast %58 : vector<1x896xf32> to vector<8x896xf32>
    %60 = arith.addf %57, %59 : vector<8x896xf32>
    %c0_39 = arith.constant 0 : index
    %c0_40 = arith.constant 0 : index
    %61 = vector.load %arg11[%c0_39, %c0_40] : memref<8x896xf32, #tpu.memory_space<vmem>>, vector<8x896xf32>
    tpu.vector_store %arg11[%c0_39, %c0_40], %60 {strides = array<i32>} : memref<8x896xf32, #tpu.memory_space<vmem>>, vector<8x896xf32>,
    return
  }
  func.func @transform_0(%arg0: i32) -> (i32, i32) {
    %c0_i32 = arith.constant 0 : i32
    %c0_i32_0 = arith.constant 0 : i32
    return %arg0, %c0_i32 : i32, i32
  }
  func.func @transform_1(%arg0: i32) -> (i32, i32) {
    %c0_i32 = arith.constant 0 : i32
    %c0_i32_0 = arith.constant 0 : i32
    %c0_i32_1 = arith.constant 0 : i32
    return %c0_i32, %c0_i32_0 : i32, i32
  }
  func.func @transform_2(%arg0: i32) -> (i32, i32) {
    %c0_i32 = arith.constant 0 : i32
    %c0_i32_0 = arith.constant 0 : i32
    %c0_i32_1 = arith.constant 0 : i32
    return %c0_i32, %c0_i32_0 : i32, i32
  }
  func.func @transform_3(%arg0: i32) -> (i32, i32) {
    %c0_i32 = arith.constant 0 : i32
    %c0_i32_0 = arith.constant 0 : i32
    %c0_i32_1 = arith.constant 0 : i32
    return %c0_i32, %c0_i32_0 : i32, i32
  }
  func.func @transform_4(%arg0: i32) -> (i32, i32) {
    %c0_i32 = arith.constant 0 : i32
    %c0_i32_0 = arith.constant 0 : i32
    %c0_i32_1 = arith.constant 0 : i32
    return %c0_i32, %c0_i32_0 : i32, i32
  }
  func.func @transform_5(%arg0: i32) -> (i32, i32) {
    %c0_i32 = arith.constant 0 : i32
    %c0_i32_0 = arith.constant 0 : i32
    %c0_i32_1 = arith.constant 0 : i32
    return %c0_i32, %c0_i32_0 : i32, i32
  }
  func.func @transform_6(%arg0: i32) -> (i32, i32) {
    %c0_i32 = arith.constant 0 : i32
    %c0_i32_0 = arith.constant 0 : i32
    %c0_i32_1 = arith.constant 0 : i32
    return %c0_i32, %c0_i32_0 : i32, i32
  }
  func.func @transform_7(%arg0: i32) -> (i32, i32) {
    %c0_i32 = arith.constant 0 : i32
    %c0_i32_0 = arith.constant 0 : i32
    %c0_i32_1 = arith.constant 0 : i32
    return %c0_i32, %c0_i32_0 : i32, i32
  }
  func.func @transform_8(%arg0: i32) -> (i32, i32) {
    %c0_i32 = arith.constant 0 : i32
    %c0_i32_0 = arith.constant 0 : i32
    %c0_i32_1 = arith.constant 0 : i32
    return %c0_i32, %c0_i32_0 : i32, i32
  }
  func.func @transform_9(%arg0: i32) -> (i32, i32) {
    %c0_i32 = arith.constant 0 : i32
    %c0_i32_0 = arith.constant 0 : i32
    %c0_i32_1 = arith.constant 0 : i32
    return %c0_i32, %c0_i32_0 : i32, i32
  }
  func.func @transform_10(%arg0: i32) -> (i32, i32) {
    %c0_i32 = arith.constant 0 : i32
    %c0_i32_0 = arith.constant 0 : i32
    return %arg0, %c0_i32 : i32, i32
  }
}

</mosaic_0001>

<bundles_post_ra>
// kernel: autoencoder_forward.1
= control target key start
LH: loop header
LB: loop body
LE: loop exit
PB: predicated region body
PF: predicated region fallthrough
CT: control target
= control target key end

     0   :  { %15 = vsyncpa [#allocation3], 0  ;;  %s12222_s0 = inlined_call_operand.vmem [shape: f32[8,896], index: 0, kind: input, shape index: {}]   ;;  %s12223_s1 = inlined_call_operand.hbm [shape: bf16[896,640], index: 1, kind: input, shape index: {}]   ;;  %s12224_s2 = inlined_call_operand.hbm [shape: bf16[640,512], index: 2, kind: input, shape index: {}]   ;;  %s12225_s3 = inlined_call_operand.hbm [shape: bf16[512,256], index: 3, kind: input, shape index: {}]   ;;  %s12226_s4 = inlined_call_operand.hbm [shape: bf16[256,128], index: 4, kind: input, shape index: {}]   ;;  %s12227_s5 = inlined_call_operand.hbm [shape: bf16[128,256], index: 5, kind: input, shape index: {}]   ;;  %s12228_s6 = inlined_call_operand.hbm [shape: bf16[256,512], index: 6, kind: input, shape index: {}]   ;;  %s12229_s7 = inlined_call_operand.hbm [shape: bf16[512,640], index: 7, kind: input, shape index: {}]   ;;  %s12230_s8 = inlined_call_operand.hbm [shape: bf16[640,896], index: 8, kind: input, shape index: {}]   ;;  %s12231_s9 = inlined_call_operand.hbm [shape: f32[8,896], index: 9, kind: input, shape index: {}]   ;;  %s12232_s10 = inlined_call_operand.hbm [shape: f32[8,896], index: 10, kind: output, shape index: {}]  }
   0x1   :  { %16 = vsyncpa [#allocation6], 0 }
   0x2   :  { %17 = vsyncpa [#allocation9], 0 }
   0x3   :  { %18 = vsyncpa [#allocation12], 0 }
   0x4   :  { %19 = vsyncpa [#allocation15], 0 }
   0x5   :  { %20 = vsyncpa [#allocation4], 0  ;;  %s11765_s13 = smov [#allocation5]   ;;  %s11533_s17 = scalar_lea.hbm %s12224_s2, 20480 }
   0x6   :  { %s40_s14 = sshll.u32 %s11765_s13, 4  ;;  %p11534_p0 = scmp.ne.s32.totalorder %s12224_s2, %s11533_s17  ;;  %s41_s14 = int_to_ptr.vmem [resolvable:$true] %s40_s14 }
   0x7   :  { %p11537_p1 = scmp.lt.u32.totalorder %s11533_s17, %s12224_s2 }
   0x9   :  { %p11539_p2 = pnand %p11537_p1, %p11534_p0 }
   0xb   :  { %11542 = shalt.err (!%p11539_p2)
}
   0xc   :  { %s11543_s22 = scalar_lea.vmem %s41_s14, 20480  ;;  %p11548_p4 = scmp.lt.s32.totalorder %s41_s14, %s41_s14 }
   0xd   :  { %p11544_p3 = scmp.ne.s32.totalorder %s41_s14, %s11543_s22  ;;  %p11549_p5 = scmp.lt.s32.totalorder %s11543_s22, %s11543_s22 }
   0xf   :  { %p11550_p6 = por %p11549_p5, %p11548_p4 }
  0x11   :  { %p11551_p7 = pnand %p11550_p6, %p11544_p3 }
  0x13   :  { %11554 = shalt.err (!%p11551_p7)
}
  0x14   :  { %s11766_s23 = smov 256   ;;  %s11767_s24 = smov 16  }
  0x15   :  { %46 = dma.hbm_to_vmem [thread:$0]  %s12224_s2, 20480, %s41_s14, [#allocation6], %s11766_s23, %s11766_s23, %s11767_s24  }
  0x16   :  { %s11768_s27 = smov [#allocation8]   ;;  %s11555_s11 = scalar_lea.hbm %s12226_s4, 2048 }
  0x17   :  { %s64_s28 = sshll.u32 %s11768_s27, 4  ;;  %p11556_p8 = scmp.ne.s32.totalorder %s12226_s4, %s11555_s11  ;;  %s65_s28 = int_to_ptr.vmem [resolvable:$true] %s64_s28 }
  0x18   :  { %p11559_p9 = scmp.lt.u32.totalorder %s11555_s11, %s12226_s4 }
  0x1a   :  { %p11561_p10 = pnand %p11559_p9, %p11556_p8 }
  0x1c   :  { %11564 = shalt.err (!%p11561_p10)
}
  0x1d   :  { %s11565_s17 = scalar_lea.vmem %s65_s28, 2048  ;;  %p11570_p12 = scmp.lt.s32.totalorder %s65_s28, %s65_s28 }
  0x1e   :  { %p11566_p11 = scmp.ne.s32.totalorder %s65_s28, %s11565_s17  ;;  %p11571_p13 = scmp.lt.s32.totalorder %s11565_s17, %s11565_s17 }
  0x20   :  { %p11572_p0 = por %p11571_p13, %p11570_p12 }
  0x22   :  { %p11573_p1 = pnand %p11572_p0, %p11566_p11 }
  0x24   :  { %11576 = shalt.err (!%p11573_p1)
}
  0x25   :  { %s11769_s2 = smov 64   ;;  %s11770_s14 = smov 4  }
  0x26   :  { %70 = dma.hbm_to_vmem [thread:$0]  %s12226_s4, 2048, %s65_s28, [#allocation9], %s11769_s2, %s11769_s2, %s11770_s14  }
  0x27   :  { %s11771_s20 = smov [#allocation11]   ;;  %s11772_s22 = smov [#allocation14]  }
  0x28   :  { %s88_s21 = sshll.u32 %s11771_s20, 4  ;;  %s112_s25 = sshll.u32 %s11772_s22, 4  ;;  %s89_s21 = int_to_ptr.vmem [resolvable:$true] %s88_s21  ;;  %s11870_s25 = int_to_ptr.vmem [resolvable:$true] %s112_s25 }
  0x29   :  { %s11577_s29 = scalar_lea.hbm %s12228_s6, 8192 }
  0x2a   :  { %p11578_p2 = scmp.ne.s32.totalorder %s12228_s6, %s11577_s29  ;;  %p11581_p3 = scmp.lt.u32.totalorder %s11577_s29, %s12228_s6 }
  0x2c   :  { %p11583_p4 = pnand %p11581_p3, %p11578_p2 }
  0x2e   :  { %11586 = shalt.err (!%p11583_p4)
}
  0x2f   :  { %s11587_s4 = scalar_lea.vmem %s89_s21, 8192  ;;  %p11592_p6 = scmp.lt.s32.totalorder %s89_s21, %s89_s21 }
  0x30   :  { %p11588_p5 = scmp.ne.s32.totalorder %s89_s21, %s11587_s4  ;;  %p11593_p7 = scmp.lt.s32.totalorder %s11587_s4, %s11587_s4 }
  0x32   :  { %p11594_p8 = por %p11593_p7, %p11592_p6 }
  0x34   :  { %p11595_p9 = pnand %p11594_p8, %p11588_p5 }
  0x36   :  { %11598 = shalt.err (!%p11595_p9)
}
  0x37   :  { %94 = dma.hbm_to_vmem [thread:$0]  %s12228_s6, 8192, %s89_s21, [#allocation12], %s11766_s23, %s11766_s23, %s11767_s24  }
  0x38   :  { %s11599_s2 = scalar_lea.hbm %s12230_s8, 35840 }
  0x39   :  { %p11600_p10 = scmp.ne.s32.totalorder %s12230_s8, %s11599_s2  ;;  %p11603_p11 = scmp.lt.u32.totalorder %s11599_s2, %s12230_s8 }
  0x3b   :  { %p11605_p12 = pnand %p11603_p11, %p11600_p10 }
  0x3d   :  { %11608 = shalt.err (!%p11605_p12)
}
  0x3e   :  { %s11609_s22 = scalar_lea.vmem %s11870_s25, 35840  ;;  %p11614_p0 = scmp.lt.s32.totalorder %s11870_s25, %s11870_s25 }
  0x3f   :  { %p11610_p13 = scmp.ne.s32.totalorder %s11870_s25, %s11609_s22  ;;  %p11615_p1 = scmp.lt.s32.totalorder %s11609_s22, %s11609_s22 }
  0x41   :  { %p11616_p2 = por %p11615_p1, %p11614_p0 }
  0x43   :  { %p11617_p3 = pnand %p11616_p2, %p11610_p13 }
  0x45   :  { %11620 = shalt.err (!%p11617_p3)
}
  0x46   :  { %s11773_s6 = smov 448   ;;  %s11774_s23 = smov 28  }
  0x47   :  { %118 = dma.hbm_to_vmem [thread:$0]  %s12230_s8, 35840, %s11870_s25, [#allocation15], %s11773_s6, %s11773_s6, %s11774_s23  }
  0x48   :  { %s11775_s26 = smov [#allocation2]   ;;  %s11621_s11 = scalar_lea.hbm %s12223_s1, 35840 }
  0x49   :  { %s28_s27 = sshll.u32 %s11775_s26, 4  ;;  %p11622_p4 = scmp.ne.s32.totalorder %s12223_s1, %s11621_s11  ;;  %s29_s27 = int_to_ptr.vmem [resolvable:$true] %s28_s27 }
  0x4a   :  { %p11625_p5 = scmp.lt.u32.totalorder %s11621_s11, %s12223_s1 }
  0x4c   :  { %p11627_p6 = pnand %p11625_p5, %p11622_p4 }
  0x4e   :  { %11630 = shalt.err (!%p11627_p6)
}
  0x4f   :  { %s11631_s15 = scalar_lea.vmem %s29_s27, 35840  ;;  %p11636_p8 = scmp.lt.s32.totalorder %s29_s27, %s29_s27 }
  0x50   :  { %p11632_p7 = scmp.ne.s32.totalorder %s29_s27, %s11631_s15  ;;  %p11637_p9 = scmp.lt.s32.totalorder %s11631_s15, %s11631_s15 }
  0x52   :  { %p11638_p10 = por %p11637_p9, %p11636_p8 }
  0x54   :  { %p11639_p11 = pnand %p11638_p10, %p11632_p7 }
  0x56   :  { %11642 = shalt.err (!%p11639_p11)
}
  0x57   :  { %s11776_s8 = smov 320   ;;  %s11777_s25 = smov 20  }
  0x58   :  { %34 = dma.hbm_to_vmem [thread:$0]  %s12223_s1, 35840, %s29_s27, [#allocation3], %s11776_s8, %s11776_s8, %s11777_s25  }
  0x59   :  { %s11778_s2 = smov [#allocation7]   ;;  %s11643_s20 = scalar_lea.hbm %s12225_s3, 8192 }
  0x5a   :  { %s52_s14 = sshll.u32 %s11778_s2, 4  ;;  %p11644_p12 = scmp.ne.s32.totalorder %s12225_s3, %s11643_s20  ;;  %s53_s14 = int_to_ptr.vmem [resolvable:$true] %s52_s14 }
  0x5b   :  { %p11647_p13 = scmp.lt.u32.totalorder %s11643_s20, %s12225_s3 }
  0x5d   :  { %p11649_p0 = pnand %p11647_p13, %p11644_p12 }
  0x5f   :  { %11652 = shalt.err (!%p11649_p0)
}
  0x60   :  { %s11653_s21 = scalar_lea.vmem %s53_s14, 8192  ;;  %p11658_p2 = scmp.lt.s32.totalorder %s53_s14, %s53_s14 }
  0x61   :  { %p11654_p1 = scmp.ne.s32.totalorder %s53_s14, %s11653_s21  ;;  %p11659_p3 = scmp.lt.s32.totalorder %s11653_s21, %s11653_s21 }
  0x63   :  { %p11660_p4 = por %p11659_p3, %p11658_p2 }
  0x65   :  { %p11661_p5 = pnand %p11660_p4, %p11654_p1 }
  0x67   :  { %11664 = shalt.err (!%p11661_p5)
}
  0x68   :  { %s11779_s1 = smov 128   ;;  %s11780_s26 = smov 8  }
  0x69   :  { %58 = dma.hbm_to_vmem [thread:$0]  %s12225_s3, 8192, %s53_s14, [#allocation6], %s11779_s1, %s11779_s1, %s11780_s26  }
  0x6a   :  { %s11781_s30 = smov [#allocation10]   ;;  %s11782_s12 = smov [#allocation13]  }
  0x6b   :  { %s76_s11 = sshll.u32 %s11781_s30, 4  ;;  %s100_s13 = sshll.u32 %s11782_s12, 4  ;;  %s77_s11 = int_to_ptr.vmem [resolvable:$true] %s76_s11  ;;  %s11931_s13 = int_to_ptr.vmem [resolvable:$true] %s100_s13 }
  0x6c   :  { %s11665_s15 = scalar_lea.hbm %s12227_s5, 2048 }
  0x6d   :  { %p11666_p6 = scmp.ne.s32.totalorder %s12227_s5, %s11665_s15  ;;  %p11669_p7 = scmp.lt.u32.totalorder %s11665_s15, %s12227_s5 }
  0x6f   :  { %p11671_p8 = pnand %p11669_p7, %p11666_p6 }
  0x71   :  { %11674 = shalt.err (!%p11671_p8)
}
  0x72   :  { %s11675_s3 = scalar_lea.vmem %s77_s11, 2048  ;;  %p11680_p10 = scmp.lt.s32.totalorder %s77_s11, %s77_s11 }
  0x73   :  { %p11676_p9 = scmp.ne.s32.totalorder %s77_s11, %s11675_s3  ;;  %p11681_p11 = scmp.lt.s32.totalorder %s11675_s3, %s11675_s3 }
  0x75   :  { %p11682_p12 = por %p11681_p11, %p11680_p10 }
  0x77   :  { %p11683_p13 = pnand %p11682_p12, %p11676_p9 }
  0x79   :  { %11686 = shalt.err (!%p11683_p13)
}
  0x7a   :  { %82 = dma.hbm_to_vmem [thread:$0]  %s12227_s5, 2048, %s77_s11, [#allocation9], %s11779_s1, %s11779_s1, %s11780_s26  }
  0x7b   :  { %s11687_s6 = scalar_lea.hbm %s12229_s7, 20480 }
  0x7c   :  { %p11688_p0 = scmp.ne.s32.totalorder %s12229_s7, %s11687_s6  ;;  %p11691_p1 = scmp.lt.u32.totalorder %s11687_s6, %s12229_s7 }
  0x7e   :  { %p11693_p2 = pnand %p11691_p1, %p11688_p0 }
  0x80   :  { %11696 = shalt.err (!%p11693_p2)
}
  0x81   :  { %s11697_s29 = scalar_lea.vmem %s11931_s13, 20480  ;;  %p11702_p4 = scmp.lt.s32.totalorder %s11931_s13, %s11931_s13 }
  0x82   :  { %p11698_p3 = scmp.ne.s32.totalorder %s11931_s13, %s11697_s29  ;;  %p11703_p5 = scmp.lt.s32.totalorder %s11697_s29, %s11697_s29 }
  0x84   :  { %p11704_p6 = por %p11703_p5, %p11702_p4 }
  0x86   :  { %p11705_p7 = pnand %p11704_p6, %p11698_p3 }
  0x88   :  { %11708 = shalt.err (!%p11705_p7)
}
  0x89   :  { %106 = dma.hbm_to_vmem [thread:$0]  %s12229_s7, 20480, %s11931_s13, [#allocation12], %s11776_s8, %s11776_s8, %s11777_s25  }
  0x8a   :  { %s11783_s26 = smov [#allocation16]   ;;  %s11709_s4 = scalar_lea.hbm %s12231_s9, 896 }
  0x8b   :  { %s125_s30 = sshll.u32 %s11783_s26, 4  ;;  %p11710_p8 = scmp.ne.s32.totalorder %s12231_s9, %s11709_s4  ;;  %s126_s30 = int_to_ptr.vmem [resolvable:$true] %s125_s30 }
  0x8c   :  { %p11713_p9 = scmp.lt.u32.totalorder %s11709_s4, %s12231_s9 }
  0x8e   :  { %p11715_p10 = pnand %p11713_p9, %p11710_p8 }
  0x90   :  { %11718 = shalt.err (!%p11715_p10)
}
  0x91   :  { %s11719_s2 = scalar_lea.vmem %s126_s30, 896  ;;  %p11724_p12 = scmp.lt.s32.totalorder %s126_s30, %s126_s30 }
  0x92   :  { %p11720_p11 = scmp.ne.s32.totalorder %s126_s30, %s11719_s2  ;;  %p11725_p13 = scmp.lt.s32.totalorder %s11719_s2, %s11719_s2 }
  0x94   :  { %p11726_p0 = por %p11725_p13, %p11724_p12 }
  0x96   :  { %p11727_p1 = pnand %p11726_p0, %p11720_p11 }
  0x98   :  { %11730 = shalt.err (!%p11727_p1)
}
  0x99   :  { %128 = dma.hbm_to_vmem [thread:$0]  %s12231_s9, 896, %s126_s30, [#allocation15]  }
  0x9a   :  { %11753 = dma.done.wait [#allocation3], 35840  }
  0x9b   :  { %11754 = vsyncadd [#allocation3], 4294931456 }
  0x9c   :  { %11755 = dma.done.wait [#allocation6], 28672  }
  0x9d   :  { %11756 = vsyncadd [#allocation6], 4294938624 }
  0x9e   :  { %11757 = dma.done.wait [#allocation9], 4096  }
  0x9f   :  { %11758 = vsyncadd [#allocation9], 4294963200 }
  0xa0   :  { %11759 = dma.done.wait [#allocation12], 28672  }
  0xa1   :  { %11760 = vsyncadd [#allocation12], 4294938624 }
  0xa2   :  { %11761 = dma.done.wait [#allocation15], 36736  }
  0xa3   :  { %11762 = vsyncadd [#allocation15], 4294930560  ;;  %v11784_v0 = vmov 0   ;;  %v10045_v1 = vld [vmem:[#allocation2 + $0x4] ss:$20 sps:$4 sm:$0xff]   ;;  %v163_v33 = vld [vmem:[%s12222_s0 + $0x30] sm:$0xff] }
  0xa4   :  { %2147 = vmatprep.mubr.bf16.mxu1 %v11784_v0  ;;  %v10047_v2 = vld [vmem:[#allocation2 + $0x784] ss:$20 sps:$4 sm:$0xff]   ;;  %1992 = vmatprep.subr.bf16.mxu0 %v10045_v1  ;;  %v10049_v3 = vld [vmem:[#allocation2] ss:$20 sps:$4 sm:$0xff]   ;;  %v10055_v7 = vld [vmem:[#allocation2 + $0x28] ss:$20 sps:$4 sm:$0xff]   ;;  %v11981_v36 = vpack.c.bf16 %v163_v33, %v163_v33 }
  0xa5   :  { %v10050_v4 = vld [vmem:[#allocation2 + $0x780] ss:$20 sps:$4 sm:$0xff]   ;;  %2115 = vmatprep.subr.bf16.mxu1 %v10047_v2  ;;  %1993 = vmatpush1.bf16.msra.mxu0 %v10049_v3  ;;  %v10056_v8 = vld [vmem:[#allocation2 + $0x7a8] ss:$20 sps:$4 sm:$0xff]   ;;  %v10061_v11 = vld [vmem:[#allocation2 + $0x50] ss:$20 sps:$4 sm:$0xff]  }
  0xa6   :  { %v10051_v5 = vld [vmem:[#allocation2 + $0x2c] ss:$20 sps:$4 sm:$0xff]   ;;  %2116 = vmatpush1.bf16.msra.mxu1 %v10050_v4  ;;  %v10057_v9 = vld [vmem:[#allocation2 + $0x54] ss:$20 sps:$4 sm:$0xff]   ;;  %v10062_v12 = vld [vmem:[#allocation2 + $0x7d0] ss:$20 sps:$4 sm:$0xff]  }
  0xa7   :  { %v10053_v6 = vld [vmem:[#allocation2 + $0x7ac] ss:$20 sps:$4 sm:$0xff]   ;;  %1994 = vmatprep.subr.bf16.mxu0 %v10051_v5  ;;  %v10059_v10 = vld [vmem:[#allocation2 + $0x7d4] ss:$20 sps:$4 sm:$0xff]   ;;  %v10063_v13 = vld [vmem:[#allocation2 + $0x7c] ss:$20 sps:$4 sm:$0xff]  }
  0xa8   :  { %2117 = vmatprep.subr.bf16.mxu1 %v10053_v6  ;;  %v10065_v14 = vld [vmem:[#allocation2 + $0x7fc] ss:$20 sps:$4 sm:$0xff]   ;;  %v10067_v15 = vld [vmem:[#allocation2 + $0x78] ss:$20 sps:$4 sm:$0xff]   ;;  %v10073_v19 = vld [vmem:[#allocation2 + $0xa0] ss:$20 sps:$4 sm:$0xff]  }
  0xa9   :  { %1995 = vmatpush1.bf16.msra.mxu0 %v10055_v7  ;;  %v10068_v16 = vld [vmem:[#allocation2 + $0x7f8] ss:$20 sps:$4 sm:$0xff]   ;;  %v10074_v20 = vld [vmem:[#allocation2 + $0x820] ss:$20 sps:$4 sm:$0xff]   ;;  %v10079_v23 = vld [vmem:[#allocation2 + $0xc8] ss:$20 sps:$4 sm:$0xff]  }
  0xaa   :  { %2118 = vmatpush1.bf16.msra.mxu1 %v10056_v8  ;;  %1996 = vmatprep.subr.bf16.mxu0 %v10057_v9  ;;  %v10069_v17 = vld [vmem:[#allocation2 + $0xa4] ss:$20 sps:$4 sm:$0xff]   ;;  %v10075_v21 = vld [vmem:[#allocation2 + $0xcc] ss:$20 sps:$4 sm:$0xff]   ;;  %v10080_v24 = vld [vmem:[#allocation2 + $0x848] ss:$20 sps:$4 sm:$0xff]  }
  0xab   :  { %2119 = vmatprep.subr.bf16.mxu1 %v10059_v10  ;;  %v10071_v18 = vld [vmem:[#allocation2 + $0x824] ss:$20 sps:$4 sm:$0xff]   ;;  %v10077_v22 = vld [vmem:[#allocation2 + $0x84c] ss:$20 sps:$4 sm:$0xff]   ;;  %v10081_v25 = vld [vmem:[#allocation2 + $0xf4] ss:$20 sps:$4 sm:$0xff]  }
  0xac   :  { %v10083_v26 = vld [vmem:[#allocation2 + $0x874] ss:$20 sps:$4 sm:$0xff]   ;;  %v10085_v27 = vld [vmem:[#allocation2 + $0xf0] ss:$20 sps:$4 sm:$0xff]   ;;  %v10091_v31 = vld [vmem:[#allocation2 + $0x118] ss:$20 sps:$4 sm:$0xff]  }
  0xad   :  { %1997 = vmatpush1.bf16.msra.mxu0 %v10061_v11  ;;  %v10086_v28 = vld [vmem:[#allocation2 + $0x870] ss:$20 sps:$4 sm:$0xff]   ;;  %v10092_v32 = vld [vmem:[#allocation2 + $0x898] ss:$20 sps:$4 sm:$0xff]   ;;  %v10095_v37 = vld [vmem:[#allocation2 + $0x8] ss:$20 sps:$4 sm:$0xff]  }
  0xae   :  { %2120 = vmatpush1.bf16.msra.mxu1 %v10062_v12  ;;  %1998 = vmatprep.subr.bf16.mxu0 %v10063_v13  ;;  %v10087_v29 = vld [vmem:[#allocation2 + $0x11c] ss:$20 sps:$4 sm:$0xff]   ;;  %v10093_v34 = vld [vmem:[#allocation2 + $0x144] ss:$20 sps:$4 sm:$0xff]   ;;  %v10097_v35 = vld [vmem:[#allocation2 + $0xc] ss:$20 sps:$4 sm:$0xff]  }
  0xaf   :  { %2121 = vmatprep.subr.bf16.mxu1 %v10065_v14  ;;  %v10089_v30 = vld [vmem:[#allocation2 + $0x89c] ss:$20 sps:$4 sm:$0xff]   ;;  %v10098_v38 = vld [vmem:[#allocation2 + $0x140] ss:$20 sps:$4 sm:$0xff]   ;;  %v10107_v45 = vld [vmem:[#allocation2 + $0x58] ss:$20 sps:$4 sm:$0xff]  }
  0xb0   :  { %v10099_v39 = vld [vmem:[#allocation2 + $0x16c] ss:$20 sps:$4 sm:$0xff]   ;;  %v10103_v40 = vld [vmem:[#allocation2 + $0x34] ss:$20 sps:$4 sm:$0xff]   ;;  %v10101_v41 = vld [vmem:[#allocation2 + $0x30] ss:$20 sps:$4 sm:$0xff]  }
  0xb1   :  { %1999 = vmatpush1.bf16.msra.mxu0 %v10067_v15  ;;  %v10104_v42 = vld [vmem:[#allocation2 + $0x168] ss:$20 sps:$4 sm:$0xff]   ;;  %v10110_v46 = vld [vmem:[#allocation2 + $0x190] ss:$20 sps:$4 sm:$0xff]   ;;  %v10113_v50 = vld [vmem:[#allocation2 + $0x80] ss:$20 sps:$4 sm:$0xff]  }
  0xb2   :  { %2122 = vmatpush1.bf16.msra.mxu1 %v10068_v16  ;;  %2000 = vmatprep.subr.bf16.mxu0 %v10069_v17  ;;  %v10105_v43 = vld [vmem:[#allocation2 + $0x194] ss:$20 sps:$4 sm:$0xff]   ;;  %v10109_v44 = vld [vmem:[#allocation2 + $0x5c] ss:$20 sps:$4 sm:$0xff]   ;;  %v10115_v48 = vld [vmem:[#allocation2 + $0x84] ss:$20 sps:$4 sm:$0xff]  }
  0xb3   :  { %2123 = vmatprep.subr.bf16.mxu1 %v10071_v18  ;;  %v10111_v47 = vld [vmem:[#allocation2 + $0x1bc] ss:$20 sps:$4 sm:$0xff]   ;;  %v158_v49 = vld [vmem:[%s12222_s0 + $0x8] sm:$0xff]  ;;  %v10117_v53 = vld [vmem:[#allocation2 + $0x1e4] ss:$20 sps:$4 sm:$0xff]   ;;  %vm11786_vm0 = vmmov 0  }
  0xb4   :  { %v10116_v51 = vld [vmem:[#allocation2 + $0x1b8] ss:$20 sps:$4 sm:$0xff]   ;;  %v11987_v52 = vpack.c.bf16 %v158_v49, %v158_v49  ;;  %v10119_v55 = vld [vmem:[#allocation2 + $0xa8] ss:$20 sps:$4 sm:$0xff]   ;;  %v10122_v56 = vld [vmem:[#allocation2 + $0x1e0] ss:$20 sps:$4 sm:$0xff]  }
  0xb5   :  { %2001 = vmatpush1.bf16.msra.mxu0 %v10073_v19  ;;  %v10121_v54 = vld [vmem:[#allocation2 + $0xac] ss:$20 sps:$4 sm:$0xff]   ;;  %v10127_v58 = vld [vmem:[#allocation2 + $0xd4] ss:$20 sps:$4 sm:$0xff]   ;;  %v10125_v59 = vld [vmem:[#allocation2 + $0xd0] ss:$20 sps:$4 sm:$0xff]  }
  0xb6   :  { %2124 = vmatpush1.bf16.msra.mxu1 %v10074_v20  ;;  %2002 = vmatprep.subr.bf16.mxu0 %v10075_v21  ;;  %v10123_v57 = vld [vmem:[#allocation2 + $0x20c] ss:$20 sps:$4 sm:$0xff]   ;;  %v10128_v60 = vld [vmem:[#allocation2 + $0x208] ss:$20 sps:$4 sm:$0xff]   ;;  %v10134_v1 = vld [vmem:[#allocation2 + $0x230] ss:$20 sps:$4 sm:$0xff]  }
  0xb7   :  { %2125 = vmatprep.subr.bf16.mxu1 %v10077_v22  ;;  %2024 = vmatprep.mubr.bf16.mxu0 %v11987_v52  ;;  %v10129_v61 = vld [vmem:[#allocation2 + $0x234] ss:$20 sps:$4 sm:$0xff]   ;;  %v10133_v62 = vld [vmem:[#allocation2 + $0xfc] ss:$20 sps:$4 sm:$0xff]   ;;  %v10131_v63 = vld [vmem:[#allocation2 + $0xf8] ss:$20 sps:$4 sm:$0xff]  }
  0xb8   :  { %v10135_v2 = vld [vmem:[#allocation2 + $0x25c] ss:$20 sps:$4 sm:$0xff]   ;;  %v10139_v3 = vld [vmem:[#allocation2 + $0x124] ss:$20 sps:$4 sm:$0xff]   ;;  %v10137_v4 = vld [vmem:[#allocation2 + $0x120] ss:$20 sps:$4 sm:$0xff]  }
  0xb9   :  { %2003 = vmatpush1.bf16.msra.mxu0 %v10079_v23  ;;  %v10140_v5 = vld [vmem:[#allocation2 + $0x258] ss:$20 sps:$4 sm:$0xff]   ;;  %v157_v7 = vld [vmem:[%s12222_s0] sm:$0xff]  ;;  %v10144_v11 = vld [vmem:[#allocation2 + $0x148] ss:$20 sps:$4 sm:$0xff]  }
  0xba   :  { %2126 = vmatpush1.bf16.msra.mxu1 %v10080_v24  ;;  %2004 = vmatprep.subr.bf16.mxu0 %v10081_v25  ;;  %v10143_v6 = vld [vmem:[#allocation2 + $0x284] ss:$20 sps:$4 sm:$0xff]   ;;  %v10146_v8 = vld [vmem:[#allocation2 + $0x14c] ss:$20 sps:$4 sm:$0xff]   ;;  %v11994_v10 = vpack.c.bf16 %v157_v7, %v157_v7  ;;  %v10152_v13 = vld [vmem:[#allocation2 + $0x174] ss:$20 sps:$4 sm:$0xff]  }
  0xbb   :  { %2127 = vmatprep.subr.bf16.mxu1 %v10083_v26  ;;  %v10141_v9 = vld [vmem:[#allocation2 + $0x280] ss:$20 sps:$4 sm:$0xff]   ;;  %v10147_v14 = vld [vmem:[#allocation2 + $0x2a8] ss:$20 sps:$4 sm:$0xff]   ;;  %v10150_v15 = vld [vmem:[#allocation2 + $0x170] ss:$20 sps:$4 sm:$0xff]  }
  0xbc   :  { %v10149_v12 = vld [vmem:[#allocation2 + $0x2ac] ss:$20 sps:$4 sm:$0xff]   ;;  %v10155_v16 = vld [vmem:[#allocation2 + $0x2d4] ss:$20 sps:$4 sm:$0xff]   ;;  %v10158_v17 = vld [vmem:[#allocation2 + $0x19c] ss:$20 sps:$4 sm:$0xff]  }
  0xbd   :  { %2005 = vmatpush1.bf16.msra.mxu0 %v10085_v27  ;;  %v10153_v18 = vld [vmem:[#allocation2 + $0x2d0] ss:$20 sps:$4 sm:$0xff]   ;;  %v10156_v19 = vld [vmem:[#allocation2 + $0x198] ss:$20 sps:$4 sm:$0xff]   ;;  %v10162_v23 = vld [vmem:[#allocation2 + $0x1c0] ss:$20 sps:$4 sm:$0xff]  }
  0xbe   :  { %2128 = vmatpush1.bf16.msra.mxu1 %v10086_v28  ;;  %2006 = vmatprep.subr.bf16.mxu0 %v10087_v29  ;;  %v10161_v20 = vld [vmem:[#allocation2 + $0x2fc] ss:$20 sps:$4 sm:$0xff]   ;;  %v10164_v21 = vld [vmem:[#allocation2 + $0x1c4] ss:$20 sps:$4 sm:$0xff]   ;;  %v10170_v25 = vld [vmem:[#allocation2 + $0x1ec] ss:$20 sps:$4 sm:$0xff]  }
  0xbf   :  { %2129 = vmatprep.subr.bf16.mxu1 %v10089_v30  ;;  %v10159_v22 = vld [vmem:[#allocation2 + $0x2f8] ss:$20 sps:$4 sm:$0xff]   ;;  %v10165_v26 = vld [vmem:[#allocation2 + $0x320] ss:$20 sps:$4 sm:$0xff]   ;;  %v10168_v27 = vld [vmem:[#allocation2 + $0x1e8] ss:$20 sps:$4 sm:$0xff]  }
  0xc0   :  { %v10167_v24 = vld [vmem:[#allocation2 + $0x324] ss:$20 sps:$4 sm:$0xff]   ;;  %v10173_v28 = vld [vmem:[#allocation2 + $0x34c] ss:$20 sps:$4 sm:$0xff]   ;;  %v10176_v29 = vld [vmem:[#allocation2 + $0x214] ss:$20 sps:$4 sm:$0xff]  }
  0xc1   :  { %2007 = vmatpush1.bf16.msra.mxu0 %v10091_v31  ;;  %v10171_v30 = vld [vmem:[#allocation2 + $0x348] ss:$20 sps:$4 sm:$0xff]   ;;  %v10174_v31 = vld [vmem:[#allocation2 + $0x210] ss:$20 sps:$4 sm:$0xff]  }
  0xc2   :  { %2130 = vmatpush1.bf16.msra.mxu1 %v10092_v32  ;;  %2008 = vmatprep.subr.bf16.mxu0 %v10093_v34  ;;  %v10179_v32 = vld [vmem:[#allocation2 + $0x374] ss:$20 sps:$4 sm:$0xff]   ;;  %v10182_v33 = vld [vmem:[#allocation2 + $0x23c] ss:$20 sps:$4 sm:$0xff]  }
  0xc3   :  { %2156 = vmatprep.subr.bf16.mxu1 %v10097_v35  ;;  %v160_v34 = vld [vmem:[%s12222_s0 + $0x18] sm:$0xff]  ;;  %v10177_v35 = vld [vmem:[#allocation2 + $0x370] ss:$20 sps:$4 sm:$0xff]  }
  0xc4   :  { %v10195_v49 = vld [vmem:[#allocation2 + $0x3e8] ss:$20 sps:$4 sm:$0xff]   ;;  %v10225_v7 = vld [vmem:[#allocation2 + $0x4b0] ss:$20 sps:$4 sm:$0xff]  }
  0xc5   :  { %2148 = vmatmul.mubr.bf16.vlgmr.msra.gmra.mrb[0].mxu1 %v11981_v36  ;;  %2009 = vmatpush1.bf16.msra.mxu0 %v10098_v38  ;;  %v10180_v38 = vld [vmem:[#allocation2 + $0x238] ss:$20 sps:$4 sm:$0xff]  }
  0xc6   :  { %2157 = vmatpush1.bf16.msra.mxu1 %v10095_v37  ;;  %2010 = vmatprep.subr.bf16.mxu0 %v10099_v39  ;;  %v12000_v37 = vpack.c.bf16 %v160_v34, %v160_v34  ;;  %v10185_v39 = vld [vmem:[#allocation2 + $0x39c] ss:$20 sps:$4 sm:$0xff]   ;;  %v10263_v34 = vld [vmem:[#allocation2 + $0x5a4] ss:$20 sps:$4 sm:$0xff]  }
  0xc7   :  { %2158 = vmatprep.subr.bf16.mxu1 %v10103_v40  ;;  %2188 = vmatprep.mubr.bf16.mxu1 %v11987_v52  ;;  %v10188_v40 = vld [vmem:[#allocation2 + $0x264] ss:$20 sps:$4 sm:$0xff]  }
  0xc9   :  { %2011 = vmatpush1.bf16.msra.mxu0 %v10104_v42  ;;  %v10186_v42 = vld [vmem:[#allocation2 + $0x260] ss:$20 sps:$4 sm:$0xff]  }
  0xca   :  { %2159 = vmatpush1.bf16.msra.mxu1 %v10101_v41  ;;  %2012 = vmatprep.subr.bf16.mxu0 %v10105_v43  ;;  %v10183_v41 = vld [vmem:[#allocation2 + $0x398] ss:$20 sps:$4 sm:$0xff]  }
  0xcb   :  { %2160 = vmatprep.subr.bf16.mxu1 %v10109_v44  ;;  %v10191_v43 = vld [vmem:[#allocation2 + $0x3c4] ss:$20 sps:$4 sm:$0xff]   ;;  %v10194_v44 = vld [vmem:[#allocation2 + $0x28c] ss:$20 sps:$4 sm:$0xff]  }
  0xcd   :  { %2013 = vmatpush1.bf16.msra.mxu0 %v10110_v46  ;;  %v10192_v46 = vld [vmem:[#allocation2 + $0x288] ss:$20 sps:$4 sm:$0xff]  }
  0xce   :  { %2161 = vmatpush1.bf16.msra.mxu1 %v10107_v45  ;;  %2014 = vmatprep.subr.bf16.mxu0 %v10111_v47  ;;  %v10189_v45 = vld [vmem:[#allocation2 + $0x3c0] ss:$20 sps:$4 sm:$0xff]  }
  0xcf   :  { %2162 = vmatprep.subr.bf16.mxu1 %v10115_v48  ;;  %v10197_v47 = vld [vmem:[#allocation2 + $0x3ec] ss:$20 sps:$4 sm:$0xff]   ;;  %v10200_v48 = vld [vmem:[#allocation2 + $0x2b4] ss:$20 sps:$4 sm:$0xff]  }
  0xd1   :  { %2015 = vmatpush1.bf16.msra.mxu0 %v10116_v51  ;;  %v10203_v51 = vld [vmem:[#allocation2 + $0x414] ss:$20 sps:$4 sm:$0xff]  }
  0xd2   :  { %2163 = vmatpush1.bf16.msra.mxu1 %v10113_v50  ;;  %2016 = vmatprep.subr.bf16.mxu0 %v10117_v53  ;;  %v10198_v50 = vld [vmem:[#allocation2 + $0x2b0] ss:$20 sps:$4 sm:$0xff]  }
  0xd3   :  { %2164 = vmatprep.subr.bf16.mxu1 %v10121_v54  ;;  %v10206_v53 = vld [vmem:[#allocation2 + $0x2dc] ss:$20 sps:$4 sm:$0xff]  }
  0xd4   :  { %v10201_v54 = vld [vmem:[#allocation2 + $0x410] ss:$20 sps:$4 sm:$0xff]  }
  0xd5   :  { %2017 = vmatpush1.bf16.msra.mxu0 %v10122_v56  ;;  %v10209_v56 = vld [vmem:[#allocation2 + $0x43c] ss:$20 sps:$4 sm:$0xff]  }
  0xd6   :  { %2165 = vmatpush1.bf16.msra.mxu1 %v10119_v55  ;;  %2018 = vmatprep.subr.bf16.mxu0 %v10123_v57  ;;  %v10204_v55 = vld [vmem:[#allocation2 + $0x2d8] ss:$20 sps:$4 sm:$0xff]  }
  0xd7   :  { %2166 = vmatprep.subr.bf16.mxu1 %v10127_v58  ;;  %v10212_v57 = vld [vmem:[#allocation2 + $0x304] ss:$20 sps:$4 sm:$0xff]  }
  0xd8   :  { %v10207_v58 = vld [vmem:[#allocation2 + $0x438] ss:$20 sps:$4 sm:$0xff]  }
  0xd9   :  { %2019 = vmatpush1.bf16.msra.mxu0 %v10128_v60  ;;  %v10215_v60 = vld [vmem:[#allocation2 + $0x464] ss:$20 sps:$4 sm:$0xff]  }
  0xda   :  { %2167 = vmatpush1.bf16.msra.mxu1 %v10125_v59  ;;  %2020 = vmatprep.subr.bf16.mxu0 %v10129_v61  ;;  %v10210_v59 = vld [vmem:[#allocation2 + $0x300] ss:$20 sps:$4 sm:$0xff]  }
  0xdb   :  { %2168 = vmatprep.subr.bf16.mxu1 %v10133_v62  ;;  %v10218_v61 = vld [vmem:[#allocation2 + $0x32c] ss:$20 sps:$4 sm:$0xff]  }
  0xdc   :  { %v10213_v62 = vld [vmem:[#allocation2 + $0x460] ss:$20 sps:$4 sm:$0xff]  }
  0xdd   :  { %2021 = vmatpush1.bf16.msra.mxu0 %v10134_v1  ;;  %v10221_v1 = vld [vmem:[#allocation2 + $0x48c] ss:$20 sps:$4 sm:$0xff]  }
  0xde   :  { %2169 = vmatpush1.bf16.msra.mxu1 %v10131_v63  ;;  %2022 = vmatprep.subr.bf16.mxu0 %v10135_v2  ;;  %v10216_v63 = vld [vmem:[#allocation2 + $0x328] ss:$20 sps:$4 sm:$0xff]  }
  0xdf   :  { %2170 = vmatprep.subr.bf16.mxu1 %v10139_v3  ;;  %v10224_v2 = vld [vmem:[#allocation2 + $0x354] ss:$20 sps:$4 sm:$0xff]  }
  0xe0   :  { %v10219_v3 = vld [vmem:[#allocation2 + $0x488] ss:$20 sps:$4 sm:$0xff]  }
  0xe1   :  { %2023 = vmatpush1.bf16.msra.mxu0 %v10140_v5  ;;  %v10227_v5 = vld [vmem:[#allocation2 + $0x4b4] ss:$20 sps:$4 sm:$0xff]  }
  0xe2   :  { %2171 = vmatpush1.bf16.msra.mxu1 %v10137_v4  ;;  %2033 = vmatprep.subr.bf16.mxu0 %v10143_v6  ;;  %v10222_v4 = vld [vmem:[#allocation2 + $0x350] ss:$20 sps:$4 sm:$0xff]  }
  0xe3   :  { %2172 = vmatprep.subr.bf16.mxu1 %v10146_v8  ;;  %v10230_v6 = vld [vmem:[#allocation2 + $0x37c] ss:$20 sps:$4 sm:$0xff]   ;;  %v10228_v8 = vld [vmem:[#allocation2 + $0x378] ss:$20 sps:$4 sm:$0xff]  }
  0xe4   :  { %2025 = vmatmul.mubr.bf16.vlgmr.msra.gmra.mrb[0].mxu0 %v11994_v10 }
  0xe5   :  { %2034 = vmatpush1.bf16.msra.mxu0 %v10141_v9  ;;  %2065 = vmatprep.mubr.bf16.mxu0 %v12000_v37  ;;  %v10233_v9 = vld [vmem:[#allocation2 + $0x4dc] ss:$20 sps:$4 sm:$0xff]  }
  0xe6   :  { %2173 = vmatpush1.bf16.msra.mxu1 %v10144_v11  ;;  %2035 = vmatprep.subr.bf16.mxu0 %v10149_v12  ;;  %v10236_v11 = vld [vmem:[#allocation2 + $0x3a4] ss:$20 sps:$4 sm:$0xff]  }
  0xe7   :  { %2174 = vmatprep.subr.bf16.mxu1 %v10152_v13  ;;  %v10231_v12 = vld [vmem:[#allocation2 + $0x4d8] ss:$20 sps:$4 sm:$0xff]   ;;  %v10234_v13 = vld [vmem:[#allocation2 + $0x3a0] ss:$20 sps:$4 sm:$0xff]  }
  0xe9   :  { %2036 = vmatpush1.bf16.msra.mxu0 %v10147_v14  ;;  %v159_v14 = vld [vmem:[%s12222_s0 + $0x10] sm:$0xff] }
  0xea   :  { %2175 = vmatpush1.bf16.msra.mxu1 %v10150_v15  ;;  %2037 = vmatprep.subr.bf16.mxu0 %v10155_v16  ;;  %v10239_v15 = vld [vmem:[#allocation2 + $0x504] ss:$20 sps:$4 sm:$0xff]   ;;  %v10242_v16 = vld [vmem:[#allocation2 + $0x3cc] ss:$20 sps:$4 sm:$0xff]  }
  0xeb   :  { %2176 = vmatprep.subr.bf16.mxu1 %v10158_v17  ;;  %v10237_v17 = vld [vmem:[#allocation2 + $0x500] ss:$20 sps:$4 sm:$0xff]  }
  0xed   :  { %2038 = vmatpush1.bf16.msra.mxu0 %v10153_v18  ;;  %v12008_v18 = vpack.c.bf16 %v159_v14, %v159_v14  ;;  %v10318_v14 = vld [vmem:[#allocation2 + $0x5d0] ss:$20 sps:$4 sm:$0xff]  }
  0xee   :  { %2177 = vmatpush1.bf16.msra.mxu1 %v10156_v19  ;;  %2039 = vmatprep.subr.bf16.mxu0 %v10161_v20  ;;  %v10240_v19 = vld [vmem:[#allocation2 + $0x3c8] ss:$20 sps:$4 sm:$0xff]   ;;  %v10245_v20 = vld [vmem:[#allocation2 + $0x52c] ss:$20 sps:$4 sm:$0xff]  }
  0xef   :  { %2178 = vmatprep.subr.bf16.mxu1 %v10164_v21  ;;  %v10248_v21 = vld [vmem:[#allocation2 + $0x3f4] ss:$20 sps:$4 sm:$0xff]  }
  0xf1   :  { %2040 = vmatpush1.bf16.msra.mxu0 %v10159_v22  ;;  %v162_v22 = vld [vmem:[%s12222_s0 + $0x28] sm:$0xff] }
  0xf2   :  { %2179 = vmatpush1.bf16.msra.mxu1 %v10162_v23  ;;  %2041 = vmatprep.subr.bf16.mxu0 %v10167_v24  ;;  %v12013_v23 = vpack.c.bf16 %v162_v22, %v162_v22  ;;  %v10243_v24 = vld [vmem:[#allocation2 + $0x528] ss:$20 sps:$4 sm:$0xff]   ;;  %v10327_v22 = vld [vmem:[#allocation2 + $0x758] ss:$20 sps:$4 sm:$0xff]  }
  0xf3   :  { %2180 = vmatprep.subr.bf16.mxu1 %v10170_v25  ;;  %v10246_v25 = vld [vmem:[#allocation2 + $0x3f0] ss:$20 sps:$4 sm:$0xff]  }
  0xf5   :  { %2042 = vmatpush1.bf16.msra.mxu0 %v10165_v26  ;;  %v10251_v26 = vld [vmem:[#allocation2 + $0x554] ss:$20 sps:$4 sm:$0xff]  }
  0xf6   :  { %2181 = vmatpush1.bf16.msra.mxu1 %v10168_v27  ;;  %2043 = vmatprep.subr.bf16.mxu0 %v10173_v28  ;;  %v10254_v27 = vld [vmem:[#allocation2 + $0x41c] ss:$20 sps:$4 sm:$0xff]  }
  0xf7   :  { %2182 = vmatprep.subr.bf16.mxu1 %v10176_v29  ;;  %v10249_v28 = vld [vmem:[#allocation2 + $0x550] ss:$20 sps:$4 sm:$0xff]   ;;  %v10252_v29 = vld [vmem:[#allocation2 + $0x418] ss:$20 sps:$4 sm:$0xff]  }
  0xf9   :  { %2044 = vmatpush1.bf16.msra.mxu0 %v10171_v30  ;;  %v10257_v30 = vld [vmem:[#allocation2 + $0x57c] ss:$20 sps:$4 sm:$0xff]  }
  0xfa   :  { %2183 = vmatpush1.bf16.msra.mxu1 %v10174_v31  ;;  %2045 = vmatprep.subr.bf16.mxu0 %v10179_v32  ;;  %v10260_v31 = vld [vmem:[#allocation2 + $0x444] ss:$20 sps:$4 sm:$0xff]  }
  0xfb   :  { %2184 = vmatprep.subr.bf16.mxu1 %v10182_v33  ;;  %v10255_v32 = vld [vmem:[#allocation2 + $0x578] ss:$20 sps:$4 sm:$0xff]   ;;  %v10258_v33 = vld [vmem:[#allocation2 + $0x440] ss:$20 sps:$4 sm:$0xff]  }
  0xfd   :  { %2046 = vmatpush1.bf16.msra.mxu0 %v10177_v35  ;;  %v10266_v35 = vld [vmem:[#allocation2 + $0x46c] ss:$20 sps:$4 sm:$0xff]  }
  0xfe   :  { %2185 = vmatpush1.bf16.msra.mxu1 %v10180_v38  ;;  %2047 = vmatprep.subr.bf16.mxu0 %v10185_v39  ;;  %v10261_v38 = vld [vmem:[#allocation2 + $0x5a0] ss:$20 sps:$4 sm:$0xff]   ;;  %v10264_v39 = vld [vmem:[#allocation2 + $0x468] ss:$20 sps:$4 sm:$0xff]  }
  0xff   :  { %2186 = vmatprep.subr.bf16.mxu1 %v10188_v40  ;;  %v10269_v40 = vld [vmem:[#allocation2 + $0x5cc] ss:$20 sps:$4 sm:$0xff]  }
 0x101   :  { %2048 = vmatpush1.bf16.msra.mxu0 %v10183_v41  ;;  %v10272_v41 = vld [vmem:[#allocation2 + $0x494] ss:$20 sps:$4 sm:$0xff]  }
 0x102   :  { %2187 = vmatpush1.bf16.msra.mxu1 %v10186_v42  ;;  %2049 = vmatprep.subr.bf16.mxu0 %v10191_v43  ;;  %v10267_v42 = vld [vmem:[#allocation2 + $0x5c8] ss:$20 sps:$4 sm:$0xff]   ;;  %v10270_v43 = vld [vmem:[#allocation2 + $0x490] ss:$20 sps:$4 sm:$0xff]  }
 0x103   :  { %2197 = vmatprep.subr.bf16.mxu1 %v10194_v44  ;;  %v10275_v44 = vld [vmem:[#allocation2 + $0x5f4] ss:$20 sps:$4 sm:$0xff]  }
 0x105   :  { %2189 = vmatmul.mubr.bf16.vlgmr.msra.gmra.mrb[4].mxu1 %v11994_v10  ;;  %2050 = vmatpush1.bf16.msra.mxu0 %v10189_v45  ;;  %v10278_v45 = vld [vmem:[#allocation2 + $0x4bc] ss:$20 sps:$4 sm:$0xff]  }
 0x106   :  { %2198 = vmatpush1.bf16.msra.mxu1 %v10192_v46  ;;  %2051 = vmatprep.subr.bf16.mxu0 %v10197_v47  ;;  %v10273_v46 = vld [vmem:[#allocation2 + $0x5f0] ss:$20 sps:$4 sm:$0xff]   ;;  %v10276_v47 = vld [vmem:[#allocation2 + $0x4b8] ss:$20 sps:$4 sm:$0xff]  }
 0x107   :  { %2199 = vmatprep.subr.bf16.mxu1 %v10200_v48  ;;  %2229 = vmatprep.mubr.bf16.mxu1 %v12000_v37  ;;  %v10281_v48 = vld [vmem:[#allocation2 + $0x61c] ss:$20 sps:$4 sm:$0xff]  }
 0x109   :  { %2052 = vmatpush1.bf16.msra.mxu0 %v10195_v49  ;;  %v10284_v49 = vld [vmem:[#allocation2 + $0x4e4] ss:$20 sps:$4 sm:$0xff]  }
 0x10a   :  { %2200 = vmatpush1.bf16.msra.mxu1 %v10198_v50  ;;  %2053 = vmatprep.subr.bf16.mxu0 %v10203_v51  ;;  %v10279_v50 = vld [vmem:[#allocation2 + $0x618] ss:$20 sps:$4 sm:$0xff]   ;;  %v10282_v51 = vld [vmem:[#allocation2 + $0x4e0] ss:$20 sps:$4 sm:$0xff]  }
 0x10b   :  { %2201 = vmatprep.subr.bf16.mxu1 %v10206_v53  ;;  %v10287_v53 = vld [vmem:[#allocation2 + $0x644] ss:$20 sps:$4 sm:$0xff]  }
 0x10d   :  { %2054 = vmatpush1.bf16.msra.mxu0 %v10201_v54  ;;  %v10290_v54 = vld [vmem:[#allocation2 + $0x50c] ss:$20 sps:$4 sm:$0xff]  }
 0x10e   :  { %2202 = vmatpush1.bf16.msra.mxu1 %v10204_v55  ;;  %2055 = vmatprep.subr.bf16.mxu0 %v10209_v56  ;;  %v10285_v55 = vld [vmem:[#allocation2 + $0x640] ss:$20 sps:$4 sm:$0xff]   ;;  %v10288_v56 = vld [vmem:[#allocation2 + $0x508] ss:$20 sps:$4 sm:$0xff]  }
 0x10f   :  { %2203 = vmatprep.subr.bf16.mxu1 %v10212_v57  ;;  %v10293_v57 = vld [vmem:[#allocation2 + $0x66c] ss:$20 sps:$4 sm:$0xff]  }
 0x111   :  { %2056 = vmatpush1.bf16.msra.mxu0 %v10207_v58  ;;  %v10296_v58 = vld [vmem:[#allocation2 + $0x534] ss:$20 sps:$4 sm:$0xff]  }
 0x112   :  { %2204 = vmatpush1.bf16.msra.mxu1 %v10210_v59  ;;  %2057 = vmatprep.subr.bf16.mxu0 %v10215_v60  ;;  %v10291_v59 = vld [vmem:[#allocation2 + $0x668] ss:$20 sps:$4 sm:$0xff]   ;;  %v10294_v60 = vld [vmem:[#allocation2 + $0x530] ss:$20 sps:$4 sm:$0xff]  }
 0x113   :  { %2205 = vmatprep.subr.bf16.mxu1 %v10218_v61  ;;  %v10299_v61 = vld [vmem:[#allocation2 + $0x694] ss:$20 sps:$4 sm:$0xff]  }
 0x115   :  { %2058 = vmatpush1.bf16.msra.mxu0 %v10213_v62  ;;  %v10302_v62 = vld [vmem:[#allocation2 + $0x55c] ss:$20 sps:$4 sm:$0xff]  }
 0x116   :  { %2206 = vmatpush1.bf16.msra.mxu1 %v10216_v63  ;;  %2059 = vmatprep.subr.bf16.mxu0 %v10221_v1  ;;  %v10297_v63 = vld [vmem:[#allocation2 + $0x690] ss:$20 sps:$4 sm:$0xff]   ;;  %v10300_v1 = vld [vmem:[#allocation2 + $0x558] ss:$20 sps:$4 sm:$0xff]  }
 0x117   :  { %2207 = vmatprep.subr.bf16.mxu1 %v10224_v2  ;;  %v10305_v2 = vld [vmem:[#allocation2 + $0x6bc] ss:$20 sps:$4 sm:$0xff]  }
 0x119   :  { %2060 = vmatpush1.bf16.msra.mxu0 %v10219_v3  ;;  %v10308_v3 = vld [vmem:[#allocation2 + $0x584] ss:$20 sps:$4 sm:$0xff]  }
 0x11a   :  { %2208 = vmatpush1.bf16.msra.mxu1 %v10222_v4  ;;  %2061 = vmatprep.subr.bf16.mxu0 %v10227_v5  ;;  %v10303_v4 = vld [vmem:[#allocation2 + $0x6b8] ss:$20 sps:$4 sm:$0xff]   ;;  %v10306_v5 = vld [vmem:[#allocation2 + $0x580] ss:$20 sps:$4 sm:$0xff]  }
 0x11b   :  { %2209 = vmatprep.subr.bf16.mxu1 %v10230_v6  ;;  %v10311_v6 = vld [vmem:[#allocation2 + $0x6e4] ss:$20 sps:$4 sm:$0xff]  }
 0x11d   :  { %2062 = vmatpush1.bf16.msra.mxu0 %v10225_v7  ;;  %v10314_v7 = vld [vmem:[#allocation2 + $0x5ac] ss:$20 sps:$4 sm:$0xff]  }
 0x11e   :  { %2210 = vmatpush1.bf16.msra.mxu1 %v10228_v8  ;;  %2063 = vmatprep.subr.bf16.mxu0 %v10233_v9  ;;  %v10309_v8 = vld [vmem:[#allocation2 + $0x6e0] ss:$20 sps:$4 sm:$0xff]   ;;  %v10312_v9 = vld [vmem:[#allocation2 + $0x5a8] ss:$20 sps:$4 sm:$0xff]  }
 0x11f   :  { %2211 = vmatprep.subr.bf16.mxu1 %v10236_v11  ;;  %v10317_v11 = vld [vmem:[#allocation2 + $0x70c] ss:$20 sps:$4 sm:$0xff]  }
 0x121   :  { %2064 = vmatpush1.bf16.msra.mxu0 %v10231_v12  ;;  %v10320_v12 = vld [vmem:[#allocation2 + $0x5d4] ss:$20 sps:$4 sm:$0xff]  }
 0x122   :  { %2212 = vmatpush1.bf16.msra.mxu1 %v10234_v13  ;;  %2074 = vmatprep.subr.bf16.mxu0 %v10239_v15  ;;  %v10315_v13 = vld [vmem:[#allocation2 + $0x708] ss:$20 sps:$4 sm:$0xff]  }
 0x123   :  { %2213 = vmatprep.subr.bf16.mxu1 %v10242_v16  ;;  %v10323_v15 = vld [vmem:[#allocation2 + $0x734] ss:$20 sps:$4 sm:$0xff]   ;;  %v10326_v16 = vld [vmem:[#allocation2 + $0x5fc] ss:$20 sps:$4 sm:$0xff]  }
 0x124   :  { %2066 = vmatmul.mubr.bf16.vlgmr.msra.gmra.mrb[0].mxu0 %v12008_v18 }
 0x125   :  { %2075 = vmatpush1.bf16.msra.mxu0 %v10237_v17  ;;  %2106 = vmatprep.mubr.bf16.mxu0 %v12013_v23  ;;  %v10321_v17 = vld [vmem:[#allocation2 + $0x730] ss:$20 sps:$4 sm:$0xff]  }
 0x126   :  { %2214 = vmatpush1.bf16.msra.mxu1 %v10240_v19  ;;  %2076 = vmatprep.subr.bf16.mxu0 %v10245_v20  ;;  %v10324_v19 = vld [vmem:[#allocation2 + $0x5f8] ss:$20 sps:$4 sm:$0xff]   ;;  %v10329_v20 = vld [vmem:[#allocation2 + $0x75c] ss:$20 sps:$4 sm:$0xff]  }
 0x127   :  { %2215 = vmatprep.subr.bf16.mxu1 %v10248_v21  ;;  %v10332_v21 = vld [vmem:[#allocation2 + $0x624] ss:$20 sps:$4 sm:$0xff]  }
 0x129   :  { %2077 = vmatpush1.bf16.msra.mxu0 %v10243_v24  ;;  %v10330_v24 = vld [vmem:[#allocation2 + $0x620] ss:$20 sps:$4 sm:$0xff]  }
 0x12a   :  { %2216 = vmatpush1.bf16.msra.mxu1 %v10246_v25  ;;  %2078 = vmatprep.subr.bf16.mxu0 %v10251_v26  ;;  %v161_v25 = vld [vmem:[%s12222_s0 + $0x20] sm:$0xff]  ;;  %s11787_s0 = smov [#allocation17]  }
 0x12b   :  { %2217 = vmatprep.subr.bf16.mxu1 %v10254_v27  ;;  %v10335_v26 = vld [vmem:[#allocation2 + $0x64c] ss:$20 sps:$4 sm:$0xff]   ;;  %v10360_v27 = vld [vmem:[#allocation2 + $0x150] ss:$20 sps:$4 sm:$0xff]   ;;  %s8641_s29 = sshll.u32 %s11787_s0, 4  ;;  %s8642_s29 = int_to_ptr.vmem [resolvable:$true] %s8641_s29 }
 0x12c   :  { %s11731_s5 = scalar_lea.vmem %s8642_s29, 896  ;;  %p11736_p3 = scmp.lt.s32.totalorder %s8642_s29, %s8642_s29 }
 0x12d   :  { %2079 = vmatpush1.bf16.msra.mxu0 %v10249_v28  ;;  %v10333_v28 = vld [vmem:[#allocation2 + $0x648] ss:$20 sps:$4 sm:$0xff]   ;;  %p11732_p2 = scmp.ne.s32.totalorder %s8642_s29, %s11731_s5  ;;  %p11737_p4 = scmp.lt.s32.totalorder %s11731_s5, %s11731_s5 }
 0x12e   :  { %2218 = vmatpush1.bf16.msra.mxu1 %v10252_v29  ;;  %2080 = vmatprep.subr.bf16.mxu0 %v10257_v30  ;;  %v12022_v29 = vpack.c.bf16 %v161_v25, %v161_v25  ;;  %v10338_v30 = vld [vmem:[#allocation2 + $0x674] ss:$20 sps:$4 sm:$0xff]  }
 0x12f   :  { %2219 = vmatprep.subr.bf16.mxu1 %v10260_v31  ;;  %v10361_v31 = vld [vmem:[#allocation2 + $0x10] ss:$20 sps:$4 sm:$0xff]   ;;  %p11738_p5 = por %p11737_p4, %p11736_p3 }
 0x131   :  { %2081 = vmatpush1.bf16.msra.mxu0 %v10255_v32  ;;  %v10365_v32 = vld [vmem:[#allocation2 + $0x178] ss:$20 sps:$4 sm:$0xff]   ;;  %p11739_p6 = pnand %p11738_p5, %p11732_p2 }
 0x132   :  { %2220 = vmatpush1.bf16.msra.mxu1 %v10258_v33  ;;  %2082 = vmatprep.subr.bf16.mxu0 %v10263_v34  ;;  %v10336_v33 = vld [vmem:[#allocation2 + $0x670] ss:$20 sps:$4 sm:$0xff]  }
 0x133   :  { %2221 = vmatprep.subr.bf16.mxu1 %v10266_v35  ;;  %v10341_v34 = vld [vmem:[#allocation2 + $0x69c] ss:$20 sps:$4 sm:$0xff]   ;;  %v10366_v35 = vld [vmem:[#allocation2 + $0x38] ss:$20 sps:$4 sm:$0xff]  }
 0x135   :  { %2083 = vmatpush1.bf16.msra.mxu0 %v10261_v38  ;;  %v10370_v38 = vld [vmem:[#allocation2 + $0x1a0] ss:$20 sps:$4 sm:$0xff]  }
 0x136   :  { %2222 = vmatpush1.bf16.msra.mxu1 %v10264_v39  ;;  %2084 = vmatprep.subr.bf16.mxu0 %v10269_v40  ;;  %v10339_v39 = vld [vmem:[#allocation2 + $0x698] ss:$20 sps:$4 sm:$0xff]  }
 0x137   :  { %2223 = vmatprep.subr.bf16.mxu1 %v10272_v41  ;;  %v10344_v40 = vld [vmem:[#allocation2 + $0x6c4] ss:$20 sps:$4 sm:$0xff]   ;;  %v10371_v41 = vld [vmem:[#allocation2 + $0x60] ss:$20 sps:$4 sm:$0xff]  }
 0x139   :  { %2085 = vmatpush1.bf16.msra.mxu0 %v10267_v42  ;;  %v10375_v42 = vld [vmem:[#allocation2 + $0x1c8] ss:$20 sps:$4 sm:$0xff]  }
 0x13a   :  { %2224 = vmatpush1.bf16.msra.mxu1 %v10270_v43  ;;  %2086 = vmatprep.subr.bf16.mxu0 %v10275_v44  ;;  %v10342_v43 = vld [vmem:[#allocation2 + $0x6c0] ss:$20 sps:$4 sm:$0xff]  }
 0x13b   :  { %2225 = vmatprep.subr.bf16.mxu1 %v10278_v45  ;;  %v10347_v44 = vld [vmem:[#allocation2 + $0x6ec] ss:$20 sps:$4 sm:$0xff]   ;;  %v10376_v45 = vld [vmem:[#allocation2 + $0x88] ss:$20 sps:$4 sm:$0xff]  }
 0x13d   :  { %2087 = vmatpush1.bf16.msra.mxu0 %v10273_v46  ;;  %v10380_v46 = vld [vmem:[#allocation2 + $0x1f0] ss:$20 sps:$4 sm:$0xff]  }
 0x13e   :  { %2226 = vmatpush1.bf16.msra.mxu1 %v10276_v47  ;;  %2088 = vmatprep.subr.bf16.mxu0 %v10281_v48  ;;  %v10345_v47 = vld [vmem:[#allocation2 + $0x6e8] ss:$20 sps:$4 sm:$0xff]  }
 0x13f   :  { %2227 = vmatprep.subr.bf16.mxu1 %v10284_v49  ;;  %v10350_v48 = vld [vmem:[#allocation2 + $0x714] ss:$20 sps:$4 sm:$0xff]   ;;  %v10385_v49 = vld [vmem:[#allocation2 + $0x218] ss:$20 sps:$4 sm:$0xff]  }
 0x141   :  { %2089 = vmatpush1.bf16.msra.mxu0 %v10279_v50  ;;  %v10348_v50 = vld [vmem:[#allocation2 + $0x710] ss:$20 sps:$4 sm:$0xff]  }
 0x142   :  { %2228 = vmatpush1.bf16.msra.mxu1 %v10282_v51  ;;  %2090 = vmatprep.subr.bf16.mxu0 %v10287_v53  ;;  %v10353_v51 = vld [vmem:[#allocation2 + $0x73c] ss:$20 sps:$4 sm:$0xff]   ;;  %v10386_v53 = vld [vmem:[#allocation2 + $0xd8] ss:$20 sps:$4 sm:$0xff]  }
 0x143   :  { %2238 = vmatprep.subr.bf16.mxu1 %v10290_v54  ;;  %v10390_v54 = vld [vmem:[#allocation2 + $0x240] ss:$20 sps:$4 sm:$0xff]  }
 0x145   :  { %2230 = vmatmul.mubr.bf16.vlgmr.msra.gmra.mrb[4].mxu1 %v12008_v18  ;;  %2091 = vmatpush1.bf16.msra.mxu0 %v10285_v55  ;;  %v10351_v55 = vld [vmem:[#allocation2 + $0x738] ss:$20 sps:$4 sm:$0xff]  }
 0x146   :  { %2239 = vmatpush1.bf16.msra.mxu1 %v10288_v56  ;;  %2092 = vmatprep.subr.bf16.mxu0 %v10293_v57  ;;  %v10356_v56 = vld [vmem:[#allocation2 + $0x764] ss:$20 sps:$4 sm:$0xff]   ;;  %v10391_v57 = vld [vmem:[#allocation2 + $0x100] ss:$20 sps:$4 sm:$0xff]  }
 0x147   :  { %2240 = vmatprep.subr.bf16.mxu1 %v10296_v58  ;;  %2270 = vmatprep.mubr.bf16.mxu1 %v12013_v23  ;;  %v10395_v58 = vld [vmem:[#allocation2 + $0x268] ss:$20 sps:$4 sm:$0xff]  }
 0x149   :  { %2093 = vmatpush1.bf16.msra.mxu0 %v10291_v59  ;;  %v10354_v59 = vld [vmem:[#allocation2 + $0x760] ss:$20 sps:$4 sm:$0xff]  }
 0x14a   :  { %2241 = vmatpush1.bf16.msra.mxu1 %v10294_v60  ;;  %2094 = vmatprep.subr.bf16.mxu0 %v10299_v61  ;;  %v10359_v60 = vld [vmem:[#allocation2 + $0x78c] ss:$20 sps:$4 sm:$0xff]   ;;  %v10396_v61 = vld [vmem:[#allocation2 + $0x128] ss:$20 sps:$4 sm:$0xff]  }
 0x14b   :  { %2242 = vmatprep.subr.bf16.mxu1 %v10302_v62  ;;  %v10399_v62 = vld [vmem:[#allocation2 + $0x650] ss:$20 sps:$4 sm:$0xff]  }
 0x14d   :  { %2095 = vmatpush1.bf16.msra.mxu0 %v10297_v63  ;;  %v10357_v63 = vld [vmem:[#allocation2 + $0x788] ss:$20 sps:$4 sm:$0xff]  }
 0x14e   :  { %2243 = vmatpush1.bf16.msra.mxu1 %v10300_v1  ;;  %2096 = vmatprep.subr.bf16.mxu0 %v10305_v2  ;;  %v10364_v1 = vld [vmem:[#allocation2 + $0x7b4] ss:$20 sps:$4 sm:$0xff]   ;;  %v10400_v2 = vld [vmem:[#allocation2 + $0x510] ss:$20 sps:$4 sm:$0xff]  }
 0x14f   :  { %2244 = vmatprep.subr.bf16.mxu1 %v10308_v3  ;;  %v10403_v3 = vld [vmem:[#allocation2 + $0x678] ss:$20 sps:$4 sm:$0xff]  }
 0x151   :  { %2097 = vmatpush1.bf16.msra.mxu0 %v10303_v4  ;;  %v10362_v4 = vld [vmem:[#allocation2 + $0x7b0] ss:$20 sps:$4 sm:$0xff]  }
 0x152   :  { %2245 = vmatpush1.bf16.msra.mxu1 %v10306_v5  ;;  %2098 = vmatprep.subr.bf16.mxu0 %v10311_v6  ;;  %v10369_v5 = vld [vmem:[#allocation2 + $0x7dc] ss:$20 sps:$4 sm:$0xff]   ;;  %v10404_v6 = vld [vmem:[#allocation2 + $0x538] ss:$20 sps:$4 sm:$0xff]  }
 0x153   :  { %2246 = vmatprep.subr.bf16.mxu1 %v10314_v7  ;;  %v10407_v7 = vld [vmem:[#allocation2 + $0x6a0] ss:$20 sps:$4 sm:$0xff]  }
 0x155   :  { %2099 = vmatpush1.bf16.msra.mxu0 %v10309_v8  ;;  %v10367_v8 = vld [vmem:[#allocation2 + $0x7d8] ss:$20 sps:$4 sm:$0xff]  }
 0x156   :  { %2247 = vmatpush1.bf16.msra.mxu1 %v10312_v9  ;;  %2100 = vmatprep.subr.bf16.mxu0 %v10317_v11  ;;  %v10374_v9 = vld [vmem:[#allocation2 + $0x804] ss:$20 sps:$4 sm:$0xff]   ;;  %v10408_v11 = vld [vmem:[#allocation2 + $0x560] ss:$20 sps:$4 sm:$0xff]  }
 0x157   :  { %2248 = vmatprep.subr.bf16.mxu1 %v10320_v12  ;;  %v10372_v12 = vld [vmem:[#allocation2 + $0x800] ss:$20 sps:$4 sm:$0xff]  }
 0x159   :  { %2101 = vmatpush1.bf16.msra.mxu0 %v10315_v13  ;;  %v10379_v13 = vld [vmem:[#allocation2 + $0x82c] ss:$20 sps:$4 sm:$0xff]  }
 0x15a   :  { %2249 = vmatpush1.bf16.msra.mxu1 %v10318_v14  ;;  %2102 = vmatprep.subr.bf16.mxu0 %v10323_v15  ;;  %v10412_v14 = vld [vmem:[#allocation2 + $0x588] ss:$20 sps:$4 sm:$0xff]   ;;  %v10415_v15 = vld [vmem:[#allocation2 + $0x6f0] ss:$20 sps:$4 sm:$0xff]  }
 0x15b   :  { %2250 = vmatprep.subr.bf16.mxu1 %v10326_v16  ;;  %v10377_v16 = vld [vmem:[#allocation2 + $0x828] ss:$20 sps:$4 sm:$0xff]  }
 0x15d   :  { %2103 = vmatpush1.bf16.msra.mxu0 %v10321_v17  ;;  %v10384_v17 = vld [vmem:[#allocation2 + $0x854] ss:$20 sps:$4 sm:$0xff]  }
 0x15e   :  { %2251 = vmatpush1.bf16.msra.mxu1 %v10324_v19  ;;  %2104 = vmatprep.subr.bf16.mxu0 %v10329_v20  ;;  %v10419_v19 = vld [vmem:[#allocation2 + $0x718] ss:$20 sps:$4 sm:$0xff]   ;;  %v10382_v20 = vld [vmem:[#allocation2 + $0x850] ss:$20 sps:$4 sm:$0xff]  }
 0x15f   :  { %2252 = vmatprep.subr.bf16.mxu1 %v10332_v21  ;;  %v10389_v21 = vld [vmem:[#allocation2 + $0x87c] ss:$20 sps:$4 sm:$0xff]  }
 0x161   :  { %2105 = vmatpush1.bf16.msra.mxu0 %v10327_v22  ;;  %v10420_v22 = vld [vmem:[#allocation2 + $0x5d8] ss:$20 sps:$4 sm:$0xff]  }
 0x162   :  { %2253 = vmatpush1.bf16.msra.mxu1 %v10330_v24  ;;  %9694 = vmatprep.subr.bf16.mxu0 %v10360_v27  ;;  %v10423_v24 = vld [vmem:[#allocation2 + $0x740] ss:$20 sps:$4 sm:$0xff]  }
 0x163   :  { %2254 = vmatprep.subr.bf16.mxu1 %v10335_v26  ;;  %v10387_v26 = vld [vmem:[#allocation2 + $0x878] ss:$20 sps:$4 sm:$0xff]  }
 0x164   :  { %2107 = vmatmul.mubr.bf16.vlgmr.msra.gmra.mrb[0].mxu0 %v12022_v29 }
 0x165   :  { %9695 = vmatpush3.bf16.msra.mxu0 %v10361_v31  ;;  %2352 = vmatprep.mubr.bf16.mxu0 %v11987_v52  ;;  %v10381_v52 = vld [vmem:[#allocation2 + $0xb0] ss:$20 sps:$4 sm:$0xff]   ;;  %v10424_v31 = vld [vmem:[#allocation2 + $0x600] ss:$20 sps:$4 sm:$0xff]  }
 0x166   :  { %2255 = vmatpush1.bf16.msra.mxu1 %v10333_v28  ;;  %9696 = vmatprep.subr.bf16.mxu0 %v10365_v32  ;;  %v10394_v28 = vld [vmem:[#allocation2 + $0x8a4] ss:$20 sps:$4 sm:$0xff]  }
 0x167   :  { %2256 = vmatprep.subr.bf16.mxu1 %v10338_v30 }
 0x169   :  { %9697 = vmatpush3.bf16.msra.mxu0 %v10366_v35  ;;  %v10397_v35 = vld [vmem:[#allocation2 + $0x3d0] ss:$20 sps:$4 sm:$0xff]  }
 0x16a   :  { %2257 = vmatpush1.bf16.msra.mxu1 %v10336_v33  ;;  %9698 = vmatprep.subr.bf16.mxu0 %v10370_v38  ;;  %v10427_v33 = vld [vmem:[#allocation2 + $0x768] ss:$20 sps:$4 sm:$0xff]  }
 0x16b   :  { %2258 = vmatprep.subr.bf16.mxu1 %v10341_v34  ;;  %v10392_v34 = vld [vmem:[#allocation2 + $0x8a0] ss:$20 sps:$4 sm:$0xff]   ;;  %v10428_v38 = vld [vmem:[#allocation2 + $0x628] ss:$20 sps:$4 sm:$0xff]  }
 0x16d   :  { %9699 = vmatpush3.bf16.msra.mxu0 %v10371_v41  ;;  %v10401_v41 = vld [vmem:[#allocation2 + $0x3f8] ss:$20 sps:$4 sm:$0xff]  }
 0x16e   :  { %2259 = vmatpush1.bf16.msra.mxu1 %v10339_v39  ;;  %9700 = vmatprep.subr.bf16.mxu0 %v10375_v42  ;;  %v10439_v39 = vld [vmem:[#allocation5 + $0x4] ss:$16 sps:$4 sm:$0xff]   ;;  %v10437_v42 = vld [vmem:[#allocation5] ss:$16 sps:$4 sm:$0xff]  }
 0x16f   :  { %2260 = vmatprep.subr.bf16.mxu1 %v10344_v40  ;;  %v10398_v40 = vld [vmem:[#allocation2 + $0x290] ss:$20 sps:$4 sm:$0xff]  }
 0x171   :  { %9701 = vmatpush3.bf16.msra.mxu0 %v10376_v45  ;;  %v10405_v45 = vld [vmem:[#allocation2 + $0x420] ss:$20 sps:$4 sm:$0xff]  }
 0x172   :  { %2261 = vmatpush1.bf16.msra.mxu1 %v10342_v43  ;;  %9702 = vmatprep.subr.bf16.mxu0 %v10380_v46  ;;  %v10445_v43 = vld [vmem:[#allocation5 + $0x24] ss:$16 sps:$4 sm:$0xff]   ;;  %v10443_v46 = vld [vmem:[#allocation5 + $0x20] ss:$16 sps:$4 sm:$0xff]  }
 0x173   :  { %2262 = vmatprep.subr.bf16.mxu1 %v10347_v44  ;;  %v10402_v44 = vld [vmem:[#allocation2 + $0x2b8] ss:$20 sps:$4 sm:$0xff]  }
 0x175   :  { %9703 = vmatpush3.bf16.msra.mxu0 %v10381_v52  ;;  %v10409_v52 = vld [vmem:[#allocation2 + $0x448] ss:$20 sps:$4 sm:$0xff]  }
 0x176   :  { %2263 = vmatpush1.bf16.msra.mxu1 %v10345_v47  ;;  %9704 = vmatprep.subr.bf16.mxu0 %v10385_v49  ;;  %v10451_v47 = vld [vmem:[#allocation5 + $0x44] ss:$16 sps:$4 sm:$0xff]   ;;  %v10449_v49 = vld [vmem:[#allocation5 + $0x40] ss:$16 sps:$4 sm:$0xff]  }
 0x177   :  { %2264 = vmatprep.subr.bf16.mxu1 %v10350_v48  ;;  %v10406_v48 = vld [vmem:[#allocation2 + $0x2e0] ss:$20 sps:$4 sm:$0xff]  }
 0x179   :  { %9705 = vmatpush3.bf16.msra.mxu0 %v10386_v53  ;;  %v10413_v53 = vld [vmem:[#allocation2 + $0x470] ss:$20 sps:$4 sm:$0xff]  }
 0x17a   :  { %2265 = vmatpush1.bf16.msra.mxu1 %v10348_v50  ;;  %9706 = vmatprep.subr.bf16.mxu0 %v10390_v54  ;;  %v10457_v50 = vld [vmem:[#allocation5 + $0x64] ss:$16 sps:$4 sm:$0xff]   ;;  %v10455_v54 = vld [vmem:[#allocation5 + $0x60] ss:$16 sps:$4 sm:$0xff]  }
 0x17b   :  { %2266 = vmatprep.subr.bf16.mxu1 %v10353_v51  ;;  %v10410_v51 = vld [vmem:[#allocation2 + $0x308] ss:$20 sps:$4 sm:$0xff]  }
 0x17d   :  { %9707 = vmatpush3.bf16.msra.mxu0 %v10391_v57  ;;  %v10469_v57 = vld [vmem:[#allocation5 + $0xa4] ss:$16 sps:$4 sm:$0xff]  }
 0x17e   :  { %2267 = vmatpush1.bf16.msra.mxu1 %v10351_v55  ;;  %9708 = vmatprep.subr.bf16.mxu0 %v10395_v58  ;;  %v10414_v55 = vld [vmem:[#allocation2 + $0x330] ss:$20 sps:$4 sm:$0xff]   ;;  %v10418_v58 = vld [vmem:[#allocation2 + $0x358] ss:$20 sps:$4 sm:$0xff]  }
 0x17f   :  { %2268 = vmatprep.subr.bf16.mxu1 %v10356_v56  ;;  %v10461_v56 = vld [vmem:[#allocation5 + $0x80] ss:$16 sps:$4 sm:$0xff]  }
 0x181   :  { %9709 = vmatpush3.bf16.msra.mxu0 %v10396_v61  ;;  %v10467_v61 = vld [vmem:[#allocation5 + $0xa0] ss:$16 sps:$4 sm:$0xff]  }
 0x182   :  { %2269 = vmatpush1.bf16.msra.mxu1 %v10354_v59  ;;  %9738 = vmatprep.subr.bf16.mxu0 %v10399_v62  ;;  %v10421_v59 = vld [vmem:[#allocation2 + $0x4c0] ss:$20 sps:$4 sm:$0xff]   ;;  %v10425_v62 = vld [vmem:[#allocation2 + $0x4e8] ss:$20 sps:$4 sm:$0xff]  }
 0x183   :  { %2279 = vmatprep.subr.bf16.mxu1 %v10359_v60  ;;  %v10422_v60 = vld [vmem:[#allocation2 + $0x380] ss:$20 sps:$4 sm:$0xff]  }
 0x184   :  { %2353 = vmatmul.mubr.bf16.vlgmr.msra.gmra.mrb[4].mxu0 %v11994_v10  ;;  %v10411_v10 = vld [vmem:[#allocation2 + $0x6c8] ss:$20 sps:$4 sm:$0xff]  }
 0x185   :  { %2271 = vmatmul.mubr.bf16.vlgmr.msra.gmra.mrb[4].mxu1 %v12022_v29  ;;  %9739 = vmatpush3.bf16.msra.mxu0 %v10400_v2  ;;  %v10426_v2 = vld [vmem:[#allocation2 + $0x3a8] ss:$20 sps:$4 sm:$0xff]  }
 0x186   :  { %2280 = vmatpush1.bf16.msra.mxu1 %v10357_v63  ;;  %2311 = vmatprep.mubr.bf16.mxu1 %v11784_v0  ;;  %v10475_v63 = vld [vmem:[#allocation5 + $0xc4] ss:$16 sps:$4 sm:$0xff]  }
 0x187   :  { %2281 = vmatprep.subr.bf16.mxu1 %v10364_v1  ;;  %9740 = vmatprep.subr.bf16.mxu0 %v10403_v3  ;;  %v10473_v1 = vld [vmem:[#allocation5 + $0xc0] ss:$16 sps:$4 sm:$0xff]   ;;  %v10481_v3 = vld [vmem:[#allocation5 + $0xe4] ss:$16 sps:$4 sm:$0xff]  }
 0x188   :  { %2432 = vmatprep.mubr.bf16.mxu0 %v12013_v23  ;;  %v10416_v23 = vld [vmem:[#allocation2 + $0x5b0] ss:$20 sps:$4 sm:$0xff]  }
 0x189   :  { %9741 = vmatpush3.bf16.msra.mxu0 %v10404_v6  ;;  %v10487_v6 = vld [vmem:[#allocation5 + $0x104] ss:$16 sps:$4 sm:$0xff]  }
 0x18a   :  { %2282 = vmatpush1.bf16.msra.mxu1 %v10362_v4  ;;  %9742 = vmatprep.subr.bf16.mxu0 %v10407_v7  ;;  %v10479_v4 = vld [vmem:[#allocation5 + $0xe0] ss:$16 sps:$4 sm:$0xff]   ;;  %v11785_v7 = vmov 0.0  }
 0x18b   :  { %2283 = vmatprep.subr.bf16.mxu1 %v10369_v5  ;;  %v10429_v5 = vld [vmem:[#allocation2 + $0x790] ss:$20 sps:$4 sm:$0xff]  }
 0x18d   :  { %9743 = vmatpush3.bf16.msra.mxu0 %v10408_v11  ;;  %v10493_v11 = vld [vmem:[#allocation5 + $0x124] ss:$16 sps:$4 sm:$0xff]  }
 0x18e   :  { %2284 = vmatpush1.bf16.msra.mxu1 %v10367_v8  ;;  %9744 = vmatprep.subr.bf16.mxu0 %v10411_v10  ;;  %v10485_v8 = vld [vmem:[#allocation5 + $0x100] ss:$16 sps:$4 sm:$0xff]  }
 0x18f   :  { %2285 = vmatprep.subr.bf16.mxu1 %v10374_v9  ;;  %v10430_v9 = vld [vmem:[#allocation2 + $0x7b8] ss:$20 sps:$4 sm:$0xff]   ;;  %v10491_v10 = vld [vmem:[#allocation5 + $0x120] ss:$16 sps:$4 sm:$0xff]  }
 0x191   :  { %9745 = vmatpush3.bf16.msra.mxu0 %v10412_v14  ;;  %v10432_v14 = vld [vmem:[#allocation2 + $0x808] ss:$20 sps:$4 sm:$0xff]  }
 0x192   :  { %2286 = vmatpush1.bf16.msra.mxu1 %v10372_v12  ;;  %9746 = vmatprep.subr.bf16.mxu0 %v10415_v15  ;;  %v10431_v12 = vld [vmem:[#allocation2 + $0x7e0] ss:$20 sps:$4 sm:$0xff]  }
 0x193   :  { %2287 = vmatprep.subr.bf16.mxu1 %v10379_v13  ;;  %v10499_v13 = vld [vmem:[#allocation5 + $0x144] ss:$16 sps:$4 sm:$0xff]  }
 0x194   :  { %v10505_v15 = vld [vmem:[#allocation5 + $0x164] ss:$16 sps:$4 sm:$0xff]  }
 0x195   :  { %9747 = vmatpush3.bf16.msra.mxu0 %v10416_v23  ;;  %v10511_v23 = vld [vmem:[#allocation5 + $0x184] ss:$16 sps:$4 sm:$0xff]  }
 0x196   :  { %2288 = vmatpush1.bf16.msra.mxu1 %v10377_v16  ;;  %9748 = vmatprep.subr.bf16.mxu0 %v10419_v19  ;;  %v10503_v16 = vld [vmem:[#allocation5 + $0x160] ss:$16 sps:$4 sm:$0xff]  }
 0x197   :  { %2289 = vmatprep.subr.bf16.mxu1 %v10384_v17  ;;  %v10433_v17 = vld [vmem:[#allocation2 + $0x830] ss:$20 sps:$4 sm:$0xff]  }
 0x198   :  { %v12030_v25 = vpop.f32.mrb[0].mxu1  ;;  %v10509_v19 = vld [vmem:[#allocation5 + $0x180] ss:$16 sps:$4 sm:$0xff]  }
 0x199   :  { %v12032_v27 = vpop.f32.mrb[1].mxu1  ;;  %9749 = vmatpush3.bf16.msra.mxu0 %v10420_v22  ;;  %v10515_v22 = vld [vmem:[#allocation5 + $0x1a0] ss:$16 sps:$4 sm:$0xff]  }
 0x19a   :  { %v2153_v30 = vpop.f32.mrb[2].mxu1  ;;  %2290 = vmatpush1.bf16.msra.mxu1 %v10382_v20  ;;  %9750 = vmatprep.subr.bf16.mxu0 %v10423_v24  ;;  %v10434_v20 = vld [vmem:[#allocation2 + $0x858] ss:$20 sps:$4 sm:$0xff]   ;;  %v10435_v24 = vld [vmem:[#allocation2 + $0x880] ss:$20 sps:$4 sm:$0xff]  }
 0x19b   :  { %v2154_v32 = vpop.f32.mrb[3].mxu1  ;;  %2291 = vmatprep.subr.bf16.mxu1 %v10389_v21  ;;  %v10517_v21 = vld [vmem:[#allocation5 + $0x1a4] ss:$16 sps:$4 sm:$0xff]   ;;  %v10521_v30 = vld [vmem:[#allocation5 + $0x1c0] ss:$16 sps:$4 sm:$0xff]  }
 0x19c   :  { %v10529_v32 = vld [vmem:[#allocation5 + $0x1e4] ss:$16 sps:$4 sm:$0xff]  }
 0x19d   :  { %9751 = vmatpush3.bf16.msra.mxu0 %v10424_v31  ;;  %v10442_v31 = vld [vmem:[#allocation5 + $0xc] ss:$16 sps:$4 sm:$0xff]  }
 0x19e   :  { %2292 = vmatpush1.bf16.msra.mxu1 %v10387_v26  ;;  %9752 = vmatprep.subr.bf16.mxu0 %v10427_v33  ;;  %v10523_v26 = vld [vmem:[#allocation5 + $0x1c4] ss:$16 sps:$4 sm:$0xff]   ;;  %v10440_v33 = vld [vmem:[#allocation5 + $0x8] ss:$16 sps:$4 sm:$0xff]  }
 0x19f   :  { %2293 = vmatprep.subr.bf16.mxu1 %v10394_v28  ;;  %v10436_v28 = vld [vmem:[#allocation2 + $0x8a8] ss:$20 sps:$4 sm:$0xff]  }
 0x1a1   :  { %9753 = vmatpush3.bf16.msra.mxu0 %v10428_v38  ;;  %v10535_v38 = vld [vmem:[#allocation5 + $0x204] ss:$16 sps:$4 sm:$0xff]  }
 0x1a2   :  { %2294 = vmatpush1.bf16.msra.mxu1 %v10392_v34  ;;  %3473 = vmatprep.subr.bf16.mxu0 %v10439_v39  ;;  %v10527_v34 = vld [vmem:[#allocation5 + $0x1e0] ss:$16 sps:$4 sm:$0xff]   ;;  %v10446_v39 = vld [vmem:[#allocation5 + $0x28] ss:$16 sps:$4 sm:$0xff]  }
 0x1a3   :  { %9716 = vmatprep.subr.bf16.mxu1 %v10397_v35  ;;  %v10448_v35 = vld [vmem:[#allocation5 + $0x2c] ss:$16 sps:$4 sm:$0xff]  }
 0x1a4   :  { %2433 = vmatmul.mubr.bf16.vlgmr.msra.gmra.mrb[8].mxu0 %v12022_v29  ;;  %v10417_v29 = vld [vmem:[#allocation2 + $0x498] ss:$20 sps:$4 sm:$0xff]  }
 0x1a5   :  { %2312 = vmatmul.mubr.bf16.vlgmr.msra.gmra.mrb[4].mxu1 %v11981_v36  ;;  %3474 = vmatpush1.bf16.msra.mxu0 %v10437_v42  ;;  %v10460_v42 = vld [vmem:[#allocation5 + $0x6c] ss:$16 sps:$4 sm:$0xff]  }
 0x1a6   :  { %9717 = vmatpush3.bf16.msra.mxu1 %v10398_v40  ;;  %2392 = vmatprep.mubr.bf16.mxu1 %v12000_v37  ;;  %v10463_v37 = vld [vmem:[#allocation5 + $0x84] ss:$16 sps:$4 sm:$0xff]   ;;  %v10454_v40 = vld [vmem:[#allocation5 + $0x4c] ss:$16 sps:$4 sm:$0xff]  }
 0x1a7   :  { %9718 = vmatprep.subr.bf16.mxu1 %v10401_v41  ;;  %3475 = vmatprep.subr.bf16.mxu0 %v10445_v43  ;;  %v10452_v41 = vld [vmem:[#allocation5 + $0x48] ss:$16 sps:$4 sm:$0xff]  }
 0x1a8   :  { %v10458_v43 = vld [vmem:[#allocation5 + $0x68] ss:$16 sps:$4 sm:$0xff]  }
 0x1a9   :  { %3476 = vmatpush1.bf16.msra.mxu0 %v10443_v46  ;;  %v10472_v46 = vld [vmem:[#allocation5 + $0xac] ss:$16 sps:$4 sm:$0xff]  }
 0x1aa   :  { %9719 = vmatpush3.bf16.msra.mxu1 %v10402_v44  ;;  %3477 = vmatprep.subr.bf16.mxu0 %v10451_v47  ;;  %v10466_v44 = vld [vmem:[#allocation5 + $0x8c] ss:$16 sps:$4 sm:$0xff]   ;;  %v10470_v47 = vld [vmem:[#allocation5 + $0xa8] ss:$16 sps:$4 sm:$0xff]  }
 0x1ab   :  { %9720 = vmatprep.subr.bf16.mxu1 %v10405_v45  ;;  %v10464_v45 = vld [vmem:[#allocation5 + $0x88] ss:$16 sps:$4 sm:$0xff]  }
 0x1ad   :  { %3478 = vmatpush1.bf16.msra.mxu0 %v10449_v49  ;;  %v10482_v49 = vld [vmem:[#allocation5 + $0xe8] ss:$16 sps:$4 sm:$0xff]  }
 0x1ae   :  { %9721 = vmatpush3.bf16.msra.mxu1 %v10406_v48  ;;  %3479 = vmatprep.subr.bf16.mxu0 %v10457_v50  ;;  %v10478_v48 = vld [vmem:[#allocation5 + $0xcc] ss:$16 sps:$4 sm:$0xff]  }
 0x1af   :  { %9722 = vmatprep.subr.bf16.mxu1 %v10409_v52  ;;  %v10484_v52 = vld [vmem:[#allocation5 + $0xec] ss:$16 sps:$4 sm:$0xff]  }
 0x1b0   :  { %v10490_v50 = vld [vmem:[#allocation5 + $0x10c] ss:$16 sps:$4 sm:$0xff]  }
 0x1b1   :  { %3480 = vmatpush1.bf16.msra.mxu0 %v10455_v54  ;;  %v10494_v54 = vld [vmem:[#allocation5 + $0x128] ss:$16 sps:$4 sm:$0xff]  }
 0x1b2   :  { %9723 = vmatpush3.bf16.msra.mxu1 %v10410_v51  ;;  %3481 = vmatprep.subr.bf16.mxu0 %v10463_v37  ;;  %v10488_v51 = vld [vmem:[#allocation5 + $0x108] ss:$16 sps:$4 sm:$0xff]   ;;  %v10502_v37 = vld [vmem:[#allocation5 + $0x14c] ss:$16 sps:$4 sm:$0xff]  }
 0x1b3   :  { %9724 = vmatprep.subr.bf16.mxu1 %v10413_v53  ;;  %v10496_v53 = vld [vmem:[#allocation5 + $0x12c] ss:$16 sps:$4 sm:$0xff]  }
 0x1b5   :  { %3482 = vmatpush1.bf16.msra.mxu0 %v10461_v56  ;;  %v10506_v56 = vld [vmem:[#allocation5 + $0x168] ss:$16 sps:$4 sm:$0xff]  }
 0x1b6   :  { %9725 = vmatpush3.bf16.msra.mxu1 %v10414_v55  ;;  %3483 = vmatprep.subr.bf16.mxu0 %v10469_v57  ;;  %v10500_v55 = vld [vmem:[#allocation5 + $0x148] ss:$16 sps:$4 sm:$0xff]   ;;  %v10514_v57 = vld [vmem:[#allocation5 + $0x18c] ss:$16 sps:$4 sm:$0xff]  }
 0x1b7   :  { %9726 = vmatprep.subr.bf16.mxu1 %v10417_v29  ;;  %v10508_v29 = vld [vmem:[#allocation5 + $0x16c] ss:$16 sps:$4 sm:$0xff]  }
 0x1b9   :  { %3484 = vmatpush1.bf16.msra.mxu0 %v10467_v61  ;;  %v10526_v61 = vld [vmem:[#allocation5 + $0x1cc] ss:$16 sps:$4 sm:$0xff]  }
 0x1ba   :  { %9727 = vmatpush3.bf16.msra.mxu1 %v10418_v58  ;;  %3485 = vmatprep.subr.bf16.mxu0 %v10475_v63  ;;  %v10512_v58 = vld [vmem:[#allocation5 + $0x188] ss:$16 sps:$4 sm:$0xff]   ;;  %v10532_v63 = vld [vmem:[#allocation5 + $0x1ec] ss:$16 sps:$4 sm:$0xff]  }
 0x1bb   :  { %9728 = vmatprep.subr.bf16.mxu1 %v10421_v59  ;;  %v10520_v59 = vld [vmem:[#allocation5 + $0x1ac] ss:$16 sps:$4 sm:$0xff]  }
 0x1bd   :  { %3486 = vmatpush1.bf16.msra.mxu0 %v10473_v1  ;;  %v10530_v1 = vld [vmem:[#allocation5 + $0x1e8] ss:$16 sps:$4 sm:$0xff]  }
 0x1be   :  { %9729 = vmatpush3.bf16.msra.mxu1 %v10422_v60  ;;  %3487 = vmatprep.subr.bf16.mxu0 %v10481_v3  ;;  %v10518_v60 = vld [vmem:[#allocation5 + $0x1a8] ss:$16 sps:$4 sm:$0xff]   ;;  %v511_v3 = vlaneseq }
 0x1bf   :  { %9730 = vmatprep.subr.bf16.mxu1 %v10425_v62  ;;  %v10524_v62 = vld [vmem:[#allocation5 + $0x1c8] ss:$16 sps:$4 sm:$0xff]  }
 0x1c1   :  { %3488 = vmatpush1.bf16.msra.mxu0 %v10479_v4  ;;  %v507_v4 = vld [vmem:[#allocation16] ss:$8 sm:$0xf] }
 0x1c2   :  { %9731 = vmatpush3.bf16.msra.mxu1 %v10426_v2  ;;  %3489 = vmatprep.subr.bf16.mxu0 %v10487_v6  ;;  %v10538_v2 = vld [vmem:[#allocation5 + $0x20c] ss:$16 sps:$4 sm:$0xff]   ;;  %v12049_v6 = vshrl.u32 %v511_v3, 7  ;;  %v10587_v3 = vld [vmem:[#allocation5 + $0x320] ss:$16 sps:$4 sm:$0xff]  }
 0x1c3   :  { %9888 = vmatprep.subr.bf16.mxu1 %v11785_v7 }
 0x1c5   :  { %2393 = vmatmul.mubr.bf16.vlgmr.msra.gmra.mrb[8].mxu1 %v12008_v18  ;;  %3490 = vmatpush1.bf16.msra.mxu0 %v10485_v8  ;;  %v10497_v18 = vld [vmem:[#allocation5 + $0x140] ss:$16 sps:$4 sm:$0xff]  }
 0x1c6   :  { %9889 = vmatpush3.bf16.msra.mxu1 %v10429_v5  ;;  %9904 = vmatprep.mubr.msk.bf16.mxu1 %vm11786_vm0, %v11785_v7  ;;  %v508_v5 = vld [vmem:[#allocation16] ss:$8 sm:$0x10] }
 0x1c7   :  { %9890 = vmatprep.subr.bf16.mxu1 %v11785_v7  ;;  %3491 = vmatprep.subr.bf16.mxu0 %v10493_v11  ;;  %v12051_v8 = vor.u32 %v508_v5, %v507_v4  ;;  %v12057_v11 = vsub.s32 1, %v12049_v6  ;;  %v10590_v4 = vld [vmem:[#allocation5 + $0x328] ss:$16 sps:$4 sm:$0xff]   ;;  %v10595_v5 = vld [vmem:[#allocation5 + $0x344] ss:$16 sps:$4 sm:$0xff]  }
 0x1c9   :  { %3492 = vmatpush1.bf16.msra.mxu0 %v10491_v10 }
 0x1ca   :  { %9891 = vmatpush3.bf16.msra.mxu1 %v10430_v9  ;;  %3493 = vmatprep.subr.bf16.mxu0 %v10499_v13  ;;  %v12054_v9 = vsub.s32 0, %v12049_v6 }
 0x1cb   :  { %9892 = vmatprep.subr.bf16.mxu1 %v11785_v7 }
 0x1cc   :  { %v514_v10 = vrot.slane %v12051_v8, %v12054_v9 }
 0x1cd   :  { %3494 = vmatpush1.bf16.msra.mxu0 %v10497_v18 }
 0x1ce   :  { %9893 = vmatpush3.bf16.msra.mxu1 %v10431_v12  ;;  %3495 = vmatprep.subr.bf16.mxu0 %v10505_v15  ;;  %v518_v12 = vrot.slane %v12051_v8, %v12057_v11 }
 0x1cf   :  { %9894 = vmatprep.subr.bf16.mxu1 %v11785_v7 }
 0x1d1   :  { %3496 = vmatpush1.bf16.msra.mxu0 %v10503_v16 }
 0x1d2   :  { %9895 = vmatpush3.bf16.msra.mxu1 %v10432_v14  ;;  %3497 = vmatprep.subr.bf16.mxu0 %v10511_v23 }
 0x1d3   :  { %9896 = vmatprep.subr.bf16.mxu1 %v11785_v7 }
 0x1d5   :  { %3498 = vmatpush1.bf16.msra.mxu0 %v10509_v19 }
 0x1d6   :  { %9897 = vmatpush3.bf16.msra.mxu1 %v10433_v17  ;;  %3499 = vmatprep.subr.bf16.mxu0 %v10517_v21 }
 0x1d7   :  { %9898 = vmatprep.subr.bf16.mxu1 %v11785_v7 }
 0x1d9   :  { %3500 = vmatpush1.bf16.msra.mxu0 %v10515_v22  ;;  %v10533_v22 = vld [vmem:[#allocation5 + $0x200] ss:$16 sps:$4 sm:$0xff]  }
 0x1da   :  { %9899 = vmatpush3.bf16.msra.mxu1 %v10434_v20  ;;  %3501 = vmatprep.subr.bf16.mxu0 %v10523_v26 }
 0x1db   :  { %9900 = vmatprep.subr.bf16.mxu1 %v11785_v7 }
 0x1dd   :  { %3502 = vmatpush1.bf16.msra.mxu0 %v10521_v30  ;;  %v10544_v30 = vld [vmem:[#allocation5 + $0x22c] ss:$16 sps:$4 sm:$0xff]  }
 0x1de   :  { %9901 = vmatpush3.bf16.msra.mxu1 %v10435_v24  ;;  %3503 = vmatprep.subr.bf16.mxu0 %v10529_v32  ;;  %v10536_v24 = vld [vmem:[#allocation5 + $0x208] ss:$16 sps:$4 sm:$0xff]   ;;  %v10539_v32 = vld [vmem:[#allocation5 + $0x220] ss:$16 sps:$4 sm:$0xff]  }
 0x1df   :  { %9902 = vmatprep.subr.bf16.mxu1 %v11785_v7 }
 0x1e1   :  { %3504 = vmatpush1.bf16.msra.mxu0 %v10527_v34  ;;  %v10550_v34 = vld [vmem:[#allocation5 + $0x24c] ss:$16 sps:$4 sm:$0xff]  }
 0x1e2   :  { %9903 = vmatpush3.bf16.msra.mxu1 %v10436_v28  ;;  %3514 = vmatprep.subr.bf16.mxu0 %v10535_v38  ;;  %v10541_v28 = vld [vmem:[#allocation5 + $0x224] ss:$16 sps:$4 sm:$0xff]  }
 0x1e3   :  { %3596 = vmatprep.subr.bf16.mxu1 %v10442_v31  ;;  %v10553_v38 = vld [vmem:[#allocation5 + $0x264] ss:$16 sps:$4 sm:$0xff]  }
 0x1e5   :  { %9905 = vmatmul.mubr.bf16.vlgmr.msra.gmra.mrb[12].mxu1 %v11981_v36  ;;  %v10476_v36 = vld [vmem:[#allocation5 + $0xc8] ss:$16 sps:$4 sm:$0xff]  }
 0x1e6   :  { %3597 = vmatpush1.bf16.msra.mxu1 %v10440_v33  ;;  %v10542_v33 = vld [vmem:[#allocation5 + $0x228] ss:$16 sps:$4 sm:$0xff]  }
 0x1e7   :  { %3598 = vmatprep.subr.bf16.mxu1 %v10448_v35  ;;  %v10548_v35 = vld [vmem:[#allocation5 + $0x248] ss:$16 sps:$4 sm:$0xff]  }
 0x1ea   :  { %3599 = vmatpush1.bf16.msra.mxu1 %v10446_v39  ;;  %v10556_v39 = vld [vmem:[#allocation5 + $0x26c] ss:$16 sps:$4 sm:$0xff]  }
 0x1eb   :  { %3600 = vmatprep.subr.bf16.mxu1 %v10454_v40  ;;  %v10551_v40 = vld [vmem:[#allocation5 + $0x260] ss:$16 sps:$4 sm:$0xff]  }
 0x1ee   :  { %3601 = vmatpush1.bf16.msra.mxu1 %v10452_v41  ;;  %v10554_v41 = vld [vmem:[#allocation5 + $0x268] ss:$16 sps:$4 sm:$0xff]  }
 0x1ef   :  { %3602 = vmatprep.subr.bf16.mxu1 %v10460_v42  ;;  %v10559_v42 = vld [vmem:[#allocation5 + $0x284] ss:$16 sps:$4 sm:$0xff]  }
 0x1f2   :  { %3603 = vmatpush1.bf16.msra.mxu1 %v10458_v43  ;;  %v10562_v43 = vld [vmem:[#allocation5 + $0x28c] ss:$16 sps:$4 sm:$0xff]  }
 0x1f3   :  { %3604 = vmatprep.subr.bf16.mxu1 %v10466_v44  ;;  %v10557_v44 = vld [vmem:[#allocation5 + $0x280] ss:$16 sps:$4 sm:$0xff]  }
 0x1f6   :  { %3605 = vmatpush1.bf16.msra.mxu1 %v10464_v45  ;;  %v10560_v45 = vld [vmem:[#allocation5 + $0x288] ss:$16 sps:$4 sm:$0xff]  }
 0x1f7   :  { %3606 = vmatprep.subr.bf16.mxu1 %v10472_v46  ;;  %v10565_v46 = vld [vmem:[#allocation5 + $0x2a4] ss:$16 sps:$4 sm:$0xff]  }
 0x1fa   :  { %3607 = vmatpush1.bf16.msra.mxu1 %v10470_v47  ;;  %v10568_v47 = vld [vmem:[#allocation5 + $0x2ac] ss:$16 sps:$4 sm:$0xff]  }
 0x1fb   :  { %3608 = vmatprep.subr.bf16.mxu1 %v10478_v48  ;;  %v10563_v48 = vld [vmem:[#allocation5 + $0x2a0] ss:$16 sps:$4 sm:$0xff]  }
 0x1fe   :  { %3609 = vmatpush1.bf16.msra.mxu1 %v10476_v36  ;;  %v10566_v36 = vld [vmem:[#allocation5 + $0x2a8] ss:$16 sps:$4 sm:$0xff]  }
 0x1ff   :  { %3610 = vmatprep.subr.bf16.mxu1 %v10484_v52  ;;  %v10571_v52 = vld [vmem:[#allocation5 + $0x2c4] ss:$16 sps:$4 sm:$0xff]  }
 0x202   :  { %3611 = vmatpush1.bf16.msra.mxu1 %v10482_v49  ;;  %v10574_v49 = vld [vmem:[#allocation5 + $0x2cc] ss:$16 sps:$4 sm:$0xff]  }
 0x203   :  { %3612 = vmatprep.subr.bf16.mxu1 %v10490_v50  ;;  %v10569_v50 = vld [vmem:[#allocation5 + $0x2c0] ss:$16 sps:$4 sm:$0xff]  }
 0x206   :  { %3613 = vmatpush1.bf16.msra.mxu1 %v10488_v51  ;;  %v10572_v51 = vld [vmem:[#allocation5 + $0x2c8] ss:$16 sps:$4 sm:$0xff]  }
 0x207   :  { %3614 = vmatprep.subr.bf16.mxu1 %v10496_v53  ;;  %v10577_v53 = vld [vmem:[#allocation5 + $0x2e4] ss:$16 sps:$4 sm:$0xff]  }
 0x20a   :  { %3615 = vmatpush1.bf16.msra.mxu1 %v10494_v54  ;;  %v10580_v54 = vld [vmem:[#allocation5 + $0x2ec] ss:$16 sps:$4 sm:$0xff]  }
 0x20b   :  { %3616 = vmatprep.subr.bf16.mxu1 %v10502_v37 }
 0x20e   :  { %3617 = vmatpush1.bf16.msra.mxu1 %v10500_v55 }
 0x20f   :  { %3618 = vmatprep.subr.bf16.mxu1 %v10508_v29  ;;  %v10575_v29 = vld [vmem:[#allocation5 + $0x2e0] ss:$16 sps:$4 sm:$0xff]  }
 0x212   :  { %3619 = vmatpush1.bf16.msra.mxu1 %v10506_v56  ;;  %v10578_v56 = vld [vmem:[#allocation5 + $0x2e8] ss:$16 sps:$4 sm:$0xff]  }
 0x213   :  { %3620 = vmatprep.subr.bf16.mxu1 %v10514_v57 }
 0x216   :  { %3621 = vmatpush1.bf16.msra.mxu1 %v10512_v58 }
 0x217   :  { %3622 = vmatprep.subr.bf16.mxu1 %v10520_v59 }
 0x21a   :  { %3623 = vmatpush1.bf16.msra.mxu1 %v10518_v60  ;;  %v10583_v60 = vld [vmem:[#allocation5 + $0x304] ss:$16 sps:$4 sm:$0xff]  }
 0x21b   :  { %3624 = vmatprep.subr.bf16.mxu1 %v10526_v61  ;;  %v10586_v61 = vld [vmem:[#allocation5 + $0x30c] ss:$16 sps:$4 sm:$0xff]  }
 0x21e   :  { %3625 = vmatpush1.bf16.msra.mxu1 %v10524_v62  ;;  %v10581_v62 = vld [vmem:[#allocation5 + $0x300] ss:$16 sps:$4 sm:$0xff]  }
 0x21f   :  { %3626 = vmatprep.subr.bf16.mxu1 %v10532_v63  ;;  %v10584_v63 = vld [vmem:[#allocation5 + $0x308] ss:$16 sps:$4 sm:$0xff]  }
 0x222   :  { %3627 = vmatpush1.bf16.msra.mxu1 %v10530_v1  ;;  %v10589_v1 = vld [vmem:[#allocation5 + $0x324] ss:$16 sps:$4 sm:$0xff]  }
 0x223   :  { %3637 = vmatprep.subr.bf16.mxu1 %v10538_v2  ;;  %v10592_v2 = vld [vmem:[#allocation5 + $0x32c] ss:$16 sps:$4 sm:$0xff]  }
 0x237   :  { %v2108_v13 = vpop.f32.mrb[0].mxu0 }
 0x238   :  { %v9928_v18 = vadd.f32 %v2108_v13, %v514_v10  ;;  %v2110_v14 = vpop.f32.mrb[1].mxu0  ;;  %v10598_v10 = vld [vmem:[#allocation5 + $0x34c] ss:$16 sps:$4 sm:$0xff]   ;;  %v10596_v13 = vld [vmem:[#allocation5 + $0x348] ss:$16 sps:$4 sm:$0xff]  }
 0x239   :  { %v9930_v15 = vadd.f32 %v2110_v14, %v518_v12  ;;  %v2112_v16 = vpop.f32.mrb[2].mxu0  ;;  %v10593_v12 = vld [vmem:[#allocation5 + $0x340] ss:$16 sps:$4 sm:$0xff]   ;;  %v10604_v14 = vld [vmem:[#allocation5 + $0x36c] ss:$16 sps:$4 sm:$0xff]  }
 0x23a   :  { %v9929_v17 = vadd.f32 %v9928_v18, %v12030_v25  ;;  %v2113_v23 = vpop.f32.mrb[3].mxu0  ;;  %v10547_v25 = vld [vmem:[#allocation5 + $0x244] ss:$16 sps:$4 sm:$0xff]   ;;  %v10602_v16 = vld [vmem:[#allocation5 + $0x368] ss:$16 sps:$4 sm:$0xff]  }
 0x23b   :  { %v9931_v19 = vadd.f32 %v9930_v15, %v12032_v27  ;;  %v10545_v27 = vld [vmem:[#allocation5 + $0x240] ss:$16 sps:$4 sm:$0xff]   ;;  %v10601_v18 = vld [vmem:[#allocation5 + $0x364] ss:$16 sps:$4 sm:$0xff]   ;;  %v10610_v23 = vld [vmem:[#allocation5 + $0x38c] ss:$16 sps:$4 sm:$0xff]  }
 0x23c   :  { %v2480_v20 = vmax.f32 %v9929_v17, 0.0  ;;  %v10599_v15 = vld [vmem:[#allocation5 + $0x360] ss:$16 sps:$4 sm:$0xff]   ;;  %v10607_v17 = vld [vmem:[#allocation5 + $0x384] ss:$16 sps:$4 sm:$0xff]  }
 0x23d   :  { %v2481_v21 = vmax.f32 %v9931_v19, 0.0  ;;  %v10605_v19 = vld [vmem:[#allocation5 + $0x380] ss:$16 sps:$4 sm:$0xff]  }
 0x23e   :  { %v2485_v31 = vpack.c.bf16 %v2480_v20, %v2480_v20  ;;  %v10608_v20 = vld [vmem:[#allocation5 + $0x388] ss:$16 sps:$4 sm:$0xff]  }
 0x23f   :  { %v2486_v26 = vpack.c.bf16 %v2481_v21, %v2481_v21  ;;  %v10613_v21 = vld [vmem:[#allocation5 + $0x3a4] ss:$16 sps:$4 sm:$0xff]  }
 0x241   :  { %3505 = vmatprep.mubr.bf16.mxu0 %v2486_v26  ;;  %3628 = vmatprep.mubr.bf16.mxu1 %v2486_v26  ;;  %v10611_v26 = vld [vmem:[#allocation5 + $0x3a0] ss:$16 sps:$4 sm:$0xff]  }
 0x242   :  { %3506 = vmatmul.mubr.bf16.vlgmr.msra.gmra.mrb[12].mxu0 %v2485_v31  ;;  %3629 = vmatmul.mubr.bf16.vlgmr.msra.gmra.mrb[16].mxu1 %v2485_v31  ;;  %v10619_v31 = vld [vmem:[#allocation5 + $0x3c4] ss:$16 sps:$4 sm:$0xff]  }
 0x243   :  { %3515 = vmatpush1.bf16.msra.mxu0 %v10533_v22  ;;  %3638 = vmatpush1.bf16.msra.mxu1 %v10536_v24  ;;  %v10616_v22 = vld [vmem:[#allocation5 + $0x3ac] ss:$16 sps:$4 sm:$0xff]   ;;  %v12068_v24 = vsub.s32 2, %v12049_v6 }
 0x244   :  { %3516 = vmatprep.subr.bf16.mxu0 %v10541_v28  ;;  %3639 = vmatprep.subr.bf16.mxu1 %v10544_v30  ;;  %v10614_v28 = vld [vmem:[#allocation5 + $0x3a8] ss:$16 sps:$4 sm:$0xff]   ;;  %v12071_v30 = vsub.s32 3, %v12049_v6 }
 0x247   :  { %3517 = vmatpush1.bf16.msra.mxu0 %v10539_v32  ;;  %3640 = vmatpush1.bf16.msra.mxu1 %v10542_v33  ;;  %v10622_v32 = vld [vmem:[#allocation5 + $0x3cc] ss:$16 sps:$4 sm:$0xff]   ;;  %v522_v33 = vrot.slane %v12051_v8, %v12068_v24 }
 0x248   :  { %3518 = vmatprep.subr.bf16.mxu0 %v10547_v25  ;;  %3641 = vmatprep.subr.bf16.mxu1 %v10550_v34  ;;  %v526_v25 = vrot.slane %v12051_v8, %v12071_v30  ;;  %v10617_v34 = vld [vmem:[#allocation5 + $0x3c0] ss:$16 sps:$4 sm:$0xff]  }
 0x24b   :  { %3519 = vmatpush1.bf16.msra.mxu0 %v10545_v27  ;;  %3642 = vmatpush1.bf16.msra.mxu1 %v10548_v35  ;;  %v10620_v27 = vld [vmem:[#allocation5 + $0x3c8] ss:$16 sps:$4 sm:$0xff]   ;;  %v10625_v35 = vld [vmem:[#allocation5 + $0x3e4] ss:$16 sps:$4 sm:$0xff]  }
 0x24c   :  { %3520 = vmatprep.subr.bf16.mxu0 %v10553_v38  ;;  %3643 = vmatprep.subr.bf16.mxu1 %v10556_v39  ;;  %v10628_v38 = vld [vmem:[#allocation5 + $0x3ec] ss:$16 sps:$4 sm:$0xff]  }
 0x24f   :  { %3521 = vmatpush1.bf16.msra.mxu0 %v10551_v40  ;;  %3644 = vmatpush1.bf16.msra.mxu1 %v10554_v41 }
 0x250   :  { %3522 = vmatprep.subr.bf16.mxu0 %v10559_v42  ;;  %3645 = vmatprep.subr.bf16.mxu1 %v10562_v43 }
 0x253   :  { %3523 = vmatpush1.bf16.msra.mxu0 %v10557_v44  ;;  %3646 = vmatpush1.bf16.msra.mxu1 %v10560_v45  ;;  %v10623_v44 = vld [vmem:[#allocation5 + $0x3e0] ss:$16 sps:$4 sm:$0xff]   ;;  %v10626_v45 = vld [vmem:[#allocation5 + $0x3e8] ss:$16 sps:$4 sm:$0xff]  }
 0x254   :  { %3524 = vmatprep.subr.bf16.mxu0 %v10565_v46  ;;  %3647 = vmatprep.subr.bf16.mxu1 %v10568_v47 }
 0x257   :  { %3525 = vmatpush1.bf16.msra.mxu0 %v10563_v48  ;;  %3648 = vmatpush1.bf16.msra.mxu1 %v10566_v36  ;;  %v9710_v37 = vpop.f32.mrb[4].mxu0 }
 0x258   :  { %3526 = vmatprep.subr.bf16.mxu0 %v10571_v52  ;;  %3649 = vmatprep.subr.bf16.mxu1 %v10574_v49  ;;  %v9711_v55 = vpop.f32.mrb[5].mxu0  ;;  %v10631_v49 = vld [vmem:[#allocation5 + $0x404] ss:$16 sps:$4 sm:$0xff]  }
 0x259   :  { %v12065_v57 = vadd.f32 %v9711_v55, %v9710_v37  ;;  %v9713_v58 = vpop.f32.mrb[6].mxu0  ;;  %v10629_v55 = vld [vmem:[#allocation5 + $0x400] ss:$16 sps:$4 sm:$0xff]  }
 0x25a   :  { %v9714_v59 = vpop.f32.mrb[7].mxu0  ;;  %v10640_v58 = vld [vmem:[#allocation5 + $0x42c] ss:$16 sps:$4 sm:$0xff]  }
 0x25b   :  { %3527 = vmatpush1.bf16.msra.mxu0 %v10569_v50  ;;  %3650 = vmatpush1.bf16.msra.mxu1 %v10572_v51  ;;  %v10634_v50 = vld [vmem:[#allocation5 + $0x40c] ss:$16 sps:$4 sm:$0xff]  }
 0x25c   :  { %3528 = vmatprep.subr.bf16.mxu0 %v10577_v53  ;;  %3651 = vmatprep.subr.bf16.mxu1 %v10580_v54 }
 0x25f   :  { %3529 = vmatpush1.bf16.msra.mxu0 %v10575_v29  ;;  %3652 = vmatpush1.bf16.msra.mxu1 %v10578_v56  ;;  %v10632_v29 = vld [vmem:[#allocation5 + $0x408] ss:$16 sps:$4 sm:$0xff]   ;;  %v10637_v56 = vld [vmem:[#allocation5 + $0x424] ss:$16 sps:$4 sm:$0xff]  }
 0x260   :  { %3530 = vmatprep.subr.bf16.mxu0 %v10583_v60  ;;  %3653 = vmatprep.subr.bf16.mxu1 %v10586_v61  ;;  %v10635_v60 = vld [vmem:[#allocation5 + $0x420] ss:$16 sps:$4 sm:$0xff]   ;;  %v10638_v61 = vld [vmem:[#allocation5 + $0x428] ss:$16 sps:$4 sm:$0xff]  }
 0x263   :  { %3531 = vmatpush1.bf16.msra.mxu0 %v10581_v62  ;;  %3654 = vmatpush1.bf16.msra.mxu1 %v10584_v63  ;;  %v10643_v62 = vld [vmem:[#allocation5 + $0x444] ss:$16 sps:$4 sm:$0xff]   ;;  %v10646_v63 = vld [vmem:[#allocation5 + $0x44c] ss:$16 sps:$4 sm:$0xff]  }
 0x264   :  { %3532 = vmatprep.subr.bf16.mxu0 %v10589_v1  ;;  %3655 = vmatprep.subr.bf16.mxu1 %v10592_v2  ;;  %v10641_v1 = vld [vmem:[#allocation5 + $0x440] ss:$16 sps:$4 sm:$0xff]   ;;  %v10644_v2 = vld [vmem:[#allocation5 + $0x448] ss:$16 sps:$4 sm:$0xff]  }
 0x267   :  { %3533 = vmatpush1.bf16.msra.mxu0 %v10587_v3  ;;  %3656 = vmatpush1.bf16.msra.mxu1 %v10590_v4  ;;  %v10649_v3 = vld [vmem:[#allocation5 + $0x464] ss:$16 sps:$4 sm:$0xff]   ;;  %v10652_v4 = vld [vmem:[#allocation5 + $0x46c] ss:$16 sps:$4 sm:$0xff]  }
 0x268   :  { %3534 = vmatprep.subr.bf16.mxu0 %v10595_v5  ;;  %3657 = vmatprep.subr.bf16.mxu1 %v10598_v10  ;;  %v10647_v5 = vld [vmem:[#allocation5 + $0x460] ss:$16 sps:$4 sm:$0xff]   ;;  %v10650_v10 = vld [vmem:[#allocation5 + $0x468] ss:$16 sps:$4 sm:$0xff]  }
 0x26b   :  { %3535 = vmatpush1.bf16.msra.mxu0 %v10593_v12  ;;  %3658 = vmatpush1.bf16.msra.mxu1 %v10596_v13  ;;  %v10655_v12 = vld [vmem:[#allocation5 + $0x484] ss:$16 sps:$4 sm:$0xff]   ;;  %v10658_v13 = vld [vmem:[#allocation5 + $0x48c] ss:$16 sps:$4 sm:$0xff]  }
 0x26c   :  { %3536 = vmatprep.subr.bf16.mxu0 %v10601_v18  ;;  %3659 = vmatprep.subr.bf16.mxu1 %v10604_v14  ;;  %v10653_v18 = vld [vmem:[#allocation5 + $0x480] ss:$16 sps:$4 sm:$0xff]   ;;  %v10656_v14 = vld [vmem:[#allocation5 + $0x488] ss:$16 sps:$4 sm:$0xff]  }
 0x26f   :  { %3537 = vmatpush1.bf16.msra.mxu0 %v10599_v15  ;;  %3660 = vmatpush1.bf16.msra.mxu1 %v10602_v16  ;;  %v10661_v15 = vld [vmem:[#allocation5 + $0x4a4] ss:$16 sps:$4 sm:$0xff]   ;;  %v10664_v16 = vld [vmem:[#allocation5 + $0x4ac] ss:$16 sps:$4 sm:$0xff]  }
 0x270   :  { %3538 = vmatprep.subr.bf16.mxu0 %v10607_v17  ;;  %3661 = vmatprep.subr.bf16.mxu1 %v10610_v23  ;;  %v12082_v17 = vsub.s32 4, %v12049_v6  ;;  %v10659_v23 = vld [vmem:[#allocation5 + $0x4a0] ss:$16 sps:$4 sm:$0xff]  }
 0x273   :  { %3539 = vmatpush1.bf16.msra.mxu0 %v10605_v19  ;;  %3662 = vmatpush1.bf16.msra.mxu1 %v10608_v20  ;;  %v10662_v19 = vld [vmem:[#allocation5 + $0x4a8] ss:$16 sps:$4 sm:$0xff]   ;;  %v10667_v20 = vld [vmem:[#allocation5 + $0x4c4] ss:$16 sps:$4 sm:$0xff]  }
 0x274   :  { %3540 = vmatprep.subr.bf16.mxu0 %v10613_v21  ;;  %3663 = vmatprep.subr.bf16.mxu1 %v10616_v22  ;;  %v10670_v21 = vld [vmem:[#allocation5 + $0x4cc] ss:$16 sps:$4 sm:$0xff]   ;;  %v530_v22 = vrot.slane %v12051_v8, %v12082_v17 }
 0x277   :  { %3541 = vmatpush1.bf16.msra.mxu0 %v10611_v26  ;;  %3664 = vmatpush1.bf16.msra.mxu1 %v10614_v28  ;;  %v9754_v46 = vpop.f32.mrb[8].mxu0  ;;  %v10665_v26 = vld [vmem:[#allocation5 + $0x4c0] ss:$16 sps:$4 sm:$0xff]   ;;  %v10668_v28 = vld [vmem:[#allocation5 + $0x4c8] ss:$16 sps:$4 sm:$0xff]  }
 0x278   :  { %v2313_v39 = vpop.f32.mrb[4].mxu1  ;;  %3542 = vmatprep.subr.bf16.mxu0 %v10619_v31  ;;  %3665 = vmatprep.subr.bf16.mxu1 %v10622_v32  ;;  %v9755_v48 = vpop.f32.mrb[9].mxu0  ;;  %v10673_v31 = vld [vmem:[#allocation5 + $0x4e4] ss:$16 sps:$4 sm:$0xff]   ;;  %v10676_v32 = vld [vmem:[#allocation5 + $0x4ec] ss:$16 sps:$4 sm:$0xff]  }
 0x279   :  { %v9932_v40 = vadd.f32 %v2313_v39, %v522_v33  ;;  %v2315_v41 = vpop.f32.mrb[5].mxu1  ;;  %v12077_v52 = vadd.f32 %v9755_v48, %v9754_v46  ;;  %v9757_v51 = vpop.f32.mrb[10].mxu0  ;;  %v10674_v39 = vld [vmem:[#allocation5 + $0x4e8] ss:$16 sps:$4 sm:$0xff]  }
 0x27a   :  { %v9933_v42 = vadd.f32 %v2315_v41, %v526_v25  ;;  %v2317_v43 = vpop.f32.mrb[6].mxu1  ;;  %v9758_v54 = vpop.f32.mrb[11].mxu0  ;;  %v10679_v41 = vld [vmem:[#allocation7 + $0x4] ss:$8 sps:$4 sm:$0xff]   ;;  %v10677_v46 = vld [vmem:[#allocation7] ss:$8 sps:$4 sm:$0xff]  }
 0x27b   :  { %v2318_v47 = vpop.f32.mrb[7].mxu1  ;;  %3543 = vmatpush1.bf16.msra.mxu0 %v10617_v34  ;;  %3666 = vmatpush1.bf16.msra.mxu1 %v10620_v27  ;;  %v2482_v53 = vmax.f32 %v9932_v40, 0.0  ;;  %v2355_v34 = vadd.f32 %v12065_v57, %v530_v22  ;;  %v10685_v51 = vld [vmem:[#allocation7 + $0x24] ss:$8 sps:$4 sm:$0xff]   ;;  %v10686_v54 = vld [vmem:[#allocation7 + $0x30] ss:$8 sps:$4 sm:$0xff]  }
 0x27c   :  { %v2483_v36 = vmax.f32 %v9933_v42, 0.0  ;;  %3544 = vmatprep.subr.bf16.mxu0 %v10625_v35  ;;  %3667 = vmatprep.subr.bf16.mxu1 %v10628_v38  ;;  %v10671_v38 = vld [vmem:[#allocation5 + $0x4e0] ss:$16 sps:$4 sm:$0xff]  }
 0x27d   :  { %v2487_v59 = vpack.c.bf16 %v2482_v53, %v2482_v53  ;;  %v10683_v53 = vld [vmem:[#allocation7 + $0x20] ss:$8 sps:$4 sm:$0xff]  }
 0x27e   :  { %v2488_v37 = vpack.c.bf16 %v2483_v36, %v2483_v36  ;;  %v10682_v36 = vld [vmem:[#allocation7 + $0x14] ss:$8 sps:$4 sm:$0xff]   ;;  %v10774_v22 = vld [vmem:[#allocation8] sm:$0xff]  }
 0x27f   :  { %3545 = vmatpush1.bf16.msra.mxu0 %v10623_v44  ;;  %3668 = vmatpush1.bf16.msra.mxu1 %v10626_v45 }
 0x280   :  { %3546 = vmatprep.mubr.bf16.mxu0 %v2488_v37  ;;  %3669 = vmatprep.mubr.bf16.mxu1 %v2488_v37  ;;  %v10691_v37 = vld [vmem:[#allocation7 + $0x44] ss:$8 sps:$4 sm:$0xff]  }
 0x281   :  { %3555 = vmatprep.subr.bf16.mxu0 %v10631_v49  ;;  %3678 = vmatprep.subr.bf16.mxu1 %v10634_v50  ;;  %v10680_v50 = vld [vmem:[#allocation7 + $0x10] ss:$8 sps:$4 sm:$0xff]  }
 0x282   :  { %3547 = vmatmul.mubr.bf16.vlgmr.msra.gmra.mrb[12].mxu0 %v2487_v59  ;;  %3670 = vmatmul.mubr.bf16.vlgmr.msra.gmra.mrb[16].mxu1 %v2487_v59  ;;  %v10695_v59 = vld [vmem:[#allocation7 + $0x60] ss:$8 sps:$4 sm:$0xff]  }
 0x283   :  { %3556 = vmatpush1.bf16.msra.mxu0 %v10629_v55  ;;  %3679 = vmatpush1.bf16.msra.mxu1 %v10632_v29  ;;  %v10689_v55 = vld [vmem:[#allocation7 + $0x40] ss:$8 sps:$4 sm:$0xff]   ;;  %v10694_v29 = vld [vmem:[#allocation7 + $0x54] ss:$8 sps:$4 sm:$0xff]  }
 0x284   :  { %3557 = vmatprep.subr.bf16.mxu0 %v10637_v56  ;;  %3680 = vmatprep.subr.bf16.mxu1 %v10640_v58  ;;  %v10692_v56 = vld [vmem:[#allocation7 + $0x50] ss:$8 sps:$4 sm:$0xff]   ;;  %v10697_v58 = vld [vmem:[#allocation7 + $0x64] ss:$8 sps:$4 sm:$0xff]  }
 0x285   :  { %3587 = vmatprep.mubr.bf16.mxu0 %v11784_v0  ;;  %3710 = vmatprep.mubr.bf16.mxu1 %v11784_v0 }
 0x287   :  { %3558 = vmatpush1.bf16.msra.mxu0 %v10635_v60  ;;  %3681 = vmatpush1.bf16.msra.mxu1 %v10638_v61  ;;  %v10700_v60 = vld [vmem:[#allocation7 + $0x74] ss:$8 sps:$4 sm:$0xff]   ;;  %v10698_v61 = vld [vmem:[#allocation7 + $0x70] ss:$8 sps:$4 sm:$0xff]  }
 0x288   :  { %3559 = vmatprep.subr.bf16.mxu0 %v10643_v62  ;;  %3682 = vmatprep.subr.bf16.mxu1 %v10646_v63  ;;  %v10703_v62 = vld [vmem:[#allocation7 + $0x84] ss:$8 sps:$4 sm:$0xff]   ;;  %v10701_v63 = vld [vmem:[#allocation7 + $0x80] ss:$8 sps:$4 sm:$0xff]  }
 0x28b   :  { %3560 = vmatpush1.bf16.msra.mxu0 %v10641_v1  ;;  %3683 = vmatpush1.bf16.msra.mxu1 %v10644_v2  ;;  %v10706_v1 = vld [vmem:[#allocation7 + $0x94] ss:$8 sps:$4 sm:$0xff]   ;;  %v10704_v2 = vld [vmem:[#allocation7 + $0x90] ss:$8 sps:$4 sm:$0xff]  }
 0x28c   :  { %3561 = vmatprep.subr.bf16.mxu0 %v10649_v3  ;;  %3684 = vmatprep.subr.bf16.mxu1 %v10652_v4  ;;  %v10709_v3 = vld [vmem:[#allocation7 + $0xa4] ss:$8 sps:$4 sm:$0xff]   ;;  %v10707_v4 = vld [vmem:[#allocation7 + $0xa0] ss:$8 sps:$4 sm:$0xff]  }
 0x28f   :  { %3562 = vmatpush1.bf16.msra.mxu0 %v10647_v5  ;;  %3685 = vmatpush1.bf16.msra.mxu1 %v10650_v10  ;;  %v10712_v5 = vld [vmem:[#allocation7 + $0xb4] ss:$8 sps:$4 sm:$0xff]   ;;  %v10710_v10 = vld [vmem:[#allocation7 + $0xb0] ss:$8 sps:$4 sm:$0xff]  }
 0x290   :  { %3563 = vmatprep.subr.bf16.mxu0 %v10655_v12  ;;  %3686 = vmatprep.subr.bf16.mxu1 %v10658_v13  ;;  %v10715_v12 = vld [vmem:[#allocation7 + $0xc4] ss:$8 sps:$4 sm:$0xff]   ;;  %v10713_v13 = vld [vmem:[#allocation7 + $0xc0] ss:$8 sps:$4 sm:$0xff]  }
 0x293   :  { %3564 = vmatpush1.bf16.msra.mxu0 %v10653_v18  ;;  %3687 = vmatpush1.bf16.msra.mxu1 %v10656_v14  ;;  %v10718_v18 = vld [vmem:[#allocation7 + $0xd4] ss:$8 sps:$4 sm:$0xff]   ;;  %v10716_v14 = vld [vmem:[#allocation7 + $0xd0] ss:$8 sps:$4 sm:$0xff]  }
 0x294   :  { %3565 = vmatprep.subr.bf16.mxu0 %v10661_v15  ;;  %3688 = vmatprep.subr.bf16.mxu1 %v10664_v16  ;;  %v10721_v15 = vld [vmem:[#allocation7 + $0xe4] ss:$8 sps:$4 sm:$0xff]   ;;  %v10719_v16 = vld [vmem:[#allocation7 + $0xe0] ss:$8 sps:$4 sm:$0xff]  }
 0x297   :  { %3566 = vmatpush1.bf16.msra.mxu0 %v10659_v23  ;;  %3689 = vmatpush1.bf16.msra.mxu1 %v10662_v19  ;;  %v10724_v23 = vld [vmem:[#allocation7 + $0xf4] ss:$8 sps:$4 sm:$0xff]   ;;  %v10722_v19 = vld [vmem:[#allocation7 + $0xf0] ss:$8 sps:$4 sm:$0xff]  }
 0x298   :  { %v9732_v33 = vpop.f32.mrb[8].mxu1  ;;  %3567 = vmatprep.subr.bf16.mxu0 %v10667_v20  ;;  %3690 = vmatprep.subr.bf16.mxu1 %v10670_v21  ;;  %v10727_v20 = vld [vmem:[#allocation7 + $0x104] ss:$8 sps:$4 sm:$0xff]  }
 0x299   :  { %v9733_v25 = vpop.f32.mrb[9].mxu1  ;;  %v10773_v21 = vld [vmem:[#allocation8 + $0x40] sm:$0xff]  }
 0x29a   :  { %v9734_v27 = vadd.f32 %v9733_v25, %v9732_v33  ;;  %v9735_v35 = vpop.f32.mrb[10].mxu1  ;;  %v10779_v33 = vld [vmem:[#allocation8 + $0x58] sm:$0xff]  }
 0x29b   :  { %v9736_v40 = vpop.f32.mrb[11].mxu1  ;;  %3568 = vmatpush1.bf16.msra.mxu0 %v10665_v26  ;;  %3691 = vmatpush1.bf16.msra.mxu1 %v10668_v28  ;;  %v10775_v26 = vld [vmem:[#allocation8 + $0x48] sm:$0xff]   ;;  %v10780_v25 = vld [vmem:[#allocation8 + $0x18] sm:$0xff]  }
 0x29c   :  { %v2395_v42 = vadd.f32 %v9734_v27, %v2355_v34  ;;  %3569 = vmatprep.subr.bf16.mxu0 %v10673_v31  ;;  %3692 = vmatprep.subr.bf16.mxu1 %v10676_v32  ;;  %v10776_v28 = vld [vmem:[#allocation8 + $0x8] sm:$0xff]   ;;  %v10777_v31 = vld [vmem:[#allocation8 + $0x50] sm:$0xff]   ;;  %v10781_v34 = vld [vmem:[#allocation8 + $0x60] sm:$0xff]  }
 0x29d   :  { %v10778_v32 = vld [vmem:[#allocation8 + $0x10] sm:$0xff]   ;;  %v10782_v27 = vld [vmem:[#allocation8 + $0x20] sm:$0xff]   ;;  %v10783_v35 = vld [vmem:[#allocation8 + $0x68] sm:$0xff]  }
 0x29e   :  { %v2435_v8 = vadd.f32 %v12077_v52, %v2395_v42  ;;  %v10688_v52 = vld [vmem:[#allocation7 + $0x34] ss:$8 sps:$4 sm:$0xff]  }
 0x29f   :  { %3570 = vmatpush1.bf16.msra.mxu0 %v10671_v38  ;;  %3693 = vmatpush1.bf16.msra.mxu1 %v10674_v39  ;;  %v10784_v38 = vld [vmem:[#allocation8 + $0x28] sm:$0xff]  }
 0x2a0   :  { %4124 = vmatprep.subr.bf16.mxu0 %v10679_v41  ;;  %9769 = vmatprep.subr.bf16.mxu1 %v10773_v21  ;;  %v12088_v39 = vld [vmem:[#allocation16 + $0x1] ss:$8 sm:$0xf]  ;;  %v10763_v21 = vld [vmem:[#allocation7 + $0x1c4] ss:$8 sps:$4 sm:$0xff]  }
 0x2a1   :  { %v2656_v40 = vrot.slane %v12088_v39, %v12054_v9  ;;  %v2660_v41 = vrot.slane %v12088_v39, %v12057_v11  ;;  %v2668_v42 = vrot.slane %v12088_v39, %v12071_v30 }
 0x2b8   :  { %v2474_v43 = vpop.f32.mrb[12].mxu1 }
 0x2b9   :  { %v2475_v44 = vadd.f32 %v2474_v43, %v2435_v8  ;;  %v9906_v45 = vpop.f32.mrb[13].mxu1 }
 0x2ba   :  { %v2477_v57 = vpop.f32.mrb[14].mxu1 }
 0x2bb   :  { %v2484_v47 = vmax.f32 %v2475_v44, 0.0  ;;  %v9907_v48 = vpop.f32.mrb[15].mxu1 }
 0x2bd   :  { %v2489_v49 = vpack.c.bf16 %v2484_v47, %v2484_v47 }
 0x2bf   :  { %3588 = vmatmul.mubr.bf16.vlgmr.msra.gmra.mrb[12].mxu0 %v2489_v49  ;;  %3711 = vmatmul.mubr.bf16.vlgmr.msra.gmra.mrb[16].mxu1 %v2489_v49 }
 0x2c0   :  { %4125 = vmatpush1.bf16.msra.mxu0 %v10677_v46  ;;  %9770 = vmatpush3.bf16.msra.mxu1 %v10774_v22  ;;  %v10761_v22 = vld [vmem:[#allocation7 + $0x1c0] ss:$8 sps:$4 sm:$0xff]  }
 0x2c1   :  { %4126 = vmatprep.subr.bf16.mxu0 %v10682_v36  ;;  %9771 = vmatprep.subr.bf16.mxu1 %v10775_v26  ;;  %v10766_v26 = vld [vmem:[#allocation7 + $0x1d4] ss:$8 sps:$4 sm:$0xff]  }
 0x2c4   :  { %4127 = vmatpush1.bf16.msra.mxu0 %v10680_v50  ;;  %9772 = vmatpush3.bf16.msra.mxu1 %v10776_v28  ;;  %v10764_v28 = vld [vmem:[#allocation7 + $0x1d0] ss:$8 sps:$4 sm:$0xff]  }
 0x2c5   :  { %4128 = vmatprep.subr.bf16.mxu0 %v10685_v51  ;;  %9773 = vmatprep.subr.bf16.mxu1 %v10777_v31  ;;  %v2664_v31 = vrot.slane %v12088_v39, %v12068_v24  ;;  %v10787_v39 = vld [vmem:[#allocation8 + $0x78] sm:$0xff]  }
 0x2c8   :  { %4129 = vmatpush1.bf16.msra.mxu0 %v10683_v53  ;;  %9774 = vmatpush3.bf16.msra.mxu1 %v10778_v32  ;;  %v10769_v32 = vld [vmem:[#allocation7 + $0x1e4] ss:$8 sps:$4 sm:$0xff]  }
 0x2c9   :  { %4130 = vmatprep.subr.bf16.mxu0 %v10688_v52  ;;  %9775 = vmatprep.subr.bf16.mxu1 %v10779_v33  ;;  %v10767_v33 = vld [vmem:[#allocation7 + $0x1e0] ss:$8 sps:$4 sm:$0xff]  }
 0x2cc   :  { %4131 = vmatpush1.bf16.msra.mxu0 %v10686_v54  ;;  %9776 = vmatpush3.bf16.msra.mxu1 %v10780_v25 }
 0x2cd   :  { %4132 = vmatprep.subr.bf16.mxu0 %v10691_v37  ;;  %9777 = vmatprep.subr.bf16.mxu1 %v10781_v34  ;;  %v10725_v37 = vld [vmem:[#allocation7 + $0x100] ss:$8 sps:$4 sm:$0xff]   ;;  %v10772_v34 = vld [vmem:[#allocation7 + $0x1f4] ss:$8 sps:$4 sm:$0xff]  }
 0x2d0   :  { %4133 = vmatpush1.bf16.msra.mxu0 %v10689_v55  ;;  %9778 = vmatpush3.bf16.msra.mxu1 %v10782_v27  ;;  %v10770_v27 = vld [vmem:[#allocation7 + $0x1f0] ss:$8 sps:$4 sm:$0xff]  }
 0x2d1   :  { %4134 = vmatprep.subr.bf16.mxu0 %v10694_v29  ;;  %9779 = vmatprep.subr.bf16.mxu1 %v10783_v35  ;;  %v10730_v29 = vld [vmem:[#allocation7 + $0x114] ss:$8 sps:$4 sm:$0xff]  }
 0x2d4   :  { %4135 = vmatpush1.bf16.msra.mxu0 %v10692_v56  ;;  %9780 = vmatpush3.bf16.msra.mxu1 %v10784_v38 }
 0x2d5   :  { %4136 = vmatprep.subr.bf16.mxu0 %v10697_v58  ;;  %v10728_v58 = vld [vmem:[#allocation7 + $0x110] ss:$8 sps:$4 sm:$0xff]  }
 0x2d8   :  { %4137 = vmatpush1.bf16.msra.mxu0 %v10695_v59  ;;  %v10733_v59 = vld [vmem:[#allocation7 + $0x124] ss:$8 sps:$4 sm:$0xff]  }
 0x2d9   :  { %4138 = vmatprep.subr.bf16.mxu0 %v10700_v60  ;;  %v10731_v60 = vld [vmem:[#allocation7 + $0x120] ss:$8 sps:$4 sm:$0xff]  }
 0x2dc   :  { %4139 = vmatpush1.bf16.msra.mxu0 %v10698_v61  ;;  %v10736_v61 = vld [vmem:[#allocation7 + $0x134] ss:$8 sps:$4 sm:$0xff]  }
 0x2dd   :  { %4140 = vmatprep.subr.bf16.mxu0 %v10703_v62  ;;  %v10734_v62 = vld [vmem:[#allocation7 + $0x130] ss:$8 sps:$4 sm:$0xff]  }
 0x2e0   :  { %4141 = vmatpush1.bf16.msra.mxu0 %v10701_v63  ;;  %v10739_v63 = vld [vmem:[#allocation7 + $0x144] ss:$8 sps:$4 sm:$0xff]  }
 0x2e1   :  { %4142 = vmatprep.subr.bf16.mxu0 %v10706_v1  ;;  %v10737_v1 = vld [vmem:[#allocation7 + $0x140] ss:$8 sps:$4 sm:$0xff]  }
 0x2e4   :  { %4143 = vmatpush1.bf16.msra.mxu0 %v10704_v2  ;;  %v10742_v2 = vld [vmem:[#allocation7 + $0x154] ss:$8 sps:$4 sm:$0xff]  }
 0x2e5   :  { %4144 = vmatprep.subr.bf16.mxu0 %v10709_v3  ;;  %v10740_v3 = vld [vmem:[#allocation7 + $0x150] ss:$8 sps:$4 sm:$0xff]  }
 0x2e8   :  { %4145 = vmatpush1.bf16.msra.mxu0 %v10707_v4  ;;  %v10745_v4 = vld [vmem:[#allocation7 + $0x164] ss:$8 sps:$4 sm:$0xff]  }
 0x2e9   :  { %4146 = vmatprep.subr.bf16.mxu0 %v10712_v5  ;;  %v10743_v5 = vld [vmem:[#allocation7 + $0x160] ss:$8 sps:$4 sm:$0xff]  }
 0x2ec   :  { %4147 = vmatpush1.bf16.msra.mxu0 %v10710_v10  ;;  %v10748_v10 = vld [vmem:[#allocation7 + $0x174] ss:$8 sps:$4 sm:$0xff]  }
 0x2ed   :  { %4148 = vmatprep.subr.bf16.mxu0 %v10715_v12  ;;  %v10746_v12 = vld [vmem:[#allocation7 + $0x170] ss:$8 sps:$4 sm:$0xff]  }
 0x2f0   :  { %4149 = vmatpush1.bf16.msra.mxu0 %v10713_v13  ;;  %v10751_v13 = vld [vmem:[#allocation7 + $0x184] ss:$8 sps:$4 sm:$0xff]  }
 0x2f1   :  { %4150 = vmatprep.subr.bf16.mxu0 %v10718_v18  ;;  %v10749_v18 = vld [vmem:[#allocation7 + $0x180] ss:$8 sps:$4 sm:$0xff]  }
 0x2f4   :  { %4151 = vmatpush1.bf16.msra.mxu0 %v10716_v14  ;;  %v10754_v14 = vld [vmem:[#allocation7 + $0x194] ss:$8 sps:$4 sm:$0xff]  }
 0x2f5   :  { %4152 = vmatprep.subr.bf16.mxu0 %v10721_v15  ;;  %v10752_v15 = vld [vmem:[#allocation7 + $0x190] ss:$8 sps:$4 sm:$0xff]  }
 0x2f8   :  { %4153 = vmatpush1.bf16.msra.mxu0 %v10719_v16  ;;  %v10757_v16 = vld [vmem:[#allocation7 + $0x1a4] ss:$8 sps:$4 sm:$0xff]  }
 0x2f9   :  { %4154 = vmatprep.subr.bf16.mxu0 %v10724_v23  ;;  %v10755_v23 = vld [vmem:[#allocation7 + $0x1a0] ss:$8 sps:$4 sm:$0xff]  }
 0x2fc   :  { %4155 = vmatpush1.bf16.msra.mxu0 %v10722_v19  ;;  %v10760_v19 = vld [vmem:[#allocation7 + $0x1b4] ss:$8 sps:$4 sm:$0xff]  }
 0x2fd   :  { %4165 = vmatprep.subr.bf16.mxu0 %v10727_v20  ;;  %v10758_v20 = vld [vmem:[#allocation7 + $0x1b0] ss:$8 sps:$4 sm:$0xff]  }
 0x392   :  { %v3589_v8 = vpop.f32.mrb[12].mxu0  ;;  %v12096_v43 = vpop.f32.mrb[16].mxu1 }
 0x393   :  { %v9934_v44 = vadd.f32 %v3589_v8, %v2656_v40  ;;  %v3591_v45 = vpop.f32.mrb[13].mxu0  ;;  %v3714_v57 = vpop.f32.mrb[17].mxu1  ;;  %v9936_v25 = vadd.f32 %v12096_v43, %v2664_v31  ;;  %v10785_v40 = vld [vmem:[#allocation8 + $0x70] sm:$0xff]   ;;  %v10791_v8 = vld [vmem:[#allocation10 + $0x4] ss:$8 sps:$4 sm:$0xff]  }
 0x394   :  { %v9935_v46 = vadd.f32 %v3591_v45, %v2660_v41  ;;  %v9937_v47 = vadd.f32 %v3714_v57, %v2668_v42  ;;  %v3593_v48 = vpop.f32.mrb[14].mxu0  ;;  %v3716_v36 = vpop.f32.mrb[18].mxu1  ;;  %v10786_v41 = vld [vmem:[#allocation8 + $0x30] sm:$0xff]   ;;  %9781 = vmatprep.subr.bf16.mxu1 %v10785_v40  ;;  %v10788_v42 = vld [vmem:[#allocation8 + $0x38] sm:$0xff]  }
 0x395   :  { %v3719_v49 = vmax.f32 %v9934_v44, 0.0  ;;  %v3594_v50 = vpop.f32.mrb[15].mxu0  ;;  %v3717_v51 = vpop.f32.mrb[19].mxu1  ;;  %v3721_v35 = vmax.f32 %v9936_v25, 0.0  ;;  %9782 = vmatpush3.bf16.msra.mxu1 %v10786_v41  ;;  %v10860_v31 = vld [vmem:[#allocation11 + $0xec] ss:$16 sps:$4 sm:$0xff]  }
 0x396   :  { %v3720_v53 = vmax.f32 %v9935_v46, 0.0  ;;  %v3722_v52 = vmax.f32 %v9937_v47, 0.0  ;;  %9783 = vmatprep.subr.bf16.mxu1 %v10787_v39  ;;  %v3792_v43 = vld [vmem:[#allocation16 + $0x2] ss:$8 sm:$0x3] }
 0x397   :  { %v3723_v55 = vpack.c.bf16 %v3719_v49, %v3719_v49  ;;  %v3725_v38 = vpack.c.bf16 %v3721_v35, %v3721_v35  ;;  %v3797_v44 = vrot.slane %v3792_v43, %v12054_v9  ;;  %v3801_v45 = vrot.slane %v3792_v43, %v12057_v11  ;;  %v10864_v25 = vld [vmem:[#allocation11 + $0x108] ss:$16 sps:$4 sm:$0xff]   ;;  %v10878_v35 = vld [vmem:[#allocation11 + $0x14c] ss:$16 sps:$4 sm:$0xff]  }
 0x398   :  { %v3724_v54 = vpack.c.bf16 %v3720_v53, %v3720_v53  ;;  %v3726_v56 = vpack.c.bf16 %v3722_v52, %v3722_v52  ;;  %v10789_v52 = vld [vmem:[#allocation10] ss:$8 sps:$4 sm:$0xff]   ;;  %v10884_v40 = vld [vmem:[#allocation11 + $0x16c] ss:$16 sps:$4 sm:$0xff]  }
 0x399   :  { %9784 = vmatpush3.bf16.msra.mxu1 %v10788_v42  ;;  %v10882_v41 = vld [vmem:[#allocation11 + $0x168] ss:$16 sps:$4 sm:$0xff]   ;;  %v10890_v39 = vld [vmem:[#allocation11 + $0x18c] ss:$16 sps:$4 sm:$0xff]  }
 0x39a   :  { %4156 = vmatprep.mubr.bf16.mxu0 %v3724_v54  ;;  %4489 = vmatprep.subr.bf16.mxu1 %v10791_v8  ;;  %v10888_v42 = vld [vmem:[#allocation11 + $0x188] ss:$16 sps:$4 sm:$0xff]   ;;  %v10896_v8 = vld [vmem:[#allocation11 + $0x1ac] ss:$16 sps:$4 sm:$0xff]  }
 0x39b   :  { %4157 = vmatmul.mubr.bf16.vlgmr.msra.gmra.mrb[16].mxu0 %v3723_v55  ;;  %v10792_v55 = vld [vmem:[#allocation10 + $0x10] ss:$8 sps:$4 sm:$0xff]  }
 0x39c   :  { %4166 = vmatpush1.bf16.msra.mxu0 %v10725_v37  ;;  %4197 = vmatprep.mubr.bf16.mxu0 %v3726_v56  ;;  %v10794_v37 = vld [vmem:[#allocation10 + $0x14] ss:$8 sps:$4 sm:$0xff]   ;;  %v10795_v56 = vld [vmem:[#allocation10 + $0x20] ss:$8 sps:$4 sm:$0xff]  }
 0x39d   :  { %4167 = vmatprep.subr.bf16.mxu0 %v10730_v29  ;;  %v10797_v29 = vld [vmem:[#allocation10 + $0x24] ss:$8 sps:$4 sm:$0xff]   ;;  %v10894_v43 = vld [vmem:[#allocation11 + $0x1a8] ss:$16 sps:$4 sm:$0xff]  }
 0x3a0   :  { %4168 = vmatpush1.bf16.msra.mxu0 %v10728_v58  ;;  %v10800_v58 = vld [vmem:[#allocation10 + $0x34] ss:$8 sps:$4 sm:$0xff]  }
 0x3a1   :  { %4169 = vmatprep.subr.bf16.mxu0 %v10733_v59  ;;  %v10798_v59 = vld [vmem:[#allocation10 + $0x30] ss:$8 sps:$4 sm:$0xff]  }
 0x3a4   :  { %4170 = vmatpush1.bf16.msra.mxu0 %v10731_v60  ;;  %v10803_v60 = vld [vmem:[#allocation10 + $0x44] ss:$8 sps:$4 sm:$0xff]  }
 0x3a5   :  { %4171 = vmatprep.subr.bf16.mxu0 %v10736_v61  ;;  %v10801_v61 = vld [vmem:[#allocation10 + $0x40] ss:$8 sps:$4 sm:$0xff]  }
 0x3a8   :  { %4172 = vmatpush1.bf16.msra.mxu0 %v10734_v62  ;;  %v10806_v62 = vld [vmem:[#allocation10 + $0x54] ss:$8 sps:$4 sm:$0xff]  }
 0x3a9   :  { %4173 = vmatprep.subr.bf16.mxu0 %v10739_v63  ;;  %v10804_v63 = vld [vmem:[#allocation10 + $0x50] ss:$8 sps:$4 sm:$0xff]  }
 0x3ac   :  { %4174 = vmatpush1.bf16.msra.mxu0 %v10737_v1  ;;  %v10809_v1 = vld [vmem:[#allocation10 + $0x64] ss:$8 sps:$4 sm:$0xff]  }
 0x3ad   :  { %4175 = vmatprep.subr.bf16.mxu0 %v10742_v2  ;;  %v10807_v2 = vld [vmem:[#allocation10 + $0x60] ss:$8 sps:$4 sm:$0xff]  }
 0x3b0   :  { %4176 = vmatpush1.bf16.msra.mxu0 %v10740_v3  ;;  %v10812_v3 = vld [vmem:[#allocation10 + $0x74] ss:$8 sps:$4 sm:$0xff]  }
 0x3b1   :  { %4177 = vmatprep.subr.bf16.mxu0 %v10745_v4  ;;  %v10810_v4 = vld [vmem:[#allocation10 + $0x70] ss:$8 sps:$4 sm:$0xff]  }
 0x3b4   :  { %4178 = vmatpush1.bf16.msra.mxu0 %v10743_v5  ;;  %v10815_v5 = vld [vmem:[#allocation11 + $0x4] ss:$16 sps:$4 sm:$0xff]  }
 0x3b5   :  { %4179 = vmatprep.subr.bf16.mxu0 %v10748_v10  ;;  %v10816_v10 = vld [vmem:[#allocation11 + $0x8] ss:$16 sps:$4 sm:$0xff]  }
 0x3b8   :  { %4180 = vmatpush1.bf16.msra.mxu0 %v10746_v12  ;;  %v10818_v12 = vld [vmem:[#allocation11 + $0xc] ss:$16 sps:$4 sm:$0xff]  }
 0x3b9   :  { %4181 = vmatprep.subr.bf16.mxu0 %v10751_v13  ;;  %v10824_v13 = vld [vmem:[#allocation11 + $0x2c] ss:$16 sps:$4 sm:$0xff]  }
 0x3bc   :  { %4182 = vmatpush1.bf16.msra.mxu0 %v10749_v18  ;;  %v10822_v18 = vld [vmem:[#allocation11 + $0x28] ss:$16 sps:$4 sm:$0xff]  }
 0x3bd   :  { %4183 = vmatprep.subr.bf16.mxu0 %v10754_v14  ;;  %v10830_v14 = vld [vmem:[#allocation11 + $0x4c] ss:$16 sps:$4 sm:$0xff]  }
 0x3c0   :  { %4184 = vmatpush1.bf16.msra.mxu0 %v10752_v15  ;;  %v10828_v15 = vld [vmem:[#allocation11 + $0x48] ss:$16 sps:$4 sm:$0xff]  }
 0x3c1   :  { %4185 = vmatprep.subr.bf16.mxu0 %v10757_v16  ;;  %v10836_v16 = vld [vmem:[#allocation11 + $0x6c] ss:$16 sps:$4 sm:$0xff]  }
 0x3c4   :  { %4186 = vmatpush1.bf16.msra.mxu0 %v10755_v23  ;;  %v10834_v23 = vld [vmem:[#allocation11 + $0x68] ss:$16 sps:$4 sm:$0xff]  }
 0x3c5   :  { %4187 = vmatprep.subr.bf16.mxu0 %v10760_v19  ;;  %v10842_v19 = vld [vmem:[#allocation11 + $0x8c] ss:$16 sps:$4 sm:$0xff]  }
 0x3c8   :  { %4188 = vmatpush1.bf16.msra.mxu0 %v10758_v20  ;;  %v10840_v20 = vld [vmem:[#allocation11 + $0x88] ss:$16 sps:$4 sm:$0xff]  }
 0x3c9   :  { %4189 = vmatprep.subr.bf16.mxu0 %v10763_v21  ;;  %v10848_v21 = vld [vmem:[#allocation11 + $0xac] ss:$16 sps:$4 sm:$0xff]  }
 0x3cc   :  { %4190 = vmatpush1.bf16.msra.mxu0 %v10761_v22  ;;  %v10846_v22 = vld [vmem:[#allocation11 + $0xa8] ss:$16 sps:$4 sm:$0xff]  }
 0x3cd   :  { %4191 = vmatprep.subr.bf16.mxu0 %v10766_v26  ;;  %v10854_v26 = vld [vmem:[#allocation11 + $0xcc] ss:$16 sps:$4 sm:$0xff]  }
 0x3d0   :  { %4192 = vmatpush1.bf16.msra.mxu0 %v10764_v28  ;;  %v10852_v28 = vld [vmem:[#allocation11 + $0xc8] ss:$16 sps:$4 sm:$0xff]  }
 0x3d1   :  { %4193 = vmatprep.subr.bf16.mxu0 %v10769_v32  ;;  %v10858_v32 = vld [vmem:[#allocation11 + $0xe8] ss:$16 sps:$4 sm:$0xff]  }
 0x3d4   :  { %4194 = vmatpush1.bf16.msra.mxu0 %v10767_v33  ;;  %v10866_v33 = vld [vmem:[#allocation11 + $0x10c] ss:$16 sps:$4 sm:$0xff]  }
 0x3d5   :  { %4195 = vmatprep.subr.bf16.mxu0 %v10772_v34  ;;  %v10872_v34 = vld [vmem:[#allocation11 + $0x12c] ss:$16 sps:$4 sm:$0xff]  }
 0x3d8   :  { %4196 = vmatpush1.bf16.msra.mxu0 %v10770_v27  ;;  %v10870_v27 = vld [vmem:[#allocation11 + $0x128] ss:$16 sps:$4 sm:$0xff]  }
 0x3d9   :  { %4982 = vmatprep.subr.bf16.mxu0 %v10818_v12  ;;  %v10881_v12 = vld [vmem:[#allocation11 + $0x164] ss:$16 sps:$4 sm:$0xff]  }
 0x3db   :  { %4198 = vmatmul.mubr.bf16.vlgmr.msra.gmra.mrb[16].mxu0 %v3725_v38  ;;  %v10876_v38 = vld [vmem:[#allocation11 + $0x148] ss:$16 sps:$4 sm:$0xff]  }
 0x3dc   :  { %4983 = vmatpush1.bf16.msra.mxu0 %v10816_v10  ;;  %v10873_v10 = vld [vmem:[#allocation11 + $0x140] ss:$16 sps:$4 sm:$0xff]  }
 0x3dd   :  { %4984 = vmatprep.subr.bf16.mxu0 %v10824_v13  ;;  %v10879_v13 = vld [vmem:[#allocation11 + $0x160] ss:$16 sps:$4 sm:$0xff]  }
 0x3e0   :  { %4985 = vmatpush1.bf16.msra.mxu0 %v10822_v18  ;;  %v10887_v18 = vld [vmem:[#allocation11 + $0x184] ss:$16 sps:$4 sm:$0xff]  }
 0x3e1   :  { %4986 = vmatprep.subr.bf16.mxu0 %v10830_v14  ;;  %v10885_v14 = vld [vmem:[#allocation11 + $0x180] ss:$16 sps:$4 sm:$0xff]  }
 0x3e4   :  { %4987 = vmatpush1.bf16.msra.mxu0 %v10828_v15  ;;  %v10893_v15 = vld [vmem:[#allocation11 + $0x1a4] ss:$16 sps:$4 sm:$0xff]  }
 0x3e5   :  { %4988 = vmatprep.subr.bf16.mxu0 %v10836_v16  ;;  %v10891_v16 = vld [vmem:[#allocation11 + $0x1a0] ss:$16 sps:$4 sm:$0xff]  }
 0x3e8   :  { %4989 = vmatpush1.bf16.msra.mxu0 %v10834_v23  ;;  %v10899_v23 = vld [vmem:[#allocation11 + $0x1c4] ss:$16 sps:$4 sm:$0xff]  }
 0x3e9   :  { %4990 = vmatprep.subr.bf16.mxu0 %v10842_v19  ;;  %v10902_v19 = vld [vmem:[#allocation11 + $0x1cc] ss:$16 sps:$4 sm:$0xff]  }
 0x3ec   :  { %4991 = vmatpush1.bf16.msra.mxu0 %v10840_v20  ;;  %v10897_v20 = vld [vmem:[#allocation11 + $0x1c0] ss:$16 sps:$4 sm:$0xff]  }
 0x3ed   :  { %4992 = vmatprep.subr.bf16.mxu0 %v10848_v21  ;;  %v10900_v21 = vld [vmem:[#allocation11 + $0x1c8] ss:$16 sps:$4 sm:$0xff]  }
 0x3f0   :  { %4993 = vmatpush1.bf16.msra.mxu0 %v10846_v22  ;;  %v10905_v22 = vld [vmem:[#allocation11 + $0x1e4] ss:$16 sps:$4 sm:$0xff]  }
 0x3f1   :  { %4994 = vmatprep.subr.bf16.mxu0 %v10854_v26  ;;  %v10908_v26 = vld [vmem:[#allocation11 + $0x1ec] ss:$16 sps:$4 sm:$0xff]  }
 0x3f4   :  { %4995 = vmatpush1.bf16.msra.mxu0 %v10852_v28  ;;  %v10903_v28 = vld [vmem:[#allocation11 + $0x1e0] ss:$16 sps:$4 sm:$0xff]  }
 0x3f5   :  { %4996 = vmatprep.subr.bf16.mxu0 %v10860_v31  ;;  %v10906_v31 = vld [vmem:[#allocation11 + $0x1e8] ss:$16 sps:$4 sm:$0xff]  }
 0x3f8   :  { %4997 = vmatpush1.bf16.msra.mxu0 %v10858_v32  ;;  %v10911_v32 = vld [vmem:[#allocation13 + $0x4] ss:$20 sps:$4 sm:$0xff]  }
 0x3f9   :  { %4998 = vmatprep.subr.bf16.mxu0 %v10866_v33  ;;  %v10914_v33 = vld [vmem:[#allocation13 + $0xc] ss:$20 sps:$4 sm:$0xff]  }
 0x3fc   :  { %4999 = vmatpush1.bf16.msra.mxu0 %v10864_v25  ;;  %v4397_v25 = vld [vmem:[#allocation16 + $0x4] ss:$8 sm:$0x3] }
 0x3fd   :  { %5000 = vmatprep.subr.bf16.mxu0 %v10872_v34  ;;  %v4402_v34 = vrot.slane %v4397_v25, %v12054_v9 }
 0x400   :  { %5001 = vmatpush1.bf16.msra.mxu0 %v10870_v27  ;;  %v4406_v27 = vrot.slane %v4397_v25, %v12057_v11  ;;  %v10980_v25 = vld [vmem:[#allocation13 + $0x1c4] ss:$20 sps:$4 sm:$0xff]  }
 0x401   :  { %5002 = vmatprep.subr.bf16.mxu0 %v10878_v35 }
 0x404   :  { %5003 = vmatpush1.bf16.msra.mxu0 %v10876_v38 }
 0x405   :  { %5004 = vmatprep.subr.bf16.mxu0 %v10884_v40 }
 0x408   :  { %5005 = vmatpush1.bf16.msra.mxu0 %v10882_v41 }
 0x409   :  { %5006 = vmatprep.subr.bf16.mxu0 %v10890_v39 }
 0x40c   :  { %5007 = vmatpush1.bf16.msra.mxu0 %v10888_v42 }
 0x40d   :  { %5008 = vmatprep.subr.bf16.mxu0 %v10896_v8 }
 0x410   :  { %5009 = vmatpush1.bf16.msra.mxu0 %v10894_v43 }
 0x411   :  { %5010 = vmatprep.subr.bf16.mxu0 %v10902_v19  ;;  %v10965_v19 = vld [vmem:[#allocation13 + $0x16c] ss:$20 sps:$4 sm:$0xff]  }
 0x414   :  { %5011 = vmatpush1.bf16.msra.mxu0 %v10900_v21  ;;  %v10963_v21 = vld [vmem:[#allocation13 + $0x168] ss:$20 sps:$4 sm:$0xff]  }
 0x415   :  { %5012 = vmatprep.subr.bf16.mxu0 %v10908_v26  ;;  %v10971_v26 = vld [vmem:[#allocation13 + $0x194] ss:$20 sps:$4 sm:$0xff]  }
 0x418   :  { %5013 = vmatpush1.bf16.msra.mxu0 %v10906_v31  ;;  %v10969_v31 = vld [vmem:[#allocation13 + $0x190] ss:$20 sps:$4 sm:$0xff]  }
 0x419   :  { %6167 = vmatprep.subr.bf16.mxu0 %v10914_v33  ;;  %v10977_v33 = vld [vmem:[#allocation13 + $0x1bc] ss:$20 sps:$4 sm:$0xff]  }
 0x4ae   :  { %v4199_v57 = vpop.f32.mrb[16].mxu0 }
 0x4af   :  { %v9938_v46 = vadd.f32 %v4199_v57, %v3797_v44  ;;  %v4201_v47 = vpop.f32.mrb[17].mxu0 }
 0x4b0   :  { %v9939_v48 = vadd.f32 %v4201_v47, %v3801_v45  ;;  %v4203_v36 = vpop.f32.mrb[18].mxu0  ;;  %v4242_v45 = vld [vmem:[#allocation16 + $0x3] ss:$0 sm:$0xff] }
 0x4b1   :  { %v4206_v49 = vmax.f32 %v9938_v46, 0.0  ;;  %v4204_v50 = vpop.f32.mrb[19].mxu0 }
 0x4b2   :  { %v4207_v51 = vmax.f32 %v9939_v48, 0.0 }
 0x4b3   :  { %v4208_v54 = vpack.c.bf16 %v4206_v49, %v4206_v49  ;;  %v10813_v49 = vld [vmem:[#allocation11] ss:$16 sps:$4 sm:$0xff]  }
 0x4b4   :  { %v4209_v53 = vpack.c.bf16 %v4207_v51, %v4207_v51  ;;  %v10821_v51 = vld [vmem:[#allocation11 + $0x24] ss:$16 sps:$4 sm:$0xff]  }
 0x4b6   :  { %4371 = vmatprep.mubr.bf16.mxu1 %v4209_v53  ;;  %v10819_v53 = vld [vmem:[#allocation11 + $0x20] ss:$16 sps:$4 sm:$0xff]  }
 0x4b7   :  { %4372 = vmatmul.mubr.bf16.vlgmr.msra.gmra.mrb[20].mxu1 %v4208_v54  ;;  %v10825_v54 = vld [vmem:[#allocation11 + $0x40] ss:$16 sps:$4 sm:$0xff]  }
 0x4b8   :  { %4490 = vmatpush1.bf16.msra.mxu1 %v10789_v52  ;;  %4521 = vmatprep.mubr.bf16.mxu1 %v11784_v0  ;;  %v10827_v52 = vld [vmem:[#allocation11 + $0x44] ss:$16 sps:$4 sm:$0xff]  }
 0x4b9   :  { %4491 = vmatprep.subr.bf16.mxu1 %v10794_v37  ;;  %v10833_v37 = vld [vmem:[#allocation11 + $0x64] ss:$16 sps:$4 sm:$0xff]  }
 0x4bc   :  { %4492 = vmatpush1.bf16.msra.mxu1 %v10792_v55  ;;  %v10831_v55 = vld [vmem:[#allocation11 + $0x60] ss:$16 sps:$4 sm:$0xff]  }
 0x4bd   :  { %4493 = vmatprep.subr.bf16.mxu1 %v10797_v29  ;;  %v10839_v29 = vld [vmem:[#allocation11 + $0x84] ss:$16 sps:$4 sm:$0xff]  }
 0x4c0   :  { %4494 = vmatpush1.bf16.msra.mxu1 %v10795_v56  ;;  %v10837_v56 = vld [vmem:[#allocation11 + $0x80] ss:$16 sps:$4 sm:$0xff]  }
 0x4c1   :  { %4495 = vmatprep.subr.bf16.mxu1 %v10800_v58  ;;  %v10845_v58 = vld [vmem:[#allocation11 + $0xa4] ss:$16 sps:$4 sm:$0xff]  }
 0x4c4   :  { %4496 = vmatpush1.bf16.msra.mxu1 %v10798_v59  ;;  %v10843_v59 = vld [vmem:[#allocation11 + $0xa0] ss:$16 sps:$4 sm:$0xff]  }
 0x4c5   :  { %4497 = vmatprep.subr.bf16.mxu1 %v10803_v60  ;;  %v10851_v60 = vld [vmem:[#allocation11 + $0xc4] ss:$16 sps:$4 sm:$0xff]  }
 0x4c8   :  { %4498 = vmatpush1.bf16.msra.mxu1 %v10801_v61  ;;  %v10849_v61 = vld [vmem:[#allocation11 + $0xc0] ss:$16 sps:$4 sm:$0xff]  }
 0x4c9   :  { %4499 = vmatprep.subr.bf16.mxu1 %v10806_v62  ;;  %v10857_v62 = vld [vmem:[#allocation11 + $0xe4] ss:$16 sps:$4 sm:$0xff]  }
 0x4cc   :  { %4500 = vmatpush1.bf16.msra.mxu1 %v10804_v63  ;;  %v10855_v63 = vld [vmem:[#allocation11 + $0xe0] ss:$16 sps:$4 sm:$0xff]  }
 0x4cd   :  { %4501 = vmatprep.subr.bf16.mxu1 %v10809_v1  ;;  %v10863_v1 = vld [vmem:[#allocation11 + $0x104] ss:$16 sps:$4 sm:$0xff]  }
 0x4d0   :  { %4502 = vmatpush1.bf16.msra.mxu1 %v10807_v2  ;;  %v10861_v2 = vld [vmem:[#allocation11 + $0x100] ss:$16 sps:$4 sm:$0xff]  }
 0x4d1   :  { %4503 = vmatprep.subr.bf16.mxu1 %v10812_v3  ;;  %v10869_v3 = vld [vmem:[#allocation11 + $0x124] ss:$16 sps:$4 sm:$0xff]  }
 0x4d4   :  { %4504 = vmatpush1.bf16.msra.mxu1 %v10810_v4  ;;  %v10867_v4 = vld [vmem:[#allocation11 + $0x120] ss:$16 sps:$4 sm:$0xff]  }
 0x4d5   :  { %4941 = vmatprep.subr.bf16.mxu1 %v10815_v5  ;;  %v10875_v5 = vld [vmem:[#allocation11 + $0x144] ss:$16 sps:$4 sm:$0xff]  }
 0x58a   :  { %v9785_v44 = vpop.f32.mrb[20].mxu1 }
 0x58b   :  { %v9786_v57 = vpop.f32.mrb[21].mxu1 }
 0x58c   :  { %v9787_v46 = vadd.f32 %v9786_v57, %v9785_v44  ;;  %v9788_v47 = vpop.f32.mrb[22].mxu1  ;;  %v10912_v57 = vld [vmem:[#allocation13 + $0x8] ss:$20 sps:$4 sm:$0xff]  }
 0x58d   :  { %v9789_v48 = vpop.f32.mrb[23].mxu1  ;;  %v10917_v47 = vld [vmem:[#allocation13 + $0x2c] ss:$20 sps:$4 sm:$0xff]  }
 0x58e   :  { %v4374_v36 = vadd.f32 %v9787_v46, %v4242_v45  ;;  %v10909_v45 = vld [vmem:[#allocation13] ss:$20 sps:$4 sm:$0xff]  }
 0x58f   :  { %v10920_v48 = vld [vmem:[#allocation13 + $0x34] ss:$20 sps:$4 sm:$0xff]  }
 0x590   :  { %v4379_v50 = vpack.c.bf16 %v4374_v36, %v4374_v36  ;;  %v10915_v36 = vld [vmem:[#allocation13 + $0x28] ss:$20 sps:$4 sm:$0xff]  }
 0x592   :  { %4522 = vmatmul.mubr.bf16.vlgmr.msra.gmra.mrb[24].mxu1 %v4379_v50  ;;  %v10923_v50 = vld [vmem:[#allocation13 + $0x54] ss:$20 sps:$4 sm:$0xff]  }
 0x593   :  { %4942 = vmatpush1.bf16.msra.mxu1 %v10813_v49  ;;  %v10918_v49 = vld [vmem:[#allocation13 + $0x30] ss:$20 sps:$4 sm:$0xff]  }
 0x594   :  { %4943 = vmatprep.subr.bf16.mxu1 %v10821_v51  ;;  %v10926_v51 = vld [vmem:[#allocation13 + $0x5c] ss:$20 sps:$4 sm:$0xff]  }
 0x597   :  { %4944 = vmatpush1.bf16.msra.mxu1 %v10819_v53  ;;  %v10921_v53 = vld [vmem:[#allocation13 + $0x50] ss:$20 sps:$4 sm:$0xff]  }
 0x598   :  { %4945 = vmatprep.subr.bf16.mxu1 %v10827_v52  ;;  %v10924_v52 = vld [vmem:[#allocation13 + $0x58] ss:$20 sps:$4 sm:$0xff]  }
 0x59b   :  { %4946 = vmatpush1.bf16.msra.mxu1 %v10825_v54  ;;  %v10929_v54 = vld [vmem:[#allocation13 + $0x7c] ss:$20 sps:$4 sm:$0xff]  }
 0x59c   :  { %4947 = vmatprep.subr.bf16.mxu1 %v10833_v37  ;;  %v10932_v37 = vld [vmem:[#allocation13 + $0x84] ss:$20 sps:$4 sm:$0xff]  }
 0x59f   :  { %4948 = vmatpush1.bf16.msra.mxu1 %v10831_v55  ;;  %v10927_v55 = vld [vmem:[#allocation13 + $0x78] ss:$20 sps:$4 sm:$0xff]  }
 0x5a0   :  { %4949 = vmatprep.subr.bf16.mxu1 %v10839_v29  ;;  %v10930_v29 = vld [vmem:[#allocation13 + $0x80] ss:$20 sps:$4 sm:$0xff]  }
 0x5a3   :  { %4950 = vmatpush1.bf16.msra.mxu1 %v10837_v56  ;;  %v10935_v56 = vld [vmem:[#allocation13 + $0xa4] ss:$20 sps:$4 sm:$0xff]  }
 0x5a4   :  { %4951 = vmatprep.subr.bf16.mxu1 %v10845_v58  ;;  %v10938_v58 = vld [vmem:[#allocation13 + $0xac] ss:$20 sps:$4 sm:$0xff]  }
 0x5a7   :  { %4952 = vmatpush1.bf16.msra.mxu1 %v10843_v59  ;;  %v10933_v59 = vld [vmem:[#allocation13 + $0xa0] ss:$20 sps:$4 sm:$0xff]  }
 0x5a8   :  { %4953 = vmatprep.subr.bf16.mxu1 %v10851_v60  ;;  %v10936_v60 = vld [vmem:[#allocation13 + $0xa8] ss:$20 sps:$4 sm:$0xff]  }
 0x5ab   :  { %4954 = vmatpush1.bf16.msra.mxu1 %v10849_v61  ;;  %v10941_v61 = vld [vmem:[#allocation13 + $0xcc] ss:$20 sps:$4 sm:$0xff]  }
 0x5ac   :  { %4955 = vmatprep.subr.bf16.mxu1 %v10857_v62  ;;  %v10944_v62 = vld [vmem:[#allocation13 + $0xd4] ss:$20 sps:$4 sm:$0xff]  }
 0x5af   :  { %4956 = vmatpush1.bf16.msra.mxu1 %v10855_v63  ;;  %v10939_v63 = vld [vmem:[#allocation13 + $0xc8] ss:$20 sps:$4 sm:$0xff]  }
 0x5b0   :  { %4957 = vmatprep.subr.bf16.mxu1 %v10863_v1  ;;  %v10942_v1 = vld [vmem:[#allocation13 + $0xd0] ss:$20 sps:$4 sm:$0xff]  }
 0x5b3   :  { %4958 = vmatpush1.bf16.msra.mxu1 %v10861_v2  ;;  %v10947_v2 = vld [vmem:[#allocation13 + $0xf4] ss:$20 sps:$4 sm:$0xff]  }
 0x5b4   :  { %4959 = vmatprep.subr.bf16.mxu1 %v10869_v3  ;;  %v10950_v3 = vld [vmem:[#allocation13 + $0xfc] ss:$20 sps:$4 sm:$0xff]  }
 0x5b7   :  { %4960 = vmatpush1.bf16.msra.mxu1 %v10867_v4  ;;  %v10945_v4 = vld [vmem:[#allocation13 + $0xf0] ss:$20 sps:$4 sm:$0xff]  }
 0x5b8   :  { %4961 = vmatprep.subr.bf16.mxu1 %v10875_v5  ;;  %v10948_v5 = vld [vmem:[#allocation13 + $0xf8] ss:$20 sps:$4 sm:$0xff]  }
 0x5bb   :  { %4962 = vmatpush1.bf16.msra.mxu1 %v10873_v10  ;;  %v10953_v10 = vld [vmem:[#allocation13 + $0x11c] ss:$20 sps:$4 sm:$0xff]  }
 0x5bc   :  { %4963 = vmatprep.subr.bf16.mxu1 %v10881_v12  ;;  %v10956_v12 = vld [vmem:[#allocation13 + $0x124] ss:$20 sps:$4 sm:$0xff]  }
 0x5bf   :  { %4964 = vmatpush1.bf16.msra.mxu1 %v10879_v13  ;;  %v10951_v13 = vld [vmem:[#allocation13 + $0x118] ss:$20 sps:$4 sm:$0xff]  }
 0x5c0   :  { %4965 = vmatprep.subr.bf16.mxu1 %v10887_v18  ;;  %v10954_v18 = vld [vmem:[#allocation13 + $0x120] ss:$20 sps:$4 sm:$0xff]  }
 0x5c3   :  { %4966 = vmatpush1.bf16.msra.mxu1 %v10885_v14  ;;  %v10959_v14 = vld [vmem:[#allocation13 + $0x144] ss:$20 sps:$4 sm:$0xff]  }
 0x5c4   :  { %4967 = vmatprep.subr.bf16.mxu1 %v10893_v15  ;;  %v10962_v15 = vld [vmem:[#allocation13 + $0x14c] ss:$20 sps:$4 sm:$0xff]  }
 0x5c7   :  { %4968 = vmatpush1.bf16.msra.mxu1 %v10891_v16  ;;  %v10957_v16 = vld [vmem:[#allocation13 + $0x140] ss:$20 sps:$4 sm:$0xff]  }
 0x5c8   :  { %4969 = vmatprep.subr.bf16.mxu1 %v10899_v23  ;;  %v10960_v23 = vld [vmem:[#allocation13 + $0x148] ss:$20 sps:$4 sm:$0xff]  }
 0x5cb   :  { %4970 = vmatpush1.bf16.msra.mxu1 %v10897_v20  ;;  %v10968_v20 = vld [vmem:[#allocation13 + $0x174] ss:$20 sps:$4 sm:$0xff]  }
 0x5cc   :  { %4971 = vmatprep.subr.bf16.mxu1 %v10905_v22  ;;  %v10966_v22 = vld [vmem:[#allocation13 + $0x170] ss:$20 sps:$4 sm:$0xff]  }
 0x5cf   :  { %4972 = vmatpush1.bf16.msra.mxu1 %v10903_v28  ;;  %v10974_v28 = vld [vmem:[#allocation13 + $0x19c] ss:$20 sps:$4 sm:$0xff]  }
 0x5d0   :  { %6085 = vmatprep.subr.bf16.mxu1 %v10911_v32  ;;  %v10972_v32 = vld [vmem:[#allocation13 + $0x198] ss:$20 sps:$4 sm:$0xff]  }
 0x665   :  { %v4523_v35 = vpop.f32.mrb[24].mxu1 }
 0x666   :  { %v4524_v38 = vadd.f32 %v4523_v35, %v4402_v34  ;;  %v4525_v40 = vpop.f32.mrb[25].mxu1  ;;  %v10975_v34 = vld [vmem:[#allocation13 + $0x1b8] ss:$20 sps:$4 sm:$0xff]  }
 0x667   :  { %v4526_v41 = vadd.f32 %v4525_v40, %v4406_v27  ;;  %v4527_v39 = vpop.f32.mrb[26].mxu1  ;;  %v10978_v27 = vld [vmem:[#allocation13 + $0x1c0] ss:$20 sps:$4 sm:$0xff]   ;;  %v10983_v35 = vld [vmem:[#allocation13 + $0x1e4] ss:$20 sps:$4 sm:$0xff]  }
 0x668   :  { %v4530_v42 = vmax.f32 %v4524_v38, 0.0  ;;  %v4528_v8 = vpop.f32.mrb[27].mxu1  ;;  %v10986_v38 = vld [vmem:[#allocation13 + $0x1ec] ss:$20 sps:$4 sm:$0xff]  }
 0x669   :  { %v4531_v43 = vmax.f32 %v4526_v41, 0.0  ;;  %v10981_v40 = vld [vmem:[#allocation13 + $0x1e0] ss:$20 sps:$4 sm:$0xff]   ;;  %v10984_v41 = vld [vmem:[#allocation13 + $0x1e8] ss:$20 sps:$4 sm:$0xff]  }
 0x66a   :  { %v4532_v46 = vpack.c.bf16 %v4530_v42, %v4530_v42  ;;  %v10989_v39 = vld [vmem:[#allocation13 + $0x20c] ss:$20 sps:$4 sm:$0xff]   ;;  %v10992_v42 = vld [vmem:[#allocation13 + $0x214] ss:$20 sps:$4 sm:$0xff]  }
 0x66b   :  { %v4533_v44 = vpack.c.bf16 %v4531_v43, %v4531_v43  ;;  %v10987_v8 = vld [vmem:[#allocation13 + $0x208] ss:$20 sps:$4 sm:$0xff]   ;;  %v10990_v43 = vld [vmem:[#allocation13 + $0x210] ss:$20 sps:$4 sm:$0xff]  }
 0x66d   :  { %4973 = vmatprep.mubr.bf16.mxu1 %v4533_v44  ;;  %5014 = vmatprep.mubr.bf16.mxu0 %v4533_v44  ;;  %v10995_v44 = vld [vmem:[#allocation13 + $0x234] ss:$20 sps:$4 sm:$0xff]  }
 0x66e   :  { %4974 = vmatmul.mubr.bf16.vlgmr.msra.gmra.mrb[28].mxu1 %v4532_v46  ;;  %5015 = vmatmul.mubr.bf16.vlgmr.msra.gmra.mrb[20].mxu0 %v4532_v46  ;;  %v10996_v46 = vld [vmem:[#allocation13 + $0x238] ss:$20 sps:$4 sm:$0xff]  }
 0x66f   :  { %6086 = vmatpush1.bf16.msra.mxu1 %v10909_v45  ;;  %6168 = vmatpush1.bf16.msra.mxu0 %v10912_v57  ;;  %v10998_v45 = vld [vmem:[#allocation13 + $0x23c] ss:$20 sps:$4 sm:$0xff]  }
 0x670   :  { %6087 = vmatprep.subr.bf16.mxu1 %v10917_v47  ;;  %6169 = vmatprep.subr.bf16.mxu0 %v10920_v48  ;;  %v10993_v57 = vld [vmem:[#allocation13 + $0x230] ss:$20 sps:$4 sm:$0xff]  }
 0x671   :  { %v11001_v47 = vld [vmem:[#allocation13 + $0x25c] ss:$20 sps:$4 sm:$0xff]   ;;  %v11004_v48 = vld [vmem:[#allocation13 + $0x264] ss:$20 sps:$4 sm:$0xff]  }
 0x673   :  { %6088 = vmatpush1.bf16.msra.mxu1 %v10915_v36  ;;  %6170 = vmatpush1.bf16.msra.mxu0 %v10918_v49  ;;  %v10999_v36 = vld [vmem:[#allocation13 + $0x258] ss:$20 sps:$4 sm:$0xff]   ;;  %v11002_v49 = vld [vmem:[#allocation13 + $0x260] ss:$20 sps:$4 sm:$0xff]  }
 0x674   :  { %6089 = vmatprep.subr.bf16.mxu1 %v10923_v50  ;;  %6171 = vmatprep.subr.bf16.mxu0 %v10926_v51  ;;  %v11007_v50 = vld [vmem:[#allocation13 + $0x284] ss:$20 sps:$4 sm:$0xff]   ;;  %v11010_v51 = vld [vmem:[#allocation13 + $0x28c] ss:$20 sps:$4 sm:$0xff]  }
 0x677   :  { %6090 = vmatpush1.bf16.msra.mxu1 %v10921_v53  ;;  %6172 = vmatpush1.bf16.msra.mxu0 %v10924_v52  ;;  %v12106_v53 = vld [vmem:[#allocation16 + $0x5] ss:$8 sm:$0xf] }
 0x678   :  { %6091 = vmatprep.subr.bf16.mxu1 %v10929_v54  ;;  %6173 = vmatprep.subr.bf16.mxu0 %v10932_v37  ;;  %v4604_v52 = vrot.slane %v12106_v53, %v12054_v9  ;;  %v4608_v54 = vrot.slane %v12106_v53, %v12057_v11  ;;  %v4616_v37 = vrot.slane %v12106_v53, %v12071_v30 }
 0x67b   :  { %6092 = vmatpush1.bf16.msra.mxu1 %v10927_v55  ;;  %6174 = vmatpush1.bf16.msra.mxu0 %v10930_v29 }
 0x67c   :  { %6093 = vmatprep.subr.bf16.mxu1 %v10935_v56  ;;  %6175 = vmatprep.subr.bf16.mxu0 %v10938_v58 }
 0x67f   :  { %6094 = vmatpush1.bf16.msra.mxu1 %v10933_v59  ;;  %6176 = vmatpush1.bf16.msra.mxu0 %v10936_v60 }
 0x680   :  { %6095 = vmatprep.subr.bf16.mxu1 %v10941_v61  ;;  %6177 = vmatprep.subr.bf16.mxu0 %v10944_v62 }
 0x683   :  { %6096 = vmatpush1.bf16.msra.mxu1 %v10939_v63  ;;  %6178 = vmatpush1.bf16.msra.mxu0 %v10942_v1 }
 0x684   :  { %6097 = vmatprep.subr.bf16.mxu1 %v10947_v2  ;;  %6179 = vmatprep.subr.bf16.mxu0 %v10950_v3 }
 0x687   :  { %6098 = vmatpush1.bf16.msra.mxu1 %v10945_v4  ;;  %6180 = vmatpush1.bf16.msra.mxu0 %v10948_v5 }
 0x688   :  { %6099 = vmatprep.subr.bf16.mxu1 %v10953_v10  ;;  %6181 = vmatprep.subr.bf16.mxu0 %v10956_v12  ;;  %v11005_v12 = vld [vmem:[#allocation13 + $0x280] ss:$20 sps:$4 sm:$0xff]  }
 0x68b   :  { %6100 = vmatpush1.bf16.msra.mxu1 %v10951_v13  ;;  %6182 = vmatpush1.bf16.msra.mxu0 %v10954_v18  ;;  %v11008_v13 = vld [vmem:[#allocation13 + $0x288] ss:$20 sps:$4 sm:$0xff]  }
 0x68c   :  { %6101 = vmatprep.subr.bf16.mxu1 %v10959_v14  ;;  %6183 = vmatprep.subr.bf16.mxu0 %v10962_v15  ;;  %v11013_v14 = vld [vmem:[#allocation13 + $0x2ac] ss:$20 sps:$4 sm:$0xff]   ;;  %v11016_v15 = vld [vmem:[#allocation13 + $0x2b4] ss:$20 sps:$4 sm:$0xff]  }
 0x68f   :  { %6102 = vmatpush1.bf16.msra.mxu1 %v10957_v16  ;;  %6184 = vmatpush1.bf16.msra.mxu0 %v10960_v23  ;;  %v11011_v23 = vld [vmem:[#allocation13 + $0x2a8] ss:$20 sps:$4 sm:$0xff]  }
 0x690   :  { %6103 = vmatprep.subr.bf16.mxu1 %v10965_v19  ;;  %6185 = vmatprep.subr.bf16.mxu0 %v10968_v20  ;;  %v11014_v19 = vld [vmem:[#allocation13 + $0x2b0] ss:$20 sps:$4 sm:$0xff]   ;;  %v11019_v20 = vld [vmem:[#allocation13 + $0x2d4] ss:$20 sps:$4 sm:$0xff]  }
 0x693   :  { %6104 = vmatpush1.bf16.msra.mxu1 %v10963_v21  ;;  %6186 = vmatpush1.bf16.msra.mxu0 %v10966_v22  ;;  %v11022_v21 = vld [vmem:[#allocation13 + $0x2dc] ss:$20 sps:$4 sm:$0xff]  }
 0x694   :  { %6105 = vmatprep.subr.bf16.mxu1 %v10971_v26  ;;  %6187 = vmatprep.subr.bf16.mxu0 %v10974_v28  ;;  %v11017_v22 = vld [vmem:[#allocation13 + $0x2d0] ss:$20 sps:$4 sm:$0xff]   ;;  %v11020_v26 = vld [vmem:[#allocation13 + $0x2d8] ss:$20 sps:$4 sm:$0xff]  }
 0x695   :  { %v11025_v28 = vld [vmem:[#allocation13 + $0x2fc] ss:$20 sps:$4 sm:$0xff]  }
 0x697   :  { %6106 = vmatpush1.bf16.msra.mxu1 %v10969_v31  ;;  %6188 = vmatpush1.bf16.msra.mxu0 %v10972_v32  ;;  %v11028_v31 = vld [vmem:[#allocation13 + $0x304] ss:$20 sps:$4 sm:$0xff]  }
 0x698   :  { %6107 = vmatprep.subr.bf16.mxu1 %v10977_v33  ;;  %6189 = vmatprep.subr.bf16.mxu0 %v10980_v25  ;;  %v11023_v32 = vld [vmem:[#allocation13 + $0x2f8] ss:$20 sps:$4 sm:$0xff]   ;;  %v11026_v33 = vld [vmem:[#allocation13 + $0x300] ss:$20 sps:$4 sm:$0xff]  }
 0x699   :  { %v11031_v25 = vld [vmem:[#allocation13 + $0x324] ss:$20 sps:$4 sm:$0xff]  }
 0x69b   :  { %6108 = vmatpush1.bf16.msra.mxu1 %v10975_v34  ;;  %6190 = vmatpush1.bf16.msra.mxu0 %v10978_v27  ;;  %v11034_v34 = vld [vmem:[#allocation13 + $0x32c] ss:$20 sps:$4 sm:$0xff]  }
 0x69c   :  { %6109 = vmatprep.subr.bf16.mxu1 %v10983_v35  ;;  %6191 = vmatprep.subr.bf16.mxu0 %v10986_v38  ;;  %v11029_v27 = vld [vmem:[#allocation13 + $0x320] ss:$20 sps:$4 sm:$0xff]   ;;  %v11032_v35 = vld [vmem:[#allocation13 + $0x328] ss:$20 sps:$4 sm:$0xff]  }
 0x69d   :  { %v11037_v38 = vld [vmem:[#allocation13 + $0x34c] ss:$20 sps:$4 sm:$0xff]  }
 0x69f   :  { %6110 = vmatpush1.bf16.msra.mxu1 %v10981_v40  ;;  %6192 = vmatpush1.bf16.msra.mxu0 %v10984_v41  ;;  %v11040_v40 = vld [vmem:[#allocation13 + $0x354] ss:$20 sps:$4 sm:$0xff]  }
 0x6a0   :  { %6111 = vmatprep.subr.bf16.mxu1 %v10989_v39  ;;  %6193 = vmatprep.subr.bf16.mxu0 %v10992_v42  ;;  %v11035_v41 = vld [vmem:[#allocation13 + $0x348] ss:$20 sps:$4 sm:$0xff]   ;;  %v11038_v39 = vld [vmem:[#allocation13 + $0x350] ss:$20 sps:$4 sm:$0xff]  }
 0x6a1   :  { %v11043_v42 = vld [vmem:[#allocation13 + $0x374] ss:$20 sps:$4 sm:$0xff]  }
 0x6a3   :  { %6112 = vmatpush1.bf16.msra.mxu1 %v10987_v8  ;;  %6194 = vmatpush1.bf16.msra.mxu0 %v10990_v43  ;;  %v11046_v8 = vld [vmem:[#allocation13 + $0x37c] ss:$20 sps:$4 sm:$0xff]  }
 0x6a4   :  { %6113 = vmatprep.subr.bf16.mxu1 %v10995_v44  ;;  %6195 = vmatprep.subr.bf16.mxu0 %v10998_v45  ;;  %v11041_v43 = vld [vmem:[#allocation13 + $0x370] ss:$20 sps:$4 sm:$0xff]   ;;  %v11044_v44 = vld [vmem:[#allocation13 + $0x378] ss:$20 sps:$4 sm:$0xff]  }
 0x6a5   :  { %v11049_v45 = vld [vmem:[#allocation13 + $0x39c] ss:$20 sps:$4 sm:$0xff]  }
 0x6a7   :  { %6114 = vmatpush1.bf16.msra.mxu1 %v10993_v57  ;;  %6196 = vmatpush1.bf16.msra.mxu0 %v10996_v46  ;;  %v11052_v57 = vld [vmem:[#allocation13 + $0x3a4] ss:$20 sps:$4 sm:$0xff]  }
 0x6a8   :  { %6115 = vmatprep.subr.bf16.mxu1 %v11001_v47  ;;  %6197 = vmatprep.subr.bf16.mxu0 %v11004_v48  ;;  %v11047_v46 = vld [vmem:[#allocation13 + $0x398] ss:$20 sps:$4 sm:$0xff]   ;;  %v11050_v47 = vld [vmem:[#allocation13 + $0x3a0] ss:$20 sps:$4 sm:$0xff]  }
 0x6a9   :  { %v11055_v48 = vld [vmem:[#allocation13 + $0x3c4] ss:$20 sps:$4 sm:$0xff]  }
 0x6ab   :  { %6116 = vmatpush1.bf16.msra.mxu1 %v10999_v36  ;;  %6198 = vmatpush1.bf16.msra.mxu0 %v11002_v49  ;;  %v11058_v36 = vld [vmem:[#allocation13 + $0x3cc] ss:$20 sps:$4 sm:$0xff]  }
 0x6ac   :  { %6126 = vmatprep.subr.bf16.mxu1 %v11007_v50  ;;  %6208 = vmatprep.subr.bf16.mxu0 %v11010_v51  ;;  %v11053_v49 = vld [vmem:[#allocation13 + $0x3c0] ss:$20 sps:$4 sm:$0xff]   ;;  %v11056_v50 = vld [vmem:[#allocation13 + $0x3c8] ss:$20 sps:$4 sm:$0xff]  }
 0x6ad   :  { %v11061_v51 = vld [vmem:[#allocation13 + $0x3ec] ss:$20 sps:$4 sm:$0xff]  }
 0x741   :  { %v4975_v55 = vpop.f32.mrb[28].mxu1  ;;  %v12114_v29 = vpop.f32.mrb[20].mxu0 }
 0x742   :  { %v4976_v56 = vadd.f32 %v4975_v55, %v4604_v52  ;;  %v4977_v58 = vpop.f32.mrb[29].mxu1  ;;  %v5018_v59 = vpop.f32.mrb[21].mxu0  ;;  %v11064_v52 = vld [vmem:[#allocation13 + $0x3f4] ss:$20 sps:$4 sm:$0xff]  }
 0x743   :  { %v4978_v60 = vadd.f32 %v4977_v58, %v4608_v54  ;;  %v5019_v61 = vadd.f32 %v5018_v59, %v4616_v37  ;;  %v4979_v62 = vpop.f32.mrb[30].mxu1  ;;  %v5020_v63 = vpop.f32.mrb[22].mxu0  ;;  %v11059_v54 = vld [vmem:[#allocation13 + $0x3e8] ss:$20 sps:$4 sm:$0xff]   ;;  %v11062_v37 = vld [vmem:[#allocation13 + $0x3f0] ss:$20 sps:$4 sm:$0xff]  }
 0x744   :  { %v5023_v1 = vmax.f32 %v4976_v56, 0.0  ;;  %v4980_v2 = vpop.f32.mrb[31].mxu1  ;;  %v5021_v3 = vpop.f32.mrb[23].mxu0  ;;  %v11067_v55 = vld [vmem:[#allocation13 + $0x414] ss:$20 sps:$4 sm:$0xff]  }
 0x745   :  { %v5024_v4 = vmax.f32 %v4978_v60, 0.0  ;;  %v5026_v5 = vmax.f32 %v5019_v61, 0.0  ;;  %v11070_v56 = vld [vmem:[#allocation13 + $0x41c] ss:$20 sps:$4 sm:$0xff]   ;;  %v11068_v59 = vld [vmem:[#allocation13 + $0x418] ss:$20 sps:$4 sm:$0xff]  }
 0x746   :  { %v12118_v18 = vpack.c.bf16 %v5023_v1, %v5023_v1  ;;  %v11065_v58 = vld [vmem:[#allocation13 + $0x410] ss:$20 sps:$4 sm:$0xff]   ;;  %v11071_v62 = vld [vmem:[#allocation13 + $0x438] ss:$20 sps:$4 sm:$0xff]   ;;  %v11074_v63 = vld [vmem:[#allocation13 + $0x440] ss:$20 sps:$4 sm:$0xff]  }
 0x747   :  { %v12116_v10 = vpack.c.bf16 %v5024_v4, %v5024_v4  ;;  %v12122_v16 = vpack.c.bf16 %v5026_v5, %v5026_v5  ;;  %v11073_v60 = vld [vmem:[#allocation13 + $0x43c] ss:$20 sps:$4 sm:$0xff]   ;;  %v11076_v61 = vld [vmem:[#allocation13 + $0x444] ss:$20 sps:$4 sm:$0xff]   ;;  %v11082_v2 = vld [vmem:[#allocation13 + $0x46c] ss:$20 sps:$4 sm:$0xff]  }
 0x748   :  { %v11079_v1 = vld [vmem:[#allocation13 + $0x464] ss:$20 sps:$4 sm:$0xff]   ;;  %v11077_v3 = vld [vmem:[#allocation13 + $0x460] ss:$20 sps:$4 sm:$0xff]   ;;  %v11080_v4 = vld [vmem:[#allocation13 + $0x468] ss:$20 sps:$4 sm:$0xff]  }
 0x749   :  { %6117 = vmatprep.mubr.bf16.mxu1 %v12116_v10  ;;  %6199 = vmatprep.mubr.bf16.mxu0 %v12116_v10  ;;  %v11085_v5 = vld [vmem:[#allocation13 + $0x48c] ss:$20 sps:$4 sm:$0xff]  }
 0x74a   :  { %6118 = vmatmul.mubr.bf16.vlgmr.msra.gmra.mrb[32].mxu1 %v12118_v18  ;;  %6200 = vmatmul.mubr.bf16.vlgmr.msra.gmra.mrb[24].mxu0 %v12118_v18 }
 0x74b   :  { %6127 = vmatpush1.bf16.msra.mxu1 %v11005_v12  ;;  %6209 = vmatpush1.bf16.msra.mxu0 %v11008_v13  ;;  %v11088_v12 = vld [vmem:[#allocation13 + $0x494] ss:$20 sps:$4 sm:$0xff]  }
 0x74c   :  { %6158 = vmatprep.mubr.bf16.mxu1 %v12122_v16  ;;  %6240 = vmatprep.mubr.bf16.mxu0 %v12122_v16  ;;  %v11083_v13 = vld [vmem:[#allocation13 + $0x488] ss:$20 sps:$4 sm:$0xff]  }
 0x74d   :  { %6128 = vmatprep.subr.bf16.mxu1 %v11013_v14  ;;  %6210 = vmatprep.subr.bf16.mxu0 %v11016_v15  ;;  %v11086_v14 = vld [vmem:[#allocation13 + $0x490] ss:$20 sps:$4 sm:$0xff]   ;;  %v4612_v15 = vrot.slane %v12106_v53, %v12068_v24 }
 0x74e   :  { %v11101_v53 = vld [vmem:[#allocation13 + $0x150] ss:$20 sps:$4 sm:$0xff]  }
 0x74f   :  { %6129 = vmatpush1.bf16.msra.mxu1 %v11011_v23  ;;  %6211 = vmatpush1.bf16.msra.mxu0 %v11014_v19  ;;  %v11091_v23 = vld [vmem:[#allocation13 + $0x4b4] ss:$20 sps:$4 sm:$0xff]   ;;  %v11094_v19 = vld [vmem:[#allocation13 + $0x4bc] ss:$20 sps:$4 sm:$0xff]  }
 0x750   :  { %6130 = vmatprep.subr.bf16.mxu1 %v11019_v20  ;;  %6212 = vmatprep.subr.bf16.mxu0 %v11022_v21  ;;  %v11089_v20 = vld [vmem:[#allocation13 + $0x4b0] ss:$20 sps:$4 sm:$0xff]   ;;  %v11092_v21 = vld [vmem:[#allocation13 + $0x4b8] ss:$20 sps:$4 sm:$0xff]  }
 0x753   :  { %6131 = vmatpush1.bf16.msra.mxu1 %v11017_v22  ;;  %6213 = vmatpush1.bf16.msra.mxu0 %v11020_v26  ;;  %v5017_v22 = vadd.f32 %v12114_v29, %v4612_v15  ;;  %v11097_v26 = vld [vmem:[#allocation13 + $0x4dc] ss:$20 sps:$4 sm:$0xff]   ;;  %v11103_v29 = vld [vmem:[#allocation13 + $0x178] ss:$20 sps:$4 sm:$0xff]   ;;  %v11122_v15 = vld [vmem:[#allocation13 + $0x2e0] ss:$20 sps:$4 sm:$0xff]  }
 0x754   :  { %6132 = vmatprep.subr.bf16.mxu1 %v11025_v28  ;;  %6214 = vmatprep.subr.bf16.mxu0 %v11028_v31  ;;  %v11100_v28 = vld [vmem:[#allocation13 + $0x4e4] ss:$20 sps:$4 sm:$0xff]  }
 0x755   :  { %v11095_v31 = vld [vmem:[#allocation13 + $0x4d8] ss:$20 sps:$4 sm:$0xff]  }
 0x757   :  { %6133 = vmatpush1.bf16.msra.mxu1 %v11023_v32  ;;  %6215 = vmatpush1.bf16.msra.mxu0 %v11026_v33  ;;  %v11098_v32 = vld [vmem:[#allocation13 + $0x4e0] ss:$20 sps:$4 sm:$0xff]   ;;  %v5025_v33 = vmax.f32 %v5017_v22, 0.0 }
 0x758   :  { %6134 = vmatprep.subr.bf16.mxu1 %v11031_v25  ;;  %6216 = vmatprep.subr.bf16.mxu0 %v11034_v34  ;;  %v11135_v25 = vld [vmem:[#allocation14 + $0x4] ss:$28 sps:$4 sm:$0xff]  }
 0x759   :  { %v11102_v34 = vld [vmem:[#allocation13 + $0x10] ss:$20 sps:$4 sm:$0xff]  }
 0x75a   :  { %v11207_v22 = vld [vmem:[#allocation14 + $0x2a4] ss:$28 sps:$4 sm:$0xff]  }
 0x75b   :  { %6135 = vmatpush1.bf16.msra.mxu1 %v11029_v27  ;;  %6217 = vmatpush1.bf16.msra.mxu0 %v11032_v35  ;;  %v12131_v27 = vpack.c.bf16 %v5025_v33, %v5025_v33  ;;  %v11133_v35 = vld [vmem:[#allocation14] ss:$28 sps:$4 sm:$0xff]   ;;  %v11128_v33 = vld [vmem:[#allocation13 + $0x358] ss:$20 sps:$4 sm:$0xff]  }
 0x75c   :  { %6136 = vmatprep.subr.bf16.mxu1 %v11037_v38  ;;  %6218 = vmatprep.subr.bf16.mxu0 %v11040_v40  ;;  %v11141_v38 = vld [vmem:[#allocation14 + $0x3c] ss:$28 sps:$4 sm:$0xff]  }
 0x75d   :  { %v11104_v40 = vld [vmem:[#allocation13 + $0x38] ss:$20 sps:$4 sm:$0xff]  }
 0x75f   :  { %6137 = vmatpush1.bf16.msra.mxu1 %v11035_v41  ;;  %6219 = vmatpush1.bf16.msra.mxu0 %v11038_v39  ;;  %v11105_v41 = vld [vmem:[#allocation13 + $0x1a0] ss:$20 sps:$4 sm:$0xff]  }
 0x760   :  { %6138 = vmatprep.subr.bf16.mxu1 %v11043_v42  ;;  %6220 = vmatprep.subr.bf16.mxu0 %v11046_v8  ;;  %v11139_v39 = vld [vmem:[#allocation14 + $0x38] ss:$28 sps:$4 sm:$0xff]  }
 0x761   :  { %v11147_v42 = vld [vmem:[#allocation14 + $0x74] ss:$28 sps:$4 sm:$0xff]  }
 0x762   :  { %v11106_v8 = vld [vmem:[#allocation13 + $0x60] ss:$20 sps:$4 sm:$0xff]  }
 0x763   :  { %6139 = vmatpush1.bf16.msra.mxu1 %v11041_v43  ;;  %6221 = vmatpush1.bf16.msra.mxu0 %v11044_v44  ;;  %v11107_v43 = vld [vmem:[#allocation13 + $0x1c8] ss:$20 sps:$4 sm:$0xff]   ;;  %v11145_v44 = vld [vmem:[#allocation14 + $0x70] ss:$28 sps:$4 sm:$0xff]  }
 0x764   :  { %6140 = vmatprep.subr.bf16.mxu1 %v11049_v45  ;;  %6222 = vmatprep.subr.bf16.mxu0 %v11052_v57  ;;  %v11153_v45 = vld [vmem:[#allocation14 + $0xac] ss:$28 sps:$4 sm:$0xff]  }
 0x765   :  { %v11108_v57 = vld [vmem:[#allocation13 + $0x88] ss:$20 sps:$4 sm:$0xff]  }
 0x767   :  { %6141 = vmatpush1.bf16.msra.mxu1 %v11047_v46  ;;  %6223 = vmatpush1.bf16.msra.mxu0 %v11050_v47  ;;  %v11109_v46 = vld [vmem:[#allocation13 + $0x1f0] ss:$20 sps:$4 sm:$0xff]  }
 0x768   :  { %6142 = vmatprep.subr.bf16.mxu1 %v11055_v48  ;;  %6224 = vmatprep.subr.bf16.mxu0 %v11058_v36  ;;  %v11159_v47 = vld [vmem:[#allocation14 + $0xe4] ss:$28 sps:$4 sm:$0xff]   ;;  %v11111_v36 = vld [vmem:[#allocation13 + $0x218] ss:$20 sps:$4 sm:$0xff]  }
 0x769   :  { %v11110_v48 = vld [vmem:[#allocation13 + $0xb0] ss:$20 sps:$4 sm:$0xff]  }
 0x76b   :  { %6143 = vmatpush1.bf16.msra.mxu1 %v11053_v49  ;;  %6225 = vmatpush1.bf16.msra.mxu0 %v11056_v50  ;;  %v11157_v49 = vld [vmem:[#allocation14 + $0xe0] ss:$28 sps:$4 sm:$0xff]  }
 0x76c   :  { %6144 = vmatprep.subr.bf16.mxu1 %v11061_v51  ;;  %6226 = vmatprep.subr.bf16.mxu0 %v11064_v52  ;;  %v11165_v50 = vld [vmem:[#allocation14 + $0x11c] ss:$28 sps:$4 sm:$0xff]   ;;  %v11113_v52 = vld [vmem:[#allocation13 + $0x240] ss:$20 sps:$4 sm:$0xff]  }
 0x76d   :  { %v11112_v51 = vld [vmem:[#allocation13 + $0xd8] ss:$20 sps:$4 sm:$0xff]  }
 0x76f   :  { %6145 = vmatpush1.bf16.msra.mxu1 %v11059_v54  ;;  %6227 = vmatpush1.bf16.msra.mxu0 %v11062_v37  ;;  %v11163_v54 = vld [vmem:[#allocation14 + $0x118] ss:$28 sps:$4 sm:$0xff]  }
 0x770   :  { %6146 = vmatprep.subr.bf16.mxu1 %v11067_v55  ;;  %6228 = vmatprep.subr.bf16.mxu0 %v11070_v56  ;;  %v11171_v37 = vld [vmem:[#allocation14 + $0x154] ss:$28 sps:$4 sm:$0xff]   ;;  %v11115_v56 = vld [vmem:[#allocation13 + $0x268] ss:$20 sps:$4 sm:$0xff]  }
 0x771   :  { %v11114_v55 = vld [vmem:[#allocation13 + $0x100] ss:$20 sps:$4 sm:$0xff]  }
 0x773   :  { %6147 = vmatpush1.bf16.msra.mxu1 %v11065_v58  ;;  %6229 = vmatpush1.bf16.msra.mxu0 %v11068_v59  ;;  %v11169_v58 = vld [vmem:[#allocation14 + $0x150] ss:$28 sps:$4 sm:$0xff]  }
 0x774   :  { %6148 = vmatprep.subr.bf16.mxu1 %v11073_v60  ;;  %6230 = vmatprep.subr.bf16.mxu0 %v11076_v61  ;;  %v11177_v59 = vld [vmem:[#allocation14 + $0x18c] ss:$28 sps:$4 sm:$0xff]   ;;  %v11117_v61 = vld [vmem:[#allocation13 + $0x3d0] ss:$20 sps:$4 sm:$0xff]  }
 0x775   :  { %v11116_v60 = vld [vmem:[#allocation13 + $0x128] ss:$20 sps:$4 sm:$0xff]  }
 0x777   :  { %6149 = vmatpush1.bf16.msra.mxu1 %v11071_v62  ;;  %6231 = vmatpush1.bf16.msra.mxu0 %v11074_v63  ;;  %v11175_v62 = vld [vmem:[#allocation14 + $0x188] ss:$28 sps:$4 sm:$0xff]  }
 0x778   :  { %6150 = vmatprep.subr.bf16.mxu1 %v11079_v1  ;;  %6232 = vmatprep.subr.bf16.mxu0 %v11082_v2  ;;  %v11183_v63 = vld [vmem:[#allocation14 + $0x1c4] ss:$28 sps:$4 sm:$0xff]   ;;  %v11119_v2 = vld [vmem:[#allocation13 + $0x3f8] ss:$20 sps:$4 sm:$0xff]  }
 0x779   :  { %v11118_v1 = vld [vmem:[#allocation13 + $0x290] ss:$20 sps:$4 sm:$0xff]  }
 0x77b   :  { %6151 = vmatpush1.bf16.msra.mxu1 %v11077_v3  ;;  %6233 = vmatpush1.bf16.msra.mxu0 %v11080_v4  ;;  %v11181_v3 = vld [vmem:[#allocation14 + $0x1c0] ss:$28 sps:$4 sm:$0xff]  }
 0x77c   :  { %6152 = vmatprep.subr.bf16.mxu1 %v11085_v5  ;;  %6234 = vmatprep.subr.bf16.mxu0 %v11088_v12  ;;  %v11189_v4 = vld [vmem:[#allocation14 + $0x1fc] ss:$28 sps:$4 sm:$0xff]   ;;  %v11121_v12 = vld [vmem:[#allocation13 + $0x420] ss:$20 sps:$4 sm:$0xff]  }
 0x77d   :  { %v11120_v5 = vld [vmem:[#allocation13 + $0x2b8] ss:$20 sps:$4 sm:$0xff]  }
 0x77f   :  { %6153 = vmatpush1.bf16.msra.mxu1 %v11083_v13  ;;  %6235 = vmatpush1.bf16.msra.mxu0 %v11086_v14  ;;  %v11187_v13 = vld [vmem:[#allocation14 + $0x1f8] ss:$28 sps:$4 sm:$0xff]  }
 0x780   :  { %6154 = vmatprep.subr.bf16.mxu1 %v11091_v23  ;;  %6236 = vmatprep.subr.bf16.mxu0 %v11094_v19  ;;  %v11195_v14 = vld [vmem:[#allocation14 + $0x234] ss:$28 sps:$4 sm:$0xff]   ;;  %v11123_v23 = vld [vmem:[#allocation13 + $0x448] ss:$20 sps:$4 sm:$0xff]  }
 0x781   :  { %v11193_v19 = vld [vmem:[#allocation14 + $0x230] ss:$28 sps:$4 sm:$0xff]  }
 0x783   :  { %6155 = vmatpush1.bf16.msra.mxu1 %v11089_v20  ;;  %6237 = vmatpush1.bf16.msra.mxu0 %v11092_v21  ;;  %v11201_v20 = vld [vmem:[#allocation14 + $0x26c] ss:$28 sps:$4 sm:$0xff]   ;;  %v11125_v21 = vld [vmem:[#allocation13 + $0x470] ss:$20 sps:$4 sm:$0xff]  }
 0x784   :  { %6156 = vmatprep.subr.bf16.mxu1 %v11097_v26  ;;  %6238 = vmatprep.subr.bf16.mxu0 %v11100_v28  ;;  %v11126_v26 = vld [vmem:[#allocation13 + $0x330] ss:$20 sps:$4 sm:$0xff]   ;;  %v11127_v28 = vld [vmem:[#allocation13 + $0x498] ss:$20 sps:$4 sm:$0xff]  }
 0x787   :  { %6157 = vmatpush1.bf16.msra.mxu1 %v11095_v31  ;;  %6239 = vmatpush1.bf16.msra.mxu0 %v11098_v32  ;;  %v11205_v31 = vld [vmem:[#allocation14 + $0x2a0] ss:$28 sps:$4 sm:$0xff]  }
 0x788   :  { %9791 = vmatprep.subr.bf16.mxu1 %v11101_v53  ;;  %8139 = vmatprep.subr.bf16.mxu0 %v11135_v25  ;;  %v11213_v32 = vld [vmem:[#allocation14 + $0x2dc] ss:$28 sps:$4 sm:$0xff]   ;;  %v11129_v53 = vld [vmem:[#allocation13 + $0x4c0] ss:$20 sps:$4 sm:$0xff]  }
 0x789   :  { %v11211_v25 = vld [vmem:[#allocation14 + $0x2d8] ss:$28 sps:$4 sm:$0xff]  }
 0x78a   :  { %6159 = vmatmul.mubr.bf16.vlgmr.msra.gmra.mrb[32].mxu1 %v12131_v27  ;;  %6241 = vmatmul.mubr.bf16.vlgmr.msra.gmra.mrb[24].mxu0 %v12131_v27 }
 0x78b   :  { %9792 = vmatpush3.bf16.msra.mxu1 %v11102_v34  ;;  %6281 = vmatprep.mubr.bf16.mxu1 %v12116_v10  ;;  %v11151_v10 = vld [vmem:[#allocation14 + $0xa8] ss:$28 sps:$4 sm:$0xff]   ;;  %v11130_v34 = vld [vmem:[#allocation13 + $0x380] ss:$20 sps:$4 sm:$0xff]  }
 0x78c   :  { %9793 = vmatprep.subr.bf16.mxu1 %v11103_v29  ;;  %8140 = vmatpush1.bf16.msra.mxu0 %v11133_v35  ;;  %v11131_v29 = vld [vmem:[#allocation13 + $0x4e8] ss:$20 sps:$4 sm:$0xff]  }
 0x78d   :  { %8141 = vmatprep.subr.bf16.mxu0 %v11141_v38  ;;  %v11132_v35 = vld [vmem:[#allocation13 + $0x3a8] ss:$20 sps:$4 sm:$0xff]  }
 0x78e   :  { %v11138_v38 = vld [vmem:[#allocation14 + $0xc] ss:$28 sps:$4 sm:$0xff]  }
 0x78f   :  { %9794 = vmatpush3.bf16.msra.mxu1 %v11104_v40  ;;  %v11136_v40 = vld [vmem:[#allocation14 + $0x8] ss:$28 sps:$4 sm:$0xff]  }
 0x790   :  { %9795 = vmatprep.subr.bf16.mxu1 %v11105_v41  ;;  %8142 = vmatpush1.bf16.msra.mxu0 %v11139_v39  ;;  %v11144_v41 = vld [vmem:[#allocation14 + $0x44] ss:$28 sps:$4 sm:$0xff]  }
 0x791   :  { %8143 = vmatprep.subr.bf16.mxu0 %v11147_v42  ;;  %v11142_v39 = vld [vmem:[#allocation14 + $0x40] ss:$28 sps:$4 sm:$0xff]  }
 0x792   :  { %v11150_v42 = vld [vmem:[#allocation14 + $0x7c] ss:$28 sps:$4 sm:$0xff]  }
 0x793   :  { %9796 = vmatpush3.bf16.msra.mxu1 %v11106_v8  ;;  %v11148_v8 = vld [vmem:[#allocation14 + $0x78] ss:$28 sps:$4 sm:$0xff]  }
 0x794   :  { %9797 = vmatprep.subr.bf16.mxu1 %v11107_v43  ;;  %8144 = vmatpush1.bf16.msra.mxu0 %v11145_v44  ;;  %v11156_v43 = vld [vmem:[#allocation14 + $0xb4] ss:$28 sps:$4 sm:$0xff]  }
 0x795   :  { %8145 = vmatprep.subr.bf16.mxu0 %v11153_v45  ;;  %v11154_v44 = vld [vmem:[#allocation14 + $0xb0] ss:$28 sps:$4 sm:$0xff]  }
 0x796   :  { %v11162_v45 = vld [vmem:[#allocation14 + $0xec] ss:$28 sps:$4 sm:$0xff]  }
 0x797   :  { %9798 = vmatpush3.bf16.msra.mxu1 %v11108_v57  ;;  %v11160_v57 = vld [vmem:[#allocation14 + $0xe8] ss:$28 sps:$4 sm:$0xff]  }
 0x798   :  { %9799 = vmatprep.subr.bf16.mxu1 %v11109_v46  ;;  %8146 = vmatpush1.bf16.msra.mxu0 %v11151_v10  ;;  %v11168_v46 = vld [vmem:[#allocation14 + $0x124] ss:$28 sps:$4 sm:$0xff]  }
 0x799   :  { %8147 = vmatprep.subr.bf16.mxu0 %v11159_v47  ;;  %v11166_v10 = vld [vmem:[#allocation14 + $0x120] ss:$28 sps:$4 sm:$0xff]   ;;  %v11219_v47 = vld [vmem:[#allocation14 + $0x314] ss:$28 sps:$4 sm:$0xff]  }
 0x79b   :  { %9800 = vmatpush3.bf16.msra.mxu1 %v11110_v48  ;;  %v11217_v48 = vld [vmem:[#allocation14 + $0x310] ss:$28 sps:$4 sm:$0xff]  }
 0x79c   :  { %9801 = vmatprep.subr.bf16.mxu1 %v11111_v36  ;;  %8148 = vmatpush1.bf16.msra.mxu0 %v11157_v49  ;;  %v11172_v36 = vld [vmem:[#allocation14 + $0x158] ss:$28 sps:$4 sm:$0xff]   ;;  %v11225_v49 = vld [vmem:[#allocation14 + $0x34c] ss:$28 sps:$4 sm:$0xff]  }
 0x79d   :  { %8149 = vmatprep.subr.bf16.mxu0 %v11165_v50  ;;  %v11180_v50 = vld [vmem:[#allocation14 + $0x194] ss:$28 sps:$4 sm:$0xff]  }
 0x79f   :  { %9802 = vmatpush3.bf16.msra.mxu1 %v11112_v51  ;;  %v11223_v51 = vld [vmem:[#allocation14 + $0x348] ss:$28 sps:$4 sm:$0xff]  }
 0x7a0   :  { %9803 = vmatprep.subr.bf16.mxu1 %v11113_v52  ;;  %8150 = vmatpush1.bf16.msra.mxu0 %v11163_v54  ;;  %v11178_v52 = vld [vmem:[#allocation14 + $0x190] ss:$28 sps:$4 sm:$0xff]   ;;  %v11231_v54 = vld [vmem:[#allocation14 + $0x384] ss:$28 sps:$4 sm:$0xff]  }
 0x7a1   :  { %8151 = vmatprep.subr.bf16.mxu0 %v11171_v37  ;;  %v11186_v37 = vld [vmem:[#allocation14 + $0x1cc] ss:$28 sps:$4 sm:$0xff]  }
 0x7a3   :  { %9804 = vmatpush3.bf16.msra.mxu1 %v11114_v55  ;;  %v11184_v55 = vld [vmem:[#allocation14 + $0x1c8] ss:$28 sps:$4 sm:$0xff]  }
 0x7a4   :  { %9805 = vmatprep.subr.bf16.mxu1 %v11115_v56  ;;  %8152 = vmatpush1.bf16.msra.mxu0 %v11169_v58  ;;  %v11192_v56 = vld [vmem:[#allocation14 + $0x204] ss:$28 sps:$4 sm:$0xff]  }
 0x7a5   :  { %8153 = vmatprep.subr.bf16.mxu0 %v11177_v59  ;;  %v11190_v58 = vld [vmem:[#allocation14 + $0x200] ss:$28 sps:$4 sm:$0xff]  }
 0x7a6   :  { %v11198_v59 = vld [vmem:[#allocation14 + $0x23c] ss:$28 sps:$4 sm:$0xff]  }
 0x7a7   :  { %9806 = vmatpush3.bf16.msra.mxu1 %v11116_v60  ;;  %v11196_v60 = vld [vmem:[#allocation14 + $0x238] ss:$28 sps:$4 sm:$0xff]  }
 0x7a8   :  { %9813 = vmatprep.subr.bf16.mxu1 %v11117_v61  ;;  %8154 = vmatpush1.bf16.msra.mxu0 %v11175_v62  ;;  %v11204_v61 = vld [vmem:[#allocation14 + $0x274] ss:$28 sps:$4 sm:$0xff]  }
 0x7a9   :  { %8155 = vmatprep.subr.bf16.mxu0 %v11183_v63  ;;  %v11202_v62 = vld [vmem:[#allocation14 + $0x270] ss:$28 sps:$4 sm:$0xff]  }
 0x7aa   :  { %6282 = vmatmul.mubr.bf16.vlgmr.msra.gmra.mrb[36].mxu1 %v12118_v18  ;;  %v11124_v18 = vld [vmem:[#allocation13 + $0x308] ss:$20 sps:$4 sm:$0xff]  }
 0x7ab   :  { %9814 = vmatpush3.bf16.msra.mxu1 %v11118_v1  ;;  %6321 = vmatprep.mubr.bf16.mxu1 %v12122_v16  ;;  %v11199_v16 = vld [vmem:[#allocation14 + $0x268] ss:$28 sps:$4 sm:$0xff]  }
 0x7ac   :  { %9815 = vmatprep.subr.bf16.mxu1 %v11119_v2  ;;  %8156 = vmatpush1.bf16.msra.mxu0 %v11181_v3  ;;  %v11210_v63 = vld [vmem:[#allocation14 + $0x2ac] ss:$28 sps:$4 sm:$0xff]   ;;  %v11216_v2 = vld [vmem:[#allocation14 + $0x2e4] ss:$28 sps:$4 sm:$0xff]  }
 0x7ad   :  { %8157 = vmatprep.subr.bf16.mxu0 %v11189_v4  ;;  %v11208_v1 = vld [vmem:[#allocation14 + $0x2a8] ss:$28 sps:$4 sm:$0xff]   ;;  %v11214_v3 = vld [vmem:[#allocation14 + $0x2e0] ss:$28 sps:$4 sm:$0xff]  }
 0x7ae   :  { %v11222_v4 = vld [vmem:[#allocation14 + $0x31c] ss:$28 sps:$4 sm:$0xff]  }
 0x7af   :  { %9816 = vmatpush3.bf16.msra.mxu1 %v11120_v5  ;;  %v11220_v5 = vld [vmem:[#allocation14 + $0x318] ss:$28 sps:$4 sm:$0xff]  }
 0x7b0   :  { %9817 = vmatprep.subr.bf16.mxu1 %v11121_v12  ;;  %8158 = vmatpush1.bf16.msra.mxu0 %v11187_v13  ;;  %v11228_v12 = vld [vmem:[#allocation14 + $0x354] ss:$28 sps:$4 sm:$0xff]  }
 0x7b1   :  { %8159 = vmatprep.subr.bf16.mxu0 %v11195_v14  ;;  %v11226_v13 = vld [vmem:[#allocation14 + $0x350] ss:$28 sps:$4 sm:$0xff]  }
 0x7b2   :  { %v11234_v14 = vld [vmem:[#allocation14 + $0x38c] ss:$28 sps:$4 sm:$0xff]  }
 0x7b3   :  { %9818 = vmatpush3.bf16.msra.mxu1 %v11122_v15  ;;  %v5224_v15 = vld [vmem:[#allocation16 + $0x6] ss:$8 sm:$0xf] }
 0x7b4   :  { %9819 = vmatprep.subr.bf16.mxu1 %v11123_v23  ;;  %8160 = vmatpush1.bf16.msra.mxu0 %v11193_v19  ;;  %v5225_v23 = vld [vmem:[#allocation16 + $0x6] ss:$8 sm:$0x10] }
 0x7b5   :  { %8161 = vmatprep.subr.bf16.mxu0 %v11201_v20  ;;  %v12139_v19 = vor.u32 %v5225_v23, %v5224_v15  ;;  %v11274_v15 = vld [vmem:[#allocation14 + $0x510] ss:$28 sps:$4 sm:$0xff]  }
 0x7b7   :  { %9820 = vmatpush3.bf16.msra.mxu1 %v11124_v18  ;;  %v5231_v20 = vrot.slane %v12139_v19, %v12054_v9  ;;  %v5235_v18 = vrot.slane %v12139_v19, %v12057_v11 }
 0x7b8   :  { %9821 = vmatprep.subr.bf16.mxu1 %v11125_v21  ;;  %8162 = vmatpush1.bf16.msra.mxu0 %v11199_v16  ;;  %v5243_v21 = vrot.slane %v12139_v19, %v12071_v30 }
 0x7b9   :  { %8163 = vmatprep.subr.bf16.mxu0 %v11207_v22 }
 0x7bb   :  { %9822 = vmatpush3.bf16.msra.mxu1 %v11126_v26 }
 0x7bc   :  { %9823 = vmatprep.subr.bf16.mxu1 %v11127_v28  ;;  %8164 = vmatpush1.bf16.msra.mxu0 %v11205_v31 }
 0x7bd   :  { %8165 = vmatprep.subr.bf16.mxu0 %v11213_v32 }
 0x7bf   :  { %9824 = vmatpush3.bf16.msra.mxu1 %v11128_v33 }
 0x7c0   :  { %9825 = vmatprep.subr.bf16.mxu1 %v11129_v53  ;;  %8166 = vmatpush1.bf16.msra.mxu0 %v11211_v25 }
 0x7c1   :  { %8167 = vmatprep.subr.bf16.mxu0 %v11219_v47  ;;  %v11246_v47 = vld [vmem:[#allocation14 + $0x3fc] ss:$28 sps:$4 sm:$0xff]  }
 0x7c3   :  { %9826 = vmatpush3.bf16.msra.mxu1 %v11130_v34 }
 0x7c4   :  { %9827 = vmatprep.subr.bf16.mxu1 %v11131_v29  ;;  %8168 = vmatpush1.bf16.msra.mxu0 %v11217_v48  ;;  %v11244_v48 = vld [vmem:[#allocation14 + $0x3f8] ss:$28 sps:$4 sm:$0xff]  }
 0x7c5   :  { %8169 = vmatprep.subr.bf16.mxu0 %v11225_v49  ;;  %v11252_v49 = vld [vmem:[#allocation14 + $0x434] ss:$28 sps:$4 sm:$0xff]  }
 0x7c7   :  { %9828 = vmatpush3.bf16.msra.mxu1 %v11132_v35 }
 0x7c8   :  { %8262 = vmatprep.subr.bf16.mxu1 %v11138_v38  ;;  %8170 = vmatpush1.bf16.msra.mxu0 %v11223_v51  ;;  %v11250_v51 = vld [vmem:[#allocation14 + $0x430] ss:$28 sps:$4 sm:$0xff]  }
 0x7c9   :  { %8180 = vmatprep.subr.bf16.mxu0 %v11231_v54  ;;  %v11258_v54 = vld [vmem:[#allocation14 + $0x46c] ss:$28 sps:$4 sm:$0xff]  }
 0x7ca   :  { %6322 = vmatmul.mubr.bf16.vlgmr.msra.gmra.mrb[40].mxu1 %v12131_v27  ;;  %v11174_v27 = vld [vmem:[#allocation14 + $0x15c] ss:$28 sps:$4 sm:$0xff]  }
 0x7cb   :  { %8263 = vmatpush1.bf16.msra.mxu1 %v11136_v40 }
 0x7cc   :  { %8264 = vmatprep.subr.bf16.mxu1 %v11144_v41 }
 0x7cf   :  { %8265 = vmatpush1.bf16.msra.mxu1 %v11142_v39  ;;  %v11229_v39 = vld [vmem:[#allocation14 + $0x380] ss:$28 sps:$4 sm:$0xff]  }
 0x7d0   :  { %8266 = vmatprep.subr.bf16.mxu1 %v11150_v42  ;;  %v11232_v42 = vld [vmem:[#allocation14 + $0x388] ss:$28 sps:$4 sm:$0xff]  }
 0x7d3   :  { %8267 = vmatpush1.bf16.msra.mxu1 %v11148_v8 }
 0x7d4   :  { %8268 = vmatprep.subr.bf16.mxu1 %v11156_v43  ;;  %v11237_v43 = vld [vmem:[#allocation14 + $0x3bc] ss:$28 sps:$4 sm:$0xff]  }
 0x7d7   :  { %8269 = vmatpush1.bf16.msra.mxu1 %v11154_v44  ;;  %v11240_v44 = vld [vmem:[#allocation14 + $0x3c4] ss:$28 sps:$4 sm:$0xff]  }
 0x7d8   :  { %8270 = vmatprep.subr.bf16.mxu1 %v11162_v45 }
 0x7db   :  { %8271 = vmatpush1.bf16.msra.mxu1 %v11160_v57  ;;  %v11235_v57 = vld [vmem:[#allocation14 + $0x3b8] ss:$28 sps:$4 sm:$0xff]  }
 0x7dc   :  { %8272 = vmatprep.subr.bf16.mxu1 %v11168_v46  ;;  %v11238_v46 = vld [vmem:[#allocation14 + $0x3c0] ss:$28 sps:$4 sm:$0xff]  }
 0x7df   :  { %8273 = vmatpush1.bf16.msra.mxu1 %v11166_v10  ;;  %v11243_v10 = vld [vmem:[#allocation14 + $0x3f4] ss:$28 sps:$4 sm:$0xff]  }
 0x7e0   :  { %8274 = vmatprep.subr.bf16.mxu1 %v11174_v27  ;;  %v11241_v27 = vld [vmem:[#allocation14 + $0x3f0] ss:$28 sps:$4 sm:$0xff]  }
 0x7e3   :  { %8275 = vmatpush1.bf16.msra.mxu1 %v11172_v36  ;;  %v11249_v36 = vld [vmem:[#allocation14 + $0x42c] ss:$28 sps:$4 sm:$0xff]  }
 0x7e4   :  { %8276 = vmatprep.subr.bf16.mxu1 %v11180_v50  ;;  %v11247_v50 = vld [vmem:[#allocation14 + $0x428] ss:$28 sps:$4 sm:$0xff]  }
 0x7e7   :  { %8277 = vmatpush1.bf16.msra.mxu1 %v11178_v52  ;;  %v11255_v52 = vld [vmem:[#allocation14 + $0x464] ss:$28 sps:$4 sm:$0xff]  }
 0x7e8   :  { %8278 = vmatprep.subr.bf16.mxu1 %v11186_v37  ;;  %v11253_v37 = vld [vmem:[#allocation14 + $0x460] ss:$28 sps:$4 sm:$0xff]  }
 0x7eb   :  { %8279 = vmatpush1.bf16.msra.mxu1 %v11184_v55  ;;  %v11256_v55 = vld [vmem:[#allocation14 + $0x468] ss:$28 sps:$4 sm:$0xff]  }
 0x7ec   :  { %8280 = vmatprep.subr.bf16.mxu1 %v11192_v56  ;;  %v11261_v56 = vld [vmem:[#allocation14 + $0x49c] ss:$28 sps:$4 sm:$0xff]  }
 0x7ef   :  { %8281 = vmatpush1.bf16.msra.mxu1 %v11190_v58  ;;  %v11264_v58 = vld [vmem:[#allocation14 + $0x4a4] ss:$28 sps:$4 sm:$0xff]  }
 0x7f0   :  { %8282 = vmatprep.subr.bf16.mxu1 %v11198_v59  ;;  %v11259_v59 = vld [vmem:[#allocation14 + $0x498] ss:$28 sps:$4 sm:$0xff]  }
 0x7f3   :  { %8283 = vmatpush1.bf16.msra.mxu1 %v11196_v60  ;;  %v11262_v60 = vld [vmem:[#allocation14 + $0x4a0] ss:$28 sps:$4 sm:$0xff]  }
 0x7f4   :  { %8284 = vmatprep.subr.bf16.mxu1 %v11204_v61  ;;  %v11267_v61 = vld [vmem:[#allocation14 + $0x4d4] ss:$28 sps:$4 sm:$0xff]  }
 0x7f7   :  { %8285 = vmatpush1.bf16.msra.mxu1 %v11202_v62  ;;  %v11270_v62 = vld [vmem:[#allocation14 + $0x4dc] ss:$28 sps:$4 sm:$0xff]  }
 0x7f8   :  { %8286 = vmatprep.subr.bf16.mxu1 %v11210_v63  ;;  %v11265_v63 = vld [vmem:[#allocation14 + $0x4d0] ss:$28 sps:$4 sm:$0xff]  }
 0x7fb   :  { %8287 = vmatpush1.bf16.msra.mxu1 %v11208_v1  ;;  %v11268_v1 = vld [vmem:[#allocation14 + $0x4d8] ss:$28 sps:$4 sm:$0xff]  }
 0x7fc   :  { %8288 = vmatprep.subr.bf16.mxu1 %v11216_v2  ;;  %v11273_v2 = vld [vmem:[#allocation14 + $0x50c] ss:$28 sps:$4 sm:$0xff]  }
 0x7ff   :  { %8289 = vmatpush1.bf16.msra.mxu1 %v11214_v3  ;;  %v11276_v3 = vld [vmem:[#allocation14 + $0x514] ss:$28 sps:$4 sm:$0xff]  }
 0x800   :  { %8290 = vmatprep.subr.bf16.mxu1 %v11222_v4 }
 0x803   :  { %8291 = vmatpush1.bf16.msra.mxu1 %v11220_v5 }
 0x804   :  { %8292 = vmatprep.subr.bf16.mxu1 %v11228_v12 }
 0x807   :  { %8293 = vmatpush1.bf16.msra.mxu1 %v11226_v13 }
 0x808   :  { %8303 = vmatprep.subr.bf16.mxu1 %v11234_v14  ;;  %v11271_v14 = vld [vmem:[#allocation14 + $0x508] ss:$28 sps:$4 sm:$0xff]  }
 0x85d   :  { %v6160_v16 = vpop.f32.mrb[32].mxu1  ;;  %v12147_v22 = vpop.f32.mrb[24].mxu0 }
 0x85e   :  { %v9940_v26 = vadd.f32 %v6160_v16, %v5231_v20  ;;  %v6162_v28 = vpop.f32.mrb[33].mxu1  ;;  %v6244_v31 = vpop.f32.mrb[25].mxu0  ;;  %v11279_v20 = vld [vmem:[#allocation14 + $0x544] ss:$28 sps:$4 sm:$0xff]  }
 0x85f   :  { %v9941_v32 = vadd.f32 %v6162_v28, %v5235_v18  ;;  %v9943_v33 = vadd.f32 %v6244_v31, %v5243_v21  ;;  %v6164_v53 = vpop.f32.mrb[34].mxu1  ;;  %v6246_v25 = vpop.f32.mrb[26].mxu0  ;;  %v11282_v18 = vld [vmem:[#allocation14 + $0x54c] ss:$28 sps:$4 sm:$0xff]   ;;  %v11277_v21 = vld [vmem:[#allocation14 + $0x540] ss:$28 sps:$4 sm:$0xff]  }
 0x860   :  { %v6329_v34 = vmax.f32 %v9940_v26, 0.0  ;;  %v6165_v29 = vpop.f32.mrb[35].mxu1  ;;  %v6247_v35 = vpop.f32.mrb[27].mxu0  ;;  %v11280_v16 = vld [vmem:[#allocation14 + $0x548] ss:$28 sps:$4 sm:$0xff]  }
 0x861   :  { %v6330_v38 = vmax.f32 %v9941_v32, 0.0  ;;  %v6332_v40 = vmax.f32 %v9943_v33, 0.0  ;;  %v11285_v26 = vld [vmem:[#allocation14 + $0x57c] ss:$28 sps:$4 sm:$0xff]   ;;  %v11288_v28 = vld [vmem:[#allocation14 + $0x584] ss:$28 sps:$4 sm:$0xff]  }
 0x862   :  { %v12151_v8 = vpack.c.bf16 %v6329_v34, %v6329_v34  ;;  %v11283_v31 = vld [vmem:[#allocation14 + $0x578] ss:$28 sps:$4 sm:$0xff]   ;;  %v11286_v32 = vld [vmem:[#allocation14 + $0x580] ss:$28 sps:$4 sm:$0xff]   ;;  %v11289_v25 = vld [vmem:[#allocation14 + $0x5b0] ss:$28 sps:$4 sm:$0xff]  }
 0x863   :  { %v12149_v41 = vpack.c.bf16 %v6330_v38, %v6330_v38  ;;  %v12155_v45 = vpack.c.bf16 %v6332_v40, %v6332_v40  ;;  %v11291_v33 = vld [vmem:[#allocation14 + $0x5b4] ss:$28 sps:$4 sm:$0xff]   ;;  %v11294_v53 = vld [vmem:[#allocation14 + $0x5bc] ss:$28 sps:$4 sm:$0xff]   ;;  %v11297_v29 = vld [vmem:[#allocation14 + $0x5ec] ss:$28 sps:$4 sm:$0xff]  }
 0x864   :  { %v11292_v34 = vld [vmem:[#allocation14 + $0x5b8] ss:$28 sps:$4 sm:$0xff]   ;;  %v11295_v38 = vld [vmem:[#allocation14 + $0x5e8] ss:$28 sps:$4 sm:$0xff]   ;;  %v11298_v40 = vld [vmem:[#allocation14 + $0x5f0] ss:$28 sps:$4 sm:$0xff]  }
 0x865   :  { %8171 = vmatprep.mubr.bf16.mxu0 %v12149_v41  ;;  %8294 = vmatprep.mubr.bf16.mxu1 %v12149_v41  ;;  %v11300_v35 = vld [vmem:[#allocation14 + $0x5f4] ss:$28 sps:$4 sm:$0xff]  }
 0x866   :  { %8172 = vmatmul.mubr.bf16.vlgmr.msra.gmra.mrb[28].mxu0 %v12151_v8  ;;  %8295 = vmatmul.mubr.bf16.vlgmr.msra.gmra.mrb[44].mxu1 %v12151_v8 }
 0x867   :  { %8181 = vmatpush1.bf16.msra.mxu0 %v11229_v39  ;;  %8304 = vmatpush1.bf16.msra.mxu1 %v11232_v42  ;;  %v11303_v39 = vld [vmem:[#allocation14 + $0x624] ss:$28 sps:$4 sm:$0xff]   ;;  %v11306_v42 = vld [vmem:[#allocation14 + $0x62c] ss:$28 sps:$4 sm:$0xff]  }
 0x868   :  { %8212 = vmatprep.mubr.bf16.mxu0 %v12155_v45  ;;  %8335 = vmatprep.mubr.bf16.mxu1 %v12155_v45 }
 0x869   :  { %8182 = vmatprep.subr.bf16.mxu0 %v11237_v43  ;;  %8305 = vmatprep.subr.bf16.mxu1 %v11240_v44  ;;  %v11301_v43 = vld [vmem:[#allocation14 + $0x620] ss:$28 sps:$4 sm:$0xff]   ;;  %v11304_v44 = vld [vmem:[#allocation14 + $0x628] ss:$28 sps:$4 sm:$0xff]  }
 0x86b   :  { %8183 = vmatpush1.bf16.msra.mxu0 %v11235_v57  ;;  %8306 = vmatpush1.bf16.msra.mxu1 %v11238_v46  ;;  %v11309_v57 = vld [vmem:[#allocation14 + $0x65c] ss:$28 sps:$4 sm:$0xff]   ;;  %v11312_v46 = vld [vmem:[#allocation14 + $0x664] ss:$28 sps:$4 sm:$0xff]  }
 0x86c   :  { %8184 = vmatprep.subr.bf16.mxu0 %v11243_v10  ;;  %8307 = vmatprep.subr.bf16.mxu1 %v11246_v47  ;;  %v11307_v10 = vld [vmem:[#allocation14 + $0x658] ss:$28 sps:$4 sm:$0xff]   ;;  %v11310_v47 = vld [vmem:[#allocation14 + $0x660] ss:$28 sps:$4 sm:$0xff]  }
 0x86f   :  { %8185 = vmatpush1.bf16.msra.mxu0 %v11241_v27  ;;  %8308 = vmatpush1.bf16.msra.mxu1 %v11244_v48  ;;  %v5239_v27 = vrot.slane %v12139_v19, %v12068_v24  ;;  %v11315_v48 = vld [vmem:[#allocation14 + $0x694] ss:$28 sps:$4 sm:$0xff]  }
 0x870   :  { %8186 = vmatprep.subr.bf16.mxu0 %v11249_v36  ;;  %8309 = vmatprep.subr.bf16.mxu1 %v11252_v49  ;;  %v11318_v36 = vld [vmem:[#allocation14 + $0x69c] ss:$28 sps:$4 sm:$0xff]   ;;  %v5247_v49 = vrot.slane %v12139_v19, %v12082_v17  ;;  %v11322_v19 = vld [vmem:[#allocation14 + $0x6d0] ss:$28 sps:$4 sm:$0xff]  }
 0x873   :  { %8187 = vmatpush1.bf16.msra.mxu0 %v11247_v50  ;;  %8310 = vmatpush1.bf16.msra.mxu1 %v11250_v51  ;;  %v11313_v50 = vld [vmem:[#allocation14 + $0x690] ss:$28 sps:$4 sm:$0xff]   ;;  %v11316_v51 = vld [vmem:[#allocation14 + $0x698] ss:$28 sps:$4 sm:$0xff]  }
 0x874   :  { %8188 = vmatprep.subr.bf16.mxu0 %v11255_v52  ;;  %8311 = vmatprep.subr.bf16.mxu1 %v11258_v54  ;;  %v9942_v52 = vadd.f32 %v12147_v22, %v5239_v27  ;;  %v11321_v54 = vld [vmem:[#allocation14 + $0x6cc] ss:$28 sps:$4 sm:$0xff]   ;;  %v11375_v27 = vld [vmem:[#allocation14 + $0x14] ss:$28 sps:$4 sm:$0xff]  }
 0x875   :  { %v11330_v22 = vld [vmem:[#allocation14 + $0x70c] ss:$28 sps:$4 sm:$0xff]  }
 0x877   :  { %8189 = vmatpush1.bf16.msra.mxu0 %v11253_v37  ;;  %8312 = vmatpush1.bf16.msra.mxu1 %v11256_v55  ;;  %v11324_v37 = vld [vmem:[#allocation14 + $0x6d4] ss:$28 sps:$4 sm:$0xff]  }
 0x878   :  { %8190 = vmatprep.subr.bf16.mxu0 %v11261_v56  ;;  %8313 = vmatprep.subr.bf16.mxu1 %v11264_v58 }
 0x87b   :  { %8191 = vmatpush1.bf16.msra.mxu0 %v11259_v59  ;;  %8314 = vmatpush1.bf16.msra.mxu1 %v11262_v60 }
 0x87c   :  { %8192 = vmatprep.subr.bf16.mxu0 %v11267_v61  ;;  %8315 = vmatprep.subr.bf16.mxu1 %v11270_v62  ;;  %v11319_v61 = vld [vmem:[#allocation14 + $0x6c8] ss:$28 sps:$4 sm:$0xff]   ;;  %v6331_v62 = vmax.f32 %v9942_v52, 0.0  ;;  %v11381_v52 = vld [vmem:[#allocation14 + $0x210] ss:$28 sps:$4 sm:$0xff]  }
 0x87d   :  { %v9807_v4 = vpop.f32.mrb[36].mxu1 }
 0x87e   :  { %v9808_v5 = vpop.f32.mrb[37].mxu1 }
 0x87f   :  { %v12161_v12 = vadd.f32 %v9808_v5, %v9807_v4  ;;  %8193 = vmatpush1.bf16.msra.mxu0 %v11265_v63  ;;  %8316 = vmatpush1.bf16.msra.mxu1 %v11268_v1  ;;  %v9810_v13 = vpop.f32.mrb[38].mxu1  ;;  %v11327_v1 = vld [vmem:[#allocation14 + $0x704] ss:$28 sps:$4 sm:$0xff]   ;;  %v12171_v5 = vpack.c.bf16 %v6331_v62, %v6331_v62 }
 0x880   :  { %v9811_v23 = vpop.f32.mrb[39].mxu1  ;;  %8194 = vmatprep.subr.bf16.mxu0 %v11273_v2  ;;  %8317 = vmatprep.subr.bf16.mxu1 %v11276_v3  ;;  %v11325_v3 = vld [vmem:[#allocation14 + $0x700] ss:$28 sps:$4 sm:$0xff]   ;;  %v11328_v4 = vld [vmem:[#allocation14 + $0x708] ss:$28 sps:$4 sm:$0xff]  }
 0x881   :  { %v6284_v58 = vadd.f32 %v12161_v12, %v5247_v49  ;;  %v11333_v12 = vld [vmem:[#allocation14 + $0x73c] ss:$28 sps:$4 sm:$0xff]   ;;  %v11336_v13 = vld [vmem:[#allocation14 + $0x744] ss:$28 sps:$4 sm:$0xff]   ;;  %v11339_v23 = vld [vmem:[#allocation14 + $0x774] ss:$28 sps:$4 sm:$0xff]  }
 0x882   :  { %v11392_v62 = vld [vmem:[#allocation14 + $0xc0] ss:$28 sps:$4 sm:$0xff]  }
 0x883   :  { %8195 = vmatpush1.bf16.msra.mxu0 %v11271_v14  ;;  %8318 = vmatpush1.bf16.msra.mxu1 %v11274_v15  ;;  %v11331_v14 = vld [vmem:[#allocation14 + $0x738] ss:$28 sps:$4 sm:$0xff]   ;;  %v11334_v15 = vld [vmem:[#allocation14 + $0x740] ss:$28 sps:$4 sm:$0xff]  }
 0x884   :  { %8196 = vmatprep.subr.bf16.mxu0 %v11279_v20  ;;  %8319 = vmatprep.subr.bf16.mxu1 %v11282_v18  ;;  %v11342_v20 = vld [vmem:[#allocation14 + $0x77c] ss:$28 sps:$4 sm:$0xff]   ;;  %v11337_v18 = vld [vmem:[#allocation14 + $0x770] ss:$28 sps:$4 sm:$0xff]  }
 0x887   :  { %8197 = vmatpush1.bf16.msra.mxu0 %v11277_v21  ;;  %8320 = vmatpush1.bf16.msra.mxu1 %v11280_v16  ;;  %v11340_v21 = vld [vmem:[#allocation14 + $0x778] ss:$28 sps:$4 sm:$0xff]   ;;  %v11345_v16 = vld [vmem:[#allocation14 + $0x7ac] ss:$28 sps:$4 sm:$0xff]  }
 0x888   :  { %8198 = vmatprep.subr.bf16.mxu0 %v11285_v26  ;;  %8321 = vmatprep.subr.bf16.mxu1 %v11288_v28  ;;  %v11348_v26 = vld [vmem:[#allocation14 + $0x7b4] ss:$28 sps:$4 sm:$0xff]   ;;  %v11343_v28 = vld [vmem:[#allocation14 + $0x7a8] ss:$28 sps:$4 sm:$0xff]  }
 0x88b   :  { %8199 = vmatpush1.bf16.msra.mxu0 %v11283_v31  ;;  %8322 = vmatpush1.bf16.msra.mxu1 %v11286_v32  ;;  %v11346_v31 = vld [vmem:[#allocation14 + $0x7b0] ss:$28 sps:$4 sm:$0xff]   ;;  %v11351_v32 = vld [vmem:[#allocation14 + $0x7e4] ss:$28 sps:$4 sm:$0xff]  }
 0x88c   :  { %8200 = vmatprep.subr.bf16.mxu0 %v11291_v33  ;;  %8323 = vmatprep.subr.bf16.mxu1 %v11294_v53  ;;  %v11354_v33 = vld [vmem:[#allocation14 + $0x7ec] ss:$28 sps:$4 sm:$0xff]   ;;  %v11349_v53 = vld [vmem:[#allocation14 + $0x7e0] ss:$28 sps:$4 sm:$0xff]  }
 0x88f   :  { %8201 = vmatpush1.bf16.msra.mxu0 %v11289_v25  ;;  %8324 = vmatpush1.bf16.msra.mxu1 %v11292_v34  ;;  %v11352_v25 = vld [vmem:[#allocation14 + $0x7e8] ss:$28 sps:$4 sm:$0xff]   ;;  %v11357_v34 = vld [vmem:[#allocation14 + $0x81c] ss:$28 sps:$4 sm:$0xff]  }
 0x890   :  { %8202 = vmatprep.subr.bf16.mxu0 %v11297_v29  ;;  %8325 = vmatprep.subr.bf16.mxu1 %v11300_v35  ;;  %v11360_v29 = vld [vmem:[#allocation14 + $0x824] ss:$28 sps:$4 sm:$0xff]   ;;  %v11355_v35 = vld [vmem:[#allocation14 + $0x818] ss:$28 sps:$4 sm:$0xff]  }
 0x893   :  { %8203 = vmatpush1.bf16.msra.mxu0 %v11295_v38  ;;  %8326 = vmatpush1.bf16.msra.mxu1 %v11298_v40  ;;  %v11358_v38 = vld [vmem:[#allocation14 + $0x820] ss:$28 sps:$4 sm:$0xff]   ;;  %v11363_v40 = vld [vmem:[#allocation14 + $0x854] ss:$28 sps:$4 sm:$0xff]  }
 0x894   :  { %8204 = vmatprep.subr.bf16.mxu0 %v11303_v39  ;;  %8327 = vmatprep.subr.bf16.mxu1 %v11306_v42  ;;  %v11366_v39 = vld [vmem:[#allocation14 + $0x85c] ss:$28 sps:$4 sm:$0xff]   ;;  %v11361_v42 = vld [vmem:[#allocation14 + $0x850] ss:$28 sps:$4 sm:$0xff]  }
 0x897   :  { %8205 = vmatpush1.bf16.msra.mxu0 %v11301_v43  ;;  %8328 = vmatpush1.bf16.msra.mxu1 %v11304_v44  ;;  %v11364_v43 = vld [vmem:[#allocation14 + $0x858] ss:$28 sps:$4 sm:$0xff]   ;;  %v11369_v44 = vld [vmem:[#allocation14 + $0x88c] ss:$28 sps:$4 sm:$0xff]  }
 0x898   :  { %8206 = vmatprep.subr.bf16.mxu0 %v11309_v57  ;;  %8329 = vmatprep.subr.bf16.mxu1 %v11312_v46  ;;  %v11372_v57 = vld [vmem:[#allocation14 + $0x894] ss:$28 sps:$4 sm:$0xff]   ;;  %v11367_v46 = vld [vmem:[#allocation14 + $0x888] ss:$28 sps:$4 sm:$0xff]  }
 0x89b   :  { %8207 = vmatpush1.bf16.msra.mxu0 %v11307_v10  ;;  %8330 = vmatpush1.bf16.msra.mxu1 %v11310_v47  ;;  %v11370_v10 = vld [vmem:[#allocation14 + $0x890] ss:$28 sps:$4 sm:$0xff]  }
 0x89c   :  { %8208 = vmatprep.subr.bf16.mxu0 %v11315_v48  ;;  %8331 = vmatprep.subr.bf16.mxu1 %v11318_v36  ;;  %v11376_v48 = vld [vmem:[#allocation14 + $0x1d8] ss:$28 sps:$4 sm:$0xff]   ;;  %v11373_v36 = vld [vmem:[#allocation14 + $0x10] ss:$28 sps:$4 sm:$0xff]  }
 0x89d   :  { %v9829_v55 = vpop.f32.mrb[40].mxu1 }
 0x89e   :  { %v9830_v56 = vpop.f32.mrb[41].mxu1 }
 0x89f   :  { %v9831_v59 = vadd.f32 %v9830_v56, %v9829_v55  ;;  %8209 = vmatpush1.bf16.msra.mxu0 %v11313_v50  ;;  %8332 = vmatpush1.bf16.msra.mxu1 %v11316_v51  ;;  %v9832_v60 = vpop.f32.mrb[42].mxu1  ;;  %v11377_v50 = vld [vmem:[#allocation14 + $0x18] ss:$28 sps:$4 sm:$0xff]   ;;  %v11380_v51 = vld [vmem:[#allocation14 + $0x4c] ss:$28 sps:$4 sm:$0xff]  }
 0x8a0   :  { %v9833_v63 = vpop.f32.mrb[43].mxu1  ;;  %8210 = vmatprep.subr.bf16.mxu0 %v11321_v54  ;;  %8333 = vmatprep.subr.bf16.mxu1 %v11324_v37  ;;  %v11378_v54 = vld [vmem:[#allocation14 + $0x48] ss:$28 sps:$4 sm:$0xff]   ;;  %v11382_v37 = vld [vmem:[#allocation14 + $0x50] ss:$28 sps:$4 sm:$0xff]  }
 0x8a1   :  { %v12169_v2 = vadd.f32 %v9831_v59, %v6284_v58  ;;  %v11385_v55 = vld [vmem:[#allocation14 + $0x84] ss:$28 sps:$4 sm:$0xff]   ;;  %v11390_v60 = vld [vmem:[#allocation14 + $0xbc] ss:$28 sps:$4 sm:$0xff]   ;;  %v11395_v63 = vld [vmem:[#allocation14 + $0xf4] ss:$28 sps:$4 sm:$0xff]  }
 0x8a2   :  { %v11386_v56 = vld [vmem:[#allocation14 + $0x248] ss:$28 sps:$4 sm:$0xff]   ;;  %v11383_v58 = vld [vmem:[#allocation14 + $0x80] ss:$28 sps:$4 sm:$0xff]  }
 0x8a3   :  { %8211 = vmatpush1.bf16.msra.mxu0 %v11319_v61  ;;  %8334 = vmatpush1.bf16.msra.mxu1 %v11322_v19  ;;  %v6333_v47 = vmax.f32 %v12169_v2, 0.0  ;;  %v11387_v59 = vld [vmem:[#allocation14 + $0x88] ss:$28 sps:$4 sm:$0xff]   ;;  %v11391_v61 = vld [vmem:[#allocation14 + $0x280] ss:$28 sps:$4 sm:$0xff]  }
 0x8a4   :  { %8221 = vmatprep.subr.bf16.mxu0 %v11327_v1  ;;  %8344 = vmatprep.subr.bf16.mxu1 %v11330_v22  ;;  %v11388_v19 = vld [vmem:[#allocation14 + $0xb8] ss:$28 sps:$4 sm:$0xff]   ;;  %v11393_v1 = vld [vmem:[#allocation14 + $0xf0] ss:$28 sps:$4 sm:$0xff]  }
 0x8a5   :  { %v12178_v49 = vpack.c.bf16 %v6333_v47, %v6333_v47  ;;  %v11397_v22 = vld [vmem:[#allocation14 + $0xf8] ss:$28 sps:$4 sm:$0xff]   ;;  %v11400_v2 = vld [vmem:[#allocation14 + $0x12c] ss:$28 sps:$4 sm:$0xff]  }
 0x8a6   :  { %8213 = vmatmul.mubr.bf16.vlgmr.msra.gmra.mrb[28].mxu0 %v12171_v5  ;;  %8336 = vmatmul.mubr.bf16.vlgmr.msra.gmra.mrb[44].mxu1 %v12171_v5  ;;  %v11437_v47 = vld [vmem:[#allocation14 + $0x478] ss:$28 sps:$4 sm:$0xff]  }
 0x8a7   :  { %8222 = vmatpush1.bf16.msra.mxu0 %v11325_v3  ;;  %8345 = vmatpush1.bf16.msra.mxu1 %v11328_v4  ;;  %v11401_v3 = vld [vmem:[#allocation14 + $0x2f0] ss:$28 sps:$4 sm:$0xff]   ;;  %v11398_v4 = vld [vmem:[#allocation14 + $0x128] ss:$28 sps:$4 sm:$0xff]  }
 0x8a8   :  { %8223 = vmatprep.subr.bf16.mxu0 %v11333_v12  ;;  %8346 = vmatprep.subr.bf16.mxu1 %v11336_v13  ;;  %v11402_v12 = vld [vmem:[#allocation14 + $0x130] ss:$28 sps:$4 sm:$0xff]   ;;  %v11405_v13 = vld [vmem:[#allocation14 + $0x164] ss:$28 sps:$4 sm:$0xff]  }
 0x8a9   :  { %8253 = vmatprep.mubr.bf16.mxu0 %v11784_v0  ;;  %8376 = vmatprep.mubr.bf16.mxu1 %v11784_v0 }
 0x8ab   :  { %8224 = vmatpush1.bf16.msra.mxu0 %v11331_v14  ;;  %8347 = vmatpush1.bf16.msra.mxu1 %v11334_v15  ;;  %v11406_v14 = vld [vmem:[#allocation14 + $0x328] ss:$28 sps:$4 sm:$0xff]   ;;  %v11403_v15 = vld [vmem:[#allocation14 + $0x160] ss:$28 sps:$4 sm:$0xff]  }
 0x8ac   :  { %8225 = vmatprep.subr.bf16.mxu0 %v11339_v23  ;;  %8348 = vmatprep.subr.bf16.mxu1 %v11342_v20  ;;  %v11407_v23 = vld [vmem:[#allocation14 + $0x168] ss:$28 sps:$4 sm:$0xff]   ;;  %v11410_v20 = vld [vmem:[#allocation14 + $0x19c] ss:$28 sps:$4 sm:$0xff]  }
 0x8af   :  { %8226 = vmatpush1.bf16.msra.mxu0 %v11337_v18  ;;  %8349 = vmatpush1.bf16.msra.mxu1 %v11340_v21  ;;  %v11411_v18 = vld [vmem:[#allocation14 + $0x360] ss:$28 sps:$4 sm:$0xff]   ;;  %v11408_v21 = vld [vmem:[#allocation14 + $0x198] ss:$28 sps:$4 sm:$0xff]  }
 0x8b0   :  { %8227 = vmatprep.subr.bf16.mxu0 %v11345_v16  ;;  %8350 = vmatprep.subr.bf16.mxu1 %v11348_v26  ;;  %v11412_v16 = vld [vmem:[#allocation14 + $0x1a0] ss:$28 sps:$4 sm:$0xff]   ;;  %v11415_v26 = vld [vmem:[#allocation14 + $0x1d4] ss:$28 sps:$4 sm:$0xff]  }
 0x8b3   :  { %8228 = vmatpush1.bf16.msra.mxu0 %v11343_v28  ;;  %8351 = vmatpush1.bf16.msra.mxu1 %v11346_v31  ;;  %v11416_v28 = vld [vmem:[#allocation14 + $0x558] ss:$28 sps:$4 sm:$0xff]   ;;  %v11413_v31 = vld [vmem:[#allocation14 + $0x1d0] ss:$28 sps:$4 sm:$0xff]  }
 0x8b4   :  { %8229 = vmatprep.subr.bf16.mxu0 %v11351_v32  ;;  %8352 = vmatprep.subr.bf16.mxu1 %v11354_v33  ;;  %v11417_v32 = vld [vmem:[#allocation14 + $0x398] ss:$28 sps:$4 sm:$0xff]   ;;  %v11420_v33 = vld [vmem:[#allocation14 + $0x20c] ss:$28 sps:$4 sm:$0xff]  }
 0x8b7   :  { %8230 = vmatpush1.bf16.msra.mxu0 %v11349_v53  ;;  %8353 = vmatpush1.bf16.msra.mxu1 %v11352_v25  ;;  %v11421_v53 = vld [vmem:[#allocation14 + $0x590] ss:$28 sps:$4 sm:$0xff]   ;;  %v11418_v25 = vld [vmem:[#allocation14 + $0x208] ss:$28 sps:$4 sm:$0xff]  }
 0x8b8   :  { %8231 = vmatprep.subr.bf16.mxu0 %v11357_v34  ;;  %8354 = vmatprep.subr.bf16.mxu1 %v11360_v29  ;;  %v11422_v34 = vld [vmem:[#allocation14 + $0x3d0] ss:$28 sps:$4 sm:$0xff]   ;;  %v11425_v29 = vld [vmem:[#allocation14 + $0x244] ss:$28 sps:$4 sm:$0xff]  }
 0x8bb   :  { %8232 = vmatpush1.bf16.msra.mxu0 %v11355_v35  ;;  %8355 = vmatpush1.bf16.msra.mxu1 %v11358_v38  ;;  %v11426_v35 = vld [vmem:[#allocation14 + $0x5c8] ss:$28 sps:$4 sm:$0xff]   ;;  %v11423_v38 = vld [vmem:[#allocation14 + $0x240] ss:$28 sps:$4 sm:$0xff]  }
 0x8bc   :  { %8233 = vmatprep.subr.bf16.mxu0 %v11363_v40  ;;  %8356 = vmatprep.subr.bf16.mxu1 %v11366_v39  ;;  %v11427_v40 = vld [vmem:[#allocation14 + $0x408] ss:$28 sps:$4 sm:$0xff]   ;;  %v11430_v39 = vld [vmem:[#allocation14 + $0x27c] ss:$28 sps:$4 sm:$0xff]  }
 0x8bf   :  { %8234 = vmatpush1.bf16.msra.mxu0 %v11361_v42  ;;  %8357 = vmatpush1.bf16.msra.mxu1 %v11364_v43  ;;  %v11431_v42 = vld [vmem:[#allocation14 + $0x600] ss:$28 sps:$4 sm:$0xff]   ;;  %v11428_v43 = vld [vmem:[#allocation14 + $0x278] ss:$28 sps:$4 sm:$0xff]  }
 0x8c0   :  { %8235 = vmatprep.subr.bf16.mxu0 %v11369_v44  ;;  %8358 = vmatprep.subr.bf16.mxu1 %v11372_v57  ;;  %v11432_v44 = vld [vmem:[#allocation14 + $0x440] ss:$28 sps:$4 sm:$0xff]   ;;  %v11435_v57 = vld [vmem:[#allocation14 + $0x2b4] ss:$28 sps:$4 sm:$0xff]  }
 0x8c3   :  { %8236 = vmatpush1.bf16.msra.mxu0 %v11367_v46  ;;  %8359 = vmatpush1.bf16.msra.mxu1 %v11370_v10  ;;  %v11436_v46 = vld [vmem:[#allocation14 + $0x638] ss:$28 sps:$4 sm:$0xff]   ;;  %v11433_v10 = vld [vmem:[#allocation14 + $0x2b0] ss:$28 sps:$4 sm:$0xff]  }
 0x8c4   :  { %8385 = vmatprep.subr.bf16.mxu0 %v11375_v27  ;;  %9835 = vmatprep.subr.bf16.mxu1 %v11376_v48  ;;  %v11440_v27 = vld [vmem:[#allocation14 + $0x2ec] ss:$28 sps:$4 sm:$0xff]  }
 0x8c5   :  { %v11441_v48 = vld [vmem:[#allocation14 + $0x670] ss:$28 sps:$4 sm:$0xff]  }
 0x8c6   :  { %8254 = vmatmul.mubr.bf16.vlgmr.msra.gmra.mrb[28].mxu0 %v12178_v49  ;;  %8377 = vmatmul.mubr.bf16.vlgmr.msra.gmra.mrb[44].mxu1 %v12178_v49 }
 0x8c7   :  { %8386 = vmatpush1.bf16.msra.mxu0 %v11373_v36  ;;  %8417 = vmatprep.mubr.bf16.mxu0 %v12149_v41  ;;  %v11438_v36 = vld [vmem:[#allocation14 + $0x2e8] ss:$28 sps:$4 sm:$0xff]  }
 0x8c8   :  { %9836 = vmatpush3.bf16.msra.mxu1 %v11377_v50  ;;  %8540 = vmatprep.mubr.bf16.mxu1 %v12149_v41  ;;  %v11396_v41 = vld [vmem:[#allocation14 + $0x2b8] ss:$28 sps:$4 sm:$0xff]   ;;  %v11442_v50 = vld [vmem:[#allocation14 + $0x4b0] ss:$28 sps:$4 sm:$0xff]  }
 0x8c9   :  { %8387 = vmatprep.subr.bf16.mxu0 %v11380_v51  ;;  %9837 = vmatprep.subr.bf16.mxu1 %v11381_v52  ;;  %v11445_v51 = vld [vmem:[#allocation14 + $0x324] ss:$28 sps:$4 sm:$0xff]  }
 0x8ca   :  { %v11446_v52 = vld [vmem:[#allocation14 + $0x6a8] ss:$28 sps:$4 sm:$0xff]  }
 0x8cb   :  { %8388 = vmatpush1.bf16.msra.mxu0 %v11378_v54  ;;  %v11443_v54 = vld [vmem:[#allocation14 + $0x320] ss:$28 sps:$4 sm:$0xff]  }
 0x8cc   :  { %9838 = vmatpush3.bf16.msra.mxu1 %v11382_v37  ;;  %8389 = vmatprep.subr.bf16.mxu0 %v11385_v55  ;;  %v11447_v37 = vld [vmem:[#allocation14 + $0x4e8] ss:$28 sps:$4 sm:$0xff]   ;;  %v11450_v55 = vld [vmem:[#allocation14 + $0x35c] ss:$28 sps:$4 sm:$0xff]  }
 0x8cd   :  { %9839 = vmatprep.subr.bf16.mxu1 %v11386_v56  ;;  %v11451_v56 = vld [vmem:[#allocation14 + $0x6e0] ss:$28 sps:$4 sm:$0xff]  }
 0x8cf   :  { %8390 = vmatpush1.bf16.msra.mxu0 %v11383_v58  ;;  %v11448_v58 = vld [vmem:[#allocation14 + $0x358] ss:$28 sps:$4 sm:$0xff]  }
 0x8d0   :  { %9840 = vmatpush3.bf16.msra.mxu1 %v11387_v59  ;;  %8391 = vmatprep.subr.bf16.mxu0 %v11390_v60  ;;  %v11452_v59 = vld [vmem:[#allocation14 + $0x520] ss:$28 sps:$4 sm:$0xff]   ;;  %v11455_v60 = vld [vmem:[#allocation14 + $0x394] ss:$28 sps:$4 sm:$0xff]  }
 0x8d1   :  { %9841 = vmatprep.subr.bf16.mxu1 %v11391_v61  ;;  %v11453_v61 = vld [vmem:[#allocation14 + $0x390] ss:$28 sps:$4 sm:$0xff]  }
 0x8d3   :  { %8392 = vmatpush1.bf16.msra.mxu0 %v11388_v19  ;;  %v11456_v19 = vld [vmem:[#allocation14 + $0x718] ss:$28 sps:$4 sm:$0xff]  }
 0x8d4   :  { %9842 = vmatpush3.bf16.msra.mxu1 %v11392_v62  ;;  %8393 = vmatprep.subr.bf16.mxu0 %v11395_v63  ;;  %v11459_v62 = vld [vmem:[#allocation14 + $0x3cc] ss:$28 sps:$4 sm:$0xff]  }
 0x8d5   :  { %9843 = vmatprep.subr.bf16.mxu1 %v11396_v41  ;;  %v11457_v63 = vld [vmem:[#allocation14 + $0x3c8] ss:$28 sps:$4 sm:$0xff]   ;;  %v11460_v41 = vld [vmem:[#allocation14 + $0x750] ss:$28 sps:$4 sm:$0xff]  }
 0x8d7   :  { %8394 = vmatpush1.bf16.msra.mxu0 %v11393_v1  ;;  %v11463_v1 = vld [vmem:[#allocation14 + $0x404] ss:$28 sps:$4 sm:$0xff]  }
 0x8d8   :  { %9844 = vmatpush3.bf16.msra.mxu1 %v11397_v22  ;;  %8395 = vmatprep.subr.bf16.mxu0 %v11400_v2  ;;  %v11461_v22 = vld [vmem:[#allocation14 + $0x400] ss:$28 sps:$4 sm:$0xff]  }
 0x8d9   :  { %9845 = vmatprep.subr.bf16.mxu1 %v11401_v3  ;;  %v11467_v2 = vld [vmem:[#allocation14 + $0x43c] ss:$28 sps:$4 sm:$0xff]  }
 0x8da   :  { %v11465_v3 = vld [vmem:[#allocation14 + $0x438] ss:$28 sps:$4 sm:$0xff]  }
 0x8db   :  { %8396 = vmatpush1.bf16.msra.mxu0 %v11398_v4  ;;  %v11471_v4 = vld [vmem:[#allocation14 + $0x474] ss:$28 sps:$4 sm:$0xff]  }
 0x8dc   :  { %9846 = vmatpush3.bf16.msra.mxu1 %v11402_v12  ;;  %8397 = vmatprep.subr.bf16.mxu0 %v11405_v13  ;;  %v11469_v12 = vld [vmem:[#allocation14 + $0x470] ss:$28 sps:$4 sm:$0xff]   ;;  %v11472_v13 = vld [vmem:[#allocation14 + $0x7f8] ss:$28 sps:$4 sm:$0xff]  }
 0x8dd   :  { %9847 = vmatprep.subr.bf16.mxu1 %v11406_v14  ;;  %v11475_v14 = vld [vmem:[#allocation14 + $0x4ac] ss:$28 sps:$4 sm:$0xff]  }
 0x8df   :  { %8398 = vmatpush1.bf16.msra.mxu0 %v11403_v15  ;;  %v11473_v15 = vld [vmem:[#allocation14 + $0x4a8] ss:$28 sps:$4 sm:$0xff]  }
 0x8e0   :  { %9848 = vmatpush3.bf16.msra.mxu1 %v11407_v23  ;;  %8399 = vmatprep.subr.bf16.mxu0 %v11410_v20  ;;  %v11476_v23 = vld [vmem:[#allocation14 + $0x830] ss:$28 sps:$4 sm:$0xff]   ;;  %v11479_v20 = vld [vmem:[#allocation14 + $0x4e4] ss:$28 sps:$4 sm:$0xff]  }
 0x8e1   :  { %9849 = vmatprep.subr.bf16.mxu1 %v11411_v18  ;;  %v11477_v18 = vld [vmem:[#allocation14 + $0x4e0] ss:$28 sps:$4 sm:$0xff]  }
 0x8e3   :  { %8400 = vmatpush1.bf16.msra.mxu0 %v11408_v21  ;;  %v11480_v21 = vld [vmem:[#allocation14 + $0x868] ss:$28 sps:$4 sm:$0xff]  }
 0x8e4   :  { %9850 = vmatpush3.bf16.msra.mxu1 %v11412_v16  ;;  %8401 = vmatprep.subr.bf16.mxu0 %v11415_v26  ;;  %v11483_v16 = vld [vmem:[#allocation14 + $0x51c] ss:$28 sps:$4 sm:$0xff]  }
 0x8e5   :  { %9857 = vmatprep.subr.bf16.mxu1 %v11416_v28  ;;  %v11481_v26 = vld [vmem:[#allocation14 + $0x518] ss:$28 sps:$4 sm:$0xff]   ;;  %v11484_v28 = vld [vmem:[#allocation14 + $0x8a0] ss:$28 sps:$4 sm:$0xff]  }
 0x8e7   :  { %8541 = vmatmul.mubr.bf16.vlgmr.msra.gmra.mrb[48].mxu1 %v12151_v8  ;;  %8402 = vmatpush1.bf16.msra.mxu0 %v11413_v31  ;;  %v11487_v31 = vld [vmem:[#allocation14 + $0x554] ss:$28 sps:$4 sm:$0xff]  }
 0x8e8   :  { %9858 = vmatpush3.bf16.msra.mxu1 %v11417_v32  ;;  %8580 = vmatprep.mubr.bf16.mxu1 %v12155_v45  ;;  %v11485_v32 = vld [vmem:[#allocation14 + $0x550] ss:$28 sps:$4 sm:$0xff]  }
 0x8e9   :  { %8403 = vmatprep.subr.bf16.mxu0 %v11420_v33  ;;  %9859 = vmatprep.subr.bf16.mxu1 %v11421_v53  ;;  %v11490_v33 = vld [vmem:[#allocation14 + $0x58c] ss:$28 sps:$4 sm:$0xff]  }
 0x8ea   :  { %v11488_v53 = vld [vmem:[#allocation14 + $0x588] ss:$28 sps:$4 sm:$0xff]  }
 0x8eb   :  { %8404 = vmatpush1.bf16.msra.mxu0 %v11418_v25  ;;  %v11493_v25 = vld [vmem:[#allocation14 + $0x5c4] ss:$28 sps:$4 sm:$0xff]  }
 0x8ec   :  { %9860 = vmatpush3.bf16.msra.mxu1 %v11422_v34  ;;  %8405 = vmatprep.subr.bf16.mxu0 %v11425_v29  ;;  %v11491_v34 = vld [vmem:[#allocation14 + $0x5c0] ss:$28 sps:$4 sm:$0xff]  }
 0x8ed   :  { %9861 = vmatprep.subr.bf16.mxu1 %v11426_v35  ;;  %v11496_v29 = vld [vmem:[#allocation14 + $0x5fc] ss:$28 sps:$4 sm:$0xff]  }
 0x8ee   :  { %v11494_v35 = vld [vmem:[#allocation14 + $0x5f8] ss:$28 sps:$4 sm:$0xff]  }
 0x8ef   :  { %8406 = vmatpush1.bf16.msra.mxu0 %v11423_v38  ;;  %v11499_v38 = vld [vmem:[#allocation14 + $0x634] ss:$28 sps:$4 sm:$0xff]  }
 0x8f0   :  { %9862 = vmatpush3.bf16.msra.mxu1 %v11427_v40  ;;  %8407 = vmatprep.subr.bf16.mxu0 %v11430_v39  ;;  %v11502_v40 = vld [vmem:[#allocation14 + $0x66c] ss:$28 sps:$4 sm:$0xff]  }
 0x8f1   :  { %9863 = vmatprep.subr.bf16.mxu1 %v11431_v42  ;;  %v11500_v39 = vld [vmem:[#allocation14 + $0x668] ss:$28 sps:$4 sm:$0xff]  }
 0x8f2   :  { %v11505_v42 = vld [vmem:[#allocation14 + $0x6a4] ss:$28 sps:$4 sm:$0xff]  }
 0x8f3   :  { %8408 = vmatpush1.bf16.msra.mxu0 %v11428_v43  ;;  %v11503_v43 = vld [vmem:[#allocation14 + $0x6a0] ss:$28 sps:$4 sm:$0xff]  }
 0x8f4   :  { %9864 = vmatpush3.bf16.msra.mxu1 %v11432_v44  ;;  %8409 = vmatprep.subr.bf16.mxu0 %v11435_v57  ;;  %v11508_v44 = vld [vmem:[#allocation14 + $0x6dc] ss:$28 sps:$4 sm:$0xff]  }
 0x8f5   :  { %9865 = vmatprep.subr.bf16.mxu1 %v11436_v46  ;;  %v11506_v57 = vld [vmem:[#allocation14 + $0x6d8] ss:$28 sps:$4 sm:$0xff]  }
 0x8f6   :  { %v11511_v46 = vld [vmem:[#allocation14 + $0x714] ss:$28 sps:$4 sm:$0xff]  }
 0x8f7   :  { %8410 = vmatpush1.bf16.msra.mxu0 %v11433_v10  ;;  %v11509_v10 = vld [vmem:[#allocation14 + $0x710] ss:$28 sps:$4 sm:$0xff]  }
 0x8f8   :  { %9866 = vmatpush3.bf16.msra.mxu1 %v11437_v47  ;;  %8411 = vmatprep.subr.bf16.mxu0 %v11440_v27  ;;  %v11514_v47 = vld [vmem:[#allocation14 + $0x74c] ss:$28 sps:$4 sm:$0xff]  }
 0x8f9   :  { %9867 = vmatprep.subr.bf16.mxu1 %v11441_v48  ;;  %v11512_v27 = vld [vmem:[#allocation14 + $0x748] ss:$28 sps:$4 sm:$0xff]  }
 0x8fa   :  { %v11517_v48 = vld [vmem:[#allocation14 + $0x784] ss:$28 sps:$4 sm:$0xff]  }
 0x8fb   :  { %8412 = vmatpush1.bf16.msra.mxu0 %v11438_v36  ;;  %v11515_v36 = vld [vmem:[#allocation14 + $0x780] ss:$28 sps:$4 sm:$0xff]  }
 0x8fc   :  { %9868 = vmatpush3.bf16.msra.mxu1 %v11442_v50  ;;  %8413 = vmatprep.subr.bf16.mxu0 %v11445_v51  ;;  %v11520_v50 = vld [vmem:[#allocation14 + $0x7bc] ss:$28 sps:$4 sm:$0xff]  }
 0x8fd   :  { %9869 = vmatprep.subr.bf16.mxu1 %v11446_v52  ;;  %v11518_v51 = vld [vmem:[#allocation14 + $0x7b8] ss:$28 sps:$4 sm:$0xff]  }
 0x8fe   :  { %v11523_v52 = vld [vmem:[#allocation14 + $0x7f4] ss:$28 sps:$4 sm:$0xff]  }
 0x8ff   :  { %8414 = vmatpush1.bf16.msra.mxu0 %v11443_v54  ;;  %v11521_v54 = vld [vmem:[#allocation14 + $0x7f0] ss:$28 sps:$4 sm:$0xff]  }
 0x900   :  { %9870 = vmatpush3.bf16.msra.mxu1 %v11447_v37  ;;  %8415 = vmatprep.subr.bf16.mxu0 %v11450_v55  ;;  %v11526_v37 = vld [vmem:[#allocation14 + $0x82c] ss:$28 sps:$4 sm:$0xff]   ;;  %v11529_v55 = vld [vmem:[#allocation14 + $0x864] ss:$28 sps:$4 sm:$0xff]  }
 0x901   :  { %9871 = vmatprep.subr.bf16.mxu1 %v11451_v56  ;;  %v11532_v56 = vld [vmem:[#allocation14 + $0x89c] ss:$28 sps:$4 sm:$0xff]  }
 0x903   :  { %8416 = vmatpush1.bf16.msra.mxu0 %v11448_v58  ;;  %v11530_v58 = vld [vmem:[#allocation14 + $0x898] ss:$28 sps:$4 sm:$0xff]  }
 0x904   :  { %9872 = vmatpush3.bf16.msra.mxu1 %v11452_v59  ;;  %8426 = vmatprep.subr.bf16.mxu0 %v11455_v60  ;;  %v6660_v59 = vld [vmem:[#allocation16 + $0x7] ss:$8 sm:$0xf] }
 0x905   :  { %9908 = vmatprep.subr.bf16.mxu1 %v11785_v7  ;;  %v6661_v60 = vld [vmem:[#allocation16 + $0x7] ss:$8 sm:$0xf0] }
 0x906   :  { %8418 = vmatmul.mubr.bf16.vlgmr.msra.gmra.mrb[32].mxu0 %v12151_v8  ;;  %v11464_v8 = vld [vmem:[#allocation14 + $0x788] ss:$28 sps:$4 sm:$0xff]  }
 0x907   :  { %8581 = vmatmul.mubr.bf16.vlgmr.msra.gmra.mrb[52].mxu1 %v12171_v5  ;;  %8427 = vmatpush1.bf16.msra.mxu0 %v11453_v61  ;;  %v6662_v61 = vor.u32 %v6661_v60, %v6660_v59 }
 0x908   :  { %8458 = vmatprep.mubr.bf16.mxu0 %v12155_v45  ;;  %9909 = vmatpush3.bf16.msra.mxu1 %v11456_v19  ;;  %v11468_v45 = vld [vmem:[#allocation14 + $0x7c0] ss:$28 sps:$4 sm:$0xff]  }
 0x909   :  { %8428 = vmatprep.subr.bf16.mxu0 %v11459_v62  ;;  %9910 = vmatprep.subr.bf16.mxu1 %v11785_v7  ;;  %v6667_v19 = vrot.slane %v6662_v61, %v12054_v9  ;;  %v6675_v62 = vrot.slane %v6662_v61, %v12068_v24 }
 0x90a   :  { %9924 = vmatprep.mubr.msk.bf16.mxu1 %vm11786_vm0, %v11785_v7 }
 0x90b   :  { %8429 = vmatpush1.bf16.msra.mxu0 %v11457_v63  ;;  %v6671_v63 = vrot.slane %v6662_v61, %v12057_v11 }
 0x90c   :  { %9911 = vmatpush3.bf16.msra.mxu1 %v11460_v41  ;;  %8430 = vmatprep.subr.bf16.mxu0 %v11463_v1  ;;  %v6679_v41 = vrot.slane %v6662_v61, %v12071_v30 }
 0x90d   :  { %9912 = vmatprep.subr.bf16.mxu1 %v11785_v7 }
 0x90f   :  { %8431 = vmatpush1.bf16.msra.mxu0 %v11461_v22 }
 0x910   :  { %9913 = vmatpush3.bf16.msra.mxu1 %v11464_v8  ;;  %8432 = vmatprep.subr.bf16.mxu0 %v11467_v2 }
 0x911   :  { %9914 = vmatprep.subr.bf16.mxu1 %v11785_v7 }
 0x913   :  { %8433 = vmatpush1.bf16.msra.mxu0 %v11465_v3 }
 0x914   :  { %9915 = vmatpush3.bf16.msra.mxu1 %v11468_v45  ;;  %8434 = vmatprep.subr.bf16.mxu0 %v11471_v4 }
 0x915   :  { %9916 = vmatprep.subr.bf16.mxu1 %v11785_v7 }
 0x917   :  { %8435 = vmatpush1.bf16.msra.mxu0 %v11469_v12 }
 0x918   :  { %9917 = vmatpush3.bf16.msra.mxu1 %v11472_v13  ;;  %8436 = vmatprep.subr.bf16.mxu0 %v11475_v14 }
 0x919   :  { %9918 = vmatprep.subr.bf16.mxu1 %v11785_v7 }
 0x91b   :  { %8437 = vmatpush1.bf16.msra.mxu0 %v11473_v15 }
 0x91c   :  { %9919 = vmatpush3.bf16.msra.mxu1 %v11476_v23  ;;  %8438 = vmatprep.subr.bf16.mxu0 %v11479_v20  ;;  %v6690_v20 = vsub.s32 6, %v12049_v6 }
 0x91d   :  { %9920 = vmatprep.subr.bf16.mxu1 %v11785_v7 }
 0x91f   :  { %8439 = vmatpush1.bf16.msra.mxu0 %v11477_v18  ;;  %v6691_v18 = vrot.slane %v6662_v61, %v6690_v20 }
 0x920   :  { %9921 = vmatpush3.bf16.msra.mxu1 %v11480_v21  ;;  %8440 = vmatprep.subr.bf16.mxu0 %v11483_v16 }
 0x921   :  { %9922 = vmatprep.subr.bf16.mxu1 %v11785_v7  ;;  %v11497_v7 = vld [vmem:[#allocation14 + $0x630] ss:$28 sps:$4 sm:$0xff]  }
 0x923   :  { %8441 = vmatpush1.bf16.msra.mxu0 %v11481_v26 }
 0x924   :  { %9923 = vmatpush3.bf16.msra.mxu1 %v11484_v28  ;;  %8442 = vmatprep.subr.bf16.mxu0 %v11487_v31 }
 0x927   :  { %9925 = vmatmul.mubr.bf16.vlgmr.msra.gmra.mrb[56].mxu1 %v12178_v49  ;;  %8443 = vmatpush1.bf16.msra.mxu0 %v11485_v32 }
 0x928   :  { %8444 = vmatprep.subr.bf16.mxu0 %v11490_v33 }
 0x92b   :  { %8445 = vmatpush1.bf16.msra.mxu0 %v11488_v53 }
 0x92c   :  { %8446 = vmatprep.subr.bf16.mxu0 %v11493_v25 }
 0x92f   :  { %8447 = vmatpush1.bf16.msra.mxu0 %v11491_v34 }
 0x930   :  { %8448 = vmatprep.subr.bf16.mxu0 %v11496_v29 }
 0x933   :  { %8449 = vmatpush1.bf16.msra.mxu0 %v11494_v35 }
 0x934   :  { %8450 = vmatprep.subr.bf16.mxu0 %v11499_v38  ;;  %v6686_v38 = vsub.s32 5, %v12049_v6 }
 0x937   :  { %8451 = vmatpush1.bf16.msra.mxu0 %v11497_v7  ;;  %v6683_v7 = vrot.slane %v6662_v61, %v12082_v17 }
 0x938   :  { %8452 = vmatprep.subr.bf16.mxu0 %v11502_v40  ;;  %v6687_v40 = vrot.slane %v6662_v61, %v6686_v38 }
 0x93b   :  { %8453 = vmatpush1.bf16.msra.mxu0 %v11500_v39 }
 0x93c   :  { %8454 = vmatprep.subr.bf16.mxu0 %v11505_v42 }
 0x93f   :  { %8455 = vmatpush1.bf16.msra.mxu0 %v11503_v43 }
 0x940   :  { %8456 = vmatprep.subr.bf16.mxu0 %v11508_v44 }
 0x943   :  { %8457 = vmatpush1.bf16.msra.mxu0 %v11506_v57 }
 0x944   :  { %8467 = vmatprep.subr.bf16.mxu0 %v11511_v46 }
 0x946   :  { %8459 = vmatmul.mubr.bf16.vlgmr.msra.gmra.mrb[32].mxu0 %v12171_v5  ;;  %v11524_v5 = vld [vmem:[#allocation14 + $0x828] ss:$28 sps:$4 sm:$0xff]  }
 0x947   :  { %8468 = vmatpush1.bf16.msra.mxu0 %v11509_v10  ;;  %8499 = vmatprep.mubr.bf16.mxu0 %v11784_v0  ;;  %v11527_v0 = vld [vmem:[#allocation14 + $0x860] ss:$28 sps:$4 sm:$0xff]  }
 0x948   :  { %8469 = vmatprep.subr.bf16.mxu0 %v11514_v47 }
 0x94b   :  { %8470 = vmatpush1.bf16.msra.mxu0 %v11512_v27 }
 0x94c   :  { %8471 = vmatprep.subr.bf16.mxu0 %v11517_v48 }
 0x94f   :  { %8472 = vmatpush1.bf16.msra.mxu0 %v11515_v36 }
 0x950   :  { %8473 = vmatprep.subr.bf16.mxu0 %v11520_v50 }
 0x953   :  { %8474 = vmatpush1.bf16.msra.mxu0 %v11518_v51 }
 0x954   :  { %8475 = vmatprep.subr.bf16.mxu0 %v11523_v52 }
 0x957   :  { %8476 = vmatpush1.bf16.msra.mxu0 %v11521_v54 }
 0x958   :  { %8477 = vmatprep.subr.bf16.mxu0 %v11526_v37 }
 0x95b   :  { %8478 = vmatpush1.bf16.msra.mxu0 %v11524_v5 }
 0x95c   :  { %8479 = vmatprep.subr.bf16.mxu0 %v11529_v55 }
 0x95f   :  { %8480 = vmatpush1.bf16.msra.mxu0 %v11527_v0 }
 0x960   :  { %8481 = vmatprep.subr.bf16.mxu0 %v11532_v56 }
 0x963   :  { %8482 = vmatpush1.bf16.msra.mxu0 %v11530_v58 }
 0x966   :  { %8500 = vmatmul.mubr.bf16.vlgmr.msra.gmra.mrb[32].mxu0 %v12178_v49 }
 0x999   :  { %v8255_v1 = vpop.f32.mrb[28].mxu0  ;;  %v8378_v22 = vpop.f32.mrb[44].mxu1 }
 0x99a   :  { %v9944_v8 = vadd.f32 %v8255_v1, %v6667_v19  ;;  %v9946_v2 = vadd.f32 %v8378_v22, %v6675_v62  ;;  %v8257_v3 = vpop.f32.mrb[29].mxu0  ;;  %v8380_v45 = vpop.f32.mrb[45].mxu1 }
 0x99b   :  { %v9945_v4 = vadd.f32 %v8257_v3, %v6671_v63  ;;  %v9947_v12 = vadd.f32 %v8380_v45, %v6679_v41  ;;  %v8259_v49 = vpop.f32.mrb[30].mxu0  ;;  %v8382_v13 = vpop.f32.mrb[46].mxu1 }
 0x99c   :  { %8628 = vst [vmem:[#allocation17] sm:$0xff] %v9944_v8  ;;  %8630 = vst [vmem:[#allocation17 + $0x10] sm:$0xff] %v9946_v2  ;;  %v8260_v14 = vpop.f32.mrb[31].mxu0  ;;  %v8383_v9 = vpop.f32.mrb[47].mxu1 }
 0x99d   :  { %8629 = vst [vmem:[#allocation17 + $0x8] sm:$0xff] %v9945_v4  ;;  %8631 = vst [vmem:[#allocation17 + $0x18] sm:$0xff] %v9947_v12 }
 0x9ba   :  { %v9851_v24 = vpop.f32.mrb[48].mxu1 }
 0x9bb   :  { %v9852_v11 = vpop.f32.mrb[49].mxu1 }
 0x9bc   :  { %v9853_v15 = vadd.f32 %v9852_v11, %v9851_v24  ;;  %v9854_v30 = vpop.f32.mrb[50].mxu1 }
 0x9bd   :  { %v9855_v23 = vpop.f32.mrb[51].mxu1 }
 0x9be   :  { %v8543_v26 = vadd.f32 %v9853_v15, %v6691_v18 }
 0x9da   :  { %v9873_v21 = vpop.f32.mrb[52].mxu1 }
 0x9db   :  { %v9874_v16 = vpop.f32.mrb[53].mxu1 }
 0x9dc   :  { %v9875_v28 = vadd.f32 %v9874_v16, %v9873_v21  ;;  %v9876_v31 = vpop.f32.mrb[54].mxu1 }
 0x9dd   :  { %v9877_v32 = vpop.f32.mrb[55].mxu1 }
 0x9de   :  { %v8583_v33 = vadd.f32 %v9875_v28, %v8543_v26 }
 0x9fa   :  { %v8622_v53 = vpop.f32.mrb[56].mxu1 }
 0x9fb   :  { %v8623_v25 = vadd.f32 %v8622_v53, %v8583_v33  ;;  %v9926_v34 = vpop.f32.mrb[57].mxu1 }
 0x9fc   :  { %v8625_v29 = vpop.f32.mrb[58].mxu1 }
 0x9fd   :  { %8634 = vst [vmem:[#allocation17 + $0x30] sm:$0xff] %v8623_v25  ;;  %v9927_v35 = vpop.f32.mrb[59].mxu1 }
 0xa39   :  { %v8501_v39 = vpop.f32.mrb[32].mxu0 }
 0xa3a   :  { %v9948_v42 = vadd.f32 %v8501_v39, %v6683_v7  ;;  %v8503_v43 = vpop.f32.mrb[33].mxu0 }
 0xa3b   :  { %v9949_v44 = vadd.f32 %v8503_v43, %v6687_v40  ;;  %v8505_v57 = vpop.f32.mrb[34].mxu0 }
 0xa3c   :  { %8632 = vst [vmem:[#allocation17 + $0x20] sm:$0xff] %v9948_v42  ;;  %v8506_v46 = vpop.f32.mrb[35].mxu0 }
 0xa3d   :  { %8633 = vst [vmem:[#allocation17 + $0x28] sm:$0xff] %v9949_v44 }
 0xa3e   :  { %11742 = shalt.err (!%p11739_p6)
}
 0xa3f   :  { %s11743_s30 = scalar_lea.hbm %s12232_s10, 896 }
 0xa40   :  { %p11744_p7 = scmp.ne.s32.totalorder %s12232_s10, %s11743_s30  ;;  %p11747_p8 = scmp.lt.u32.totalorder %s11743_s30, %s12232_s10 }
 0xa42   :  { %p11749_p9 = pnand %p11747_p8, %p11744_p7 }
 0xa44   :  { %11752 = shalt.err (!%p11749_p9)
}
 0xa45   :  { %8644 = dma.vmem_to_hbm [thread:$0]  %s8642_s29, 896, %s12232_s10, [#allocation4]  }
 0xa46   :  { %11763 = dma.done.wait [#allocation4], 896  }
 0xa47   :  { %11764 = vsyncadd [#allocation4], 4294966400 }
 0xa48   :  { %8648 = vsyncpa [#allocation3], 1 }
 0xa49   :  { %8649 = vsyncpa [#allocation6], 1 }
 0xa4a   :  { %8650 = vsyncpa [#allocation9], 1 }
 0xa4b   :  { %8651 = vsyncpa [#allocation12], 1 }
 0xa4c   :  { %8652 = vsyncpa [#allocation15], 1 }
 0xa4d   :  { %8653 = vsyncpa [#allocation4], 1 }

</bundles_post_ra>
